<compile_context>
chip_gen: v7x
topology: tpu7x:2x2x1
jax: 0.10.0
libtpu: 0.0.40
codegen_flags: <defaults>
</compile_context>

<pallas_src>
import math

import jax
import jax.numpy as jnp
from jax import lax
from jax.experimental import pallas as pl
from jax.experimental.pallas import tpu as pltpu

BN_EPS = 1e-5
HEAD_LANES = 128          # 3-class output head padded to a lane-dense 128 columns
NEG_PAD = -1e9            # logit value of padded head columns (exp underflows to 0)


# --------------------------------------------------------------------------------------
# Pallas kernel: full forward for ONE batch tile (grid iterates over batch tiles).
# --------------------------------------------------------------------------------------
def gnn_kernel(
    # per-batch-tile inputs
    vf_ref, cf_ref, a_ref, vm_ref, cm_ref,
    # projection MLPs (eval-BN already folded into W / b)
    vpw_ref, vpb_ref, cpw_ref, cpb_ref,
    # stacked message-passing params [L, ...]  (concat weight kept UNSPLIT: [L, 2H, H])
    mvfw_ref, mvfb_ref, mvlw_ref, mvlb_ref,
    mcfw_ref, mcfb_ref, mclw_ref, mclb_ref,
    # padded, lane-dense output heads
    vow_ref, vob_ref, cow_ref, cob_ref,
    # outputs (lane-dense, HEAD_LANES wide; wrapper slices back to 3 classes)
    vprob_ref, cprob_ref, vlog_ref, clog_ref,
):
    BT, NV, FV = vf_ref.shape
    NC, FC = cf_ref.shape[1], cf_ref.shape[2]
    H = vpw_ref.shape[1]
    L = mvfw_ref.shape[0]
    f32, bf16 = jnp.float32, jnp.bfloat16

    def dot(x, w):
        # bf16 MXU operands, f32 accumulation; elementwise math stays f32 (v5e-safe).
        return jnp.dot(x, w, preferred_element_type=f32)

    # ---- input projections: Linear (+folded eval-BN) -> ReLU (Dropout == identity) ----
    var_x = vf_ref[...].reshape(BT * NV, FV).astype(bf16)
    con_x = cf_ref[...].reshape(BT * NC, FC).astype(bf16)
    var_e = jnp.maximum(dot(var_x, vpw_ref[...]) + vpb_ref[...], 0.0)   # [BT*NV, H] f32
    con_e = jnp.maximum(dot(con_x, cpw_ref[...]) + cpb_ref[...], 0.0)   # [BT*NC, H] f32

    # Block-diagonal weighted adjacency for this tile (== torch.index_add_ per graph),
    # shape [BT*NC, BT*NV] bf16.  One matmul per direction instead of BT tiny einsums.
    A_bd = a_ref[0]

    # ---- bipartite message passing (L is small -> static unroll) ----
    for i in range(L):
        var_b = var_e.astype(bf16)          # single bf16 cast per tensor per layer, reused
        con_b = con_e.astype(bf16)

        constr_agg = dot(A_bd, var_b)                                    # [BT*NC, H] f32
        # var_agg = A_bd^T @ con_b : contract A's constraint (sublane) axis directly —
        # no pre-transposed adjacency input, no in-kernel materialized transpose.
        var_agg = lax.dot_general(A_bd, con_b, (((0,), (0,)), ((), ())),
                                  preferred_element_type=f32)            # [BT*NV, H] f32

        # Fused concat-MLP: single K=2H contraction (fills the 256-deep v6e/v7x MXU).
        v_in = jnp.concatenate([var_b, var_agg.astype(bf16)], axis=-1)   # [BT*NV, 2H]
        c_in = jnp.concatenate([con_b, constr_agg.astype(bf16)], axis=-1)

        vh = jnp.maximum(dot(v_in, mvfw_ref[i]) + mvfb_ref[i], 0.0)
        vu = dot(vh.astype(bf16), mvlw_ref[i]) + mvlb_ref[i]
        ch = jnp.maximum(dot(c_in, mcfw_ref[i]) + mcfb_ref[i], 0.0)
        cu = dot(ch.astype(bf16), mclw_ref[i]) + mclb_ref[i]

        var_e = var_e + vu      # residual (f32)
        con_e = con_e + cu

    # ---- lane-dense output heads + additive mask + softmax over classes ----
    # Padded head columns carry logit -1e9 => exp underflows to 0, so the softmax over 128
    # lanes equals the 3-class softmax; wrapper slices columns [:3].
    vlog = (dot(var_e.astype(bf16), vow_ref[...]) + vob_ref[...]
            + vm_ref[...].reshape(BT * NV, HEAD_LANES))
    clog = (dot(con_e.astype(bf16), cow_ref[...]) + cob_ref[...]
            + cm_ref[...].reshape(BT * NC, HEAD_LANES))

    def softmax_last(z):
        m = jnp.max(z, axis=-1, keepdims=True)
        e = jnp.exp(z - m)
        s = jnp.sum(e, axis=-1, keepdims=True)
        r = pl.reciprocal(s, approx=True)       # EUP slot (free); refine with one NR step
        r = r * (2.0 - s * r)
        return e * r

    # TODO(synk): gate the logits outputs (predict-only callers) and/or emit bf16 outputs —
    # at large node counts the 4x f32 128-lane writeback dominates HBM traffic.
    vlog_ref[...] = vlog.reshape(BT, NV, HEAD_LANES)
    clog_ref[...] = clog.reshape(BT, NC, HEAD_LANES)
    vprob_ref[...] = softmax_last(vlog).reshape(BT, NV, HEAD_LANES)
    cprob_ref[...] = softmax_last(clog).reshape(BT, NC, HEAD_LANES)


# --------------------------------------------------------------------------------------
# Parameter init (mirrors torch kaiming_uniform fan_in/relu, biases=0.01, BN eval stats)
# and kernel-layout preparation (BN folding, head padding, bf16 cast).
# --------------------------------------------------------------------------------------
def _kaiming(key, in_dim, out_dim):
    bound = math.sqrt(6.0 / in_dim)   # kaiming_uniform, fan_in, relu gain
    return jax.random.uniform(key, (in_dim, out_dim), jnp.float32, -bound, bound)


def init_raw_params(key, var_dim=8, constr_dim=8, hidden=128, num_layers=3):
    keys = iter(jax.random.split(key, 4 + 4 * num_layers))
    b01 = lambda n: jnp.full((n,), 0.01, jnp.float32)
    raw = {
        "vp_w": _kaiming(next(keys), var_dim, hidden), "vp_b": b01(hidden),
        "cp_w": _kaiming(next(keys), constr_dim, hidden), "cp_b": b01(hidden),
        "layers": [],
    }
    for _ in range(num_layers):
        raw["layers"].append({
            "mv_fw": _kaiming(next(keys), 2 * hidden, hidden), "mv_fb": b01(hidden),
            "mv_lw": _kaiming(next(keys), hidden, hidden), "mv_lb": b01(hidden),
            "mc_fw": _kaiming(next(keys), 2 * hidden, hidden), "mc_fb": b01(hidden),
            "mc_lw": _kaiming(next(keys), hidden, hidden), "mc_lb": b01(hidden),
        })
    raw["vo_w"] = _kaiming(next(keys), hidden, 3)
    raw["vo_b"] = b01(3)
    raw["co_w"] = _kaiming(next(keys), hidden, 3)
    raw["co_b"] = b01(3)
    return raw


def prepare_params(raw, hidden=128):
    """Fold eval-mode BN (mean=0, var=1, gamma=1, beta=0.01) into the preceding Linear,
    keep concat-input weights UNSPLIT ([2H, H], single K=2H dot), pad the 3-class heads
    to 128 lane-dense columns, cast matmul weights to bf16 (biases stay f32)."""
    scale = 1.0 / math.sqrt(1.0 + BN_EPS)     # gamma / sqrt(running_var + eps)
    beta = 0.01
    bf16 = jnp.bfloat16

    def fold(w, b):
        # Linear -> BN(eval) == Linear with W*scale, b*scale + beta   (running_mean = 0)
        return (w * scale).astype(bf16), (b * scale + beta).reshape(1, -1)

    p = {}
    p["vpw"], p["vpb"] = fold(raw["vp_w"], raw["vp_b"])
    p["cpw"], p["cpb"] = fold(raw["cp_w"], raw["cp_b"])

    acc = {k: [] for k in ("mvfw", "mvfb", "mvlw", "mvlb",
                           "mcfw", "mcfb", "mclw", "mclb")}
    for lp in raw["layers"]:
        wv, bv = fold(lp["mv_fw"], lp["mv_fb"])
        acc["mvfw"].append(wv); acc["mvfb"].append(bv)
        acc["mvlw"].append(lp["mv_lw"].astype(bf16)); acc["mvlb"].append(lp["mv_lb"].reshape(1, -1))
        wc, bc = fold(lp["mc_fw"], lp["mc_fb"])
        acc["mcfw"].append(wc); acc["mcfb"].append(bc)
        acc["mclw"].append(lp["mc_lw"].astype(bf16)); acc["mclb"].append(lp["mc_lb"].reshape(1, -1))
    for k, v in acc.items():
        p[k] = jnp.stack(v)

    def pad_head(w, b):
        wp = jnp.zeros((hidden, HEAD_LANES), jnp.float32).at[:, :3].set(w).astype(bf16)
        bp = jnp.full((1, HEAD_LANES), NEG_PAD, jnp.float32).at[0, :3].set(b)
        return wp, bp

    p["vow"], p["vob"] = pad_head(raw["vo_w"], raw["vo_b"])
    p["cow"], p["cob"] = pad_head(raw["co_w"], raw["co_b"])
    return p


PARAM_ORDER = ("vpw", "vpb", "cpw", "cpb",
               "mvfw", "mvfb", "mvlw", "mvlb",
               "mcfw", "mcfb", "mclw", "mclb",
               "vow", "vob", "cow", "cob")


# --------------------------------------------------------------------------------------
# Wrapper
# --------------------------------------------------------------------------------------
def initial_basis_gnn_forward(var_features, constr_features, edge_index, edge_attr,
                              var_mask, constr_mask, params, *, batch_tile=None,
                              mxu_rows=256):
    B, NV, FV = var_features.shape
    NC, FC = constr_features.shape[1], constr_features.shape[2]

    # ---- batch-tile selection: fill the MXU M dimension (bt*NV >= mxu_rows) but keep at
    # least 2 grid steps when B >= 2 so dimension_semantics=("parallel",) can shard the
    # grid across v7x's two TensorCores.  B is padded up to a multiple of bt (no divisor
    # fallback), padded graphs are zero and sliced off at the end.
    bt = max(1, -(-mxu_rows // NV))
    if batch_tile is not None:
        bt = max(1, min(bt, batch_tile))
    bt = max(1, min(bt, B // 2)) if B >= 2 else 1
    n_tiles = -(-B // bt)
    B_pad = n_tiles * bt
    pad = B_pad - B

    # Glue: dense weighted adjacency A[b, dst, src] = sum of attrs (== torch.index_add_).
    # TODO(synk): profile this XLA scatter — for large NE, scalar-prefetch the edge lists
    # (PrefetchScalarGridSpec) and gather/accumulate inside the kernel, or amortize the
    # build when graph topology is reused across calls.
    def build_adj(edges, attrs):
        src, dst = edges[0], edges[1]
        return jnp.zeros((NC, NV), jnp.float32).at[dst, src].add(attrs)

    adj = jax.vmap(build_adj)(edge_index, edge_attr)                    # [B, NC, NV] f32

    def pad_b(x):
        return jnp.pad(x, ((0, pad),) + ((0, 0),) * (x.ndim - 1)) if pad else x

    vf = pad_b(var_features)
    cf = pad_b(constr_features)
    adj = pad_b(adj)

    # Block-diagonal adjacency per batch tile: [n_tiles, bt*NC, bt*NV] so aggregation runs
    # as ONE matmul per direction (M = bt*NC / bt*NV) instead of bt tiny K=NV matmuls.
    # TODO(synk): for large graphs, tile A over NC/NV grid axes (or keep it in HBM with
    # memory_space=pl.ANY and stream row blocks); budget the block against 64 MiB on v7x.
    adj_tiles = adj.reshape(n_tiles, bt, NC, NV)
    eye = jnp.eye(bt, dtype=jnp.float32)
    adj_bd = jnp.einsum("ij,ticv->ticjv", eye, adj_tiles).reshape(
        n_tiles, bt * NC, bt * NV).astype(jnp.bfloat16)

    # Pad the additive 3-class masks out to the lane-dense head width (zeros in pad lanes).
    vmask_p = jnp.zeros((B_pad, NV, HEAD_LANES), jnp.float32).at[:B, :, :3].set(var_mask)
    cmask_p = jnp.zeros((B_pad, NC, HEAD_LANES), jnp.float32).at[:B, :, :3].set(constr_mask)

    per_tile = [vf, cf, adj_bd, vmask_p, cmask_p]
    weights = [params[k] for k in PARAM_ORDER]

    def full_spec(x):
        nd = x.ndim
        return pl.BlockSpec(x.shape, lambda b, _n=nd: (0,) * _n)

    in_specs = [
        pl.BlockSpec((bt, NV, FV), lambda b: (b, 0, 0)),
        pl.BlockSpec((bt, NC, FC), lambda b: (b, 0, 0)),
        pl.BlockSpec((1, bt * NC, bt * NV), lambda b: (b, 0, 0)),
        pl.BlockSpec((bt, NV, HEAD_LANES), lambda b: (b, 0, 0)),
        pl.BlockSpec((bt, NC, HEAD_LANES), lambda b: (b, 0, 0)),
    ] + [full_spec(w) for w in weights]

    out_shape = (
        jax.ShapeDtypeStruct((B_pad, NV, HEAD_LANES), jnp.float32),   # var_probs (padded)
        jax.ShapeDtypeStruct((B_pad, NC, HEAD_LANES), jnp.float32),   # constr_probs
        jax.ShapeDtypeStruct((B_pad, NV, HEAD_LANES), jnp.float32),   # var_logits
        jax.ShapeDtypeStruct((B_pad, NC, HEAD_LANES), jnp.float32),   # constr_logits
    )
    out_specs = (
        pl.BlockSpec((bt, NV, HEAD_LANES), lambda b: (b, 0, 0)),
        pl.BlockSpec((bt, NC, HEAD_LANES), lambda b: (b, 0, 0)),
        pl.BlockSpec((bt, NV, HEAD_LANES), lambda b: (b, 0, 0)),
        pl.BlockSpec((bt, NC, HEAD_LANES), lambda b: (b, 0, 0)),
    )

    # Generation-aware VMEM budget: cover weights + double-buffered per-tile I/O with
    # headroom, capped well under v7x's 64 MiB per-TC physical VMEM.
    def nbytes(x):
        return int(x.size) * x.dtype.itemsize
    weight_bytes = sum(nbytes(w) for w in weights)
    tile_in = ((bt * NV * FV + bt * NC * FC) * 4 + bt * NC * bt * NV * 2
               + (bt * NV + bt * NC) * HEAD_LANES * 4)
    tile_out = (bt * NV + bt * NC) * HEAD_LANES * 4 * 2
    vmem_limit = int(min(48 << 20, max(16 << 20, 4 * (weight_bytes + 2 * (tile_in + tile_out)))))

    fn = pl.pallas_call(
        gnn_kernel,
        out_shape=out_shape,
        grid_spec=pltpu.PrefetchScalarGridSpec(
            num_scalar_prefetch=0,
            grid=(n_tiles,),
            in_specs=in_specs,
            out_specs=out_specs,
        ),
        compiler_params=pltpu.CompilerParams(
            dimension_semantics=("parallel",),          # independent batch tiles (2 TCs on v7x)
            vmem_limit_bytes=vmem_limit,
        ),
    )
    vprob, cprob, vlog, clog = fn(*(per_tile + weights))

    # slice off batch padding and the lane-dense padded head columns
    return {
        "var_probs": vprob[:B, :, :3],
        "constr_probs": cprob[:B, :, :3],
        "var_logits": vlog[:B, :, :3],
        "constr_logits": clog[:B, :, :3],
    }


# --------------------------------------------------------------------------------------
if __name__ == "__main__":
    key = jax.random.PRNGKey(0)
    B, NV, NC = 5, 16, 8        # B=5 exercises batch padding (bt=2 -> B_pad=6, grid=3)
    FV = FC = 8
    H, L, NE = 128, 3, 32

    k_par, k_vf, k_cf, k_src, k_dst, k_attr, k_vm, k_cm = jax.random.split(key, 8)
    raw = init_raw_params(k_par, FV, FC, H, L)
    params = prepare_params(raw, H)

    var_features = jax.random.normal(k_vf, (B, NV, FV), jnp.float32)
    constr_features = jax.random.normal(k_cf, (B, NC, FC), jnp.float32)
    src = jax.random.randint(k_src, (B, NE), 0, NV)
    dst = jax.random.randint(k_dst, (B, NE), 0, NC)
    edge_index = jnp.stack([src, dst], axis=1)                      # [B, 2, NE]
    edge_attr = jax.random.uniform(k_attr, (B, NE), jnp.float32)    # [B, NE]
    var_mask = 0.1 * jax.random.normal(k_vm, (B, NV, 3), jnp.float32)
    constr_mask = 0.1 * jax.random.normal(k_cm, (B, NC, 3), jnp.float32)

    out = initial_basis_gnn_forward(var_features, constr_features, edge_index,
                                    edge_attr, var_mask, constr_mask, params)
    jax.block_until_ready(out)

    vp, cp = out["var_probs"], out["constr_probs"]
    vl, cl = out["var_logits"], out["constr_logits"]
    assert vp.shape == (B, NV, 3) and cp.shape == (B, NC, 3)
    assert vl.shape == (B, NV, 3) and cl.shape == (B, NC, 3)
    assert bool(jnp.all(jnp.isfinite(vp))) and bool(jnp.all(jnp.isfinite(cp)))
    assert bool(jnp.all(jnp.isfinite(vl))) and bool(jnp.all(jnp.isfinite(cl)))
    # approx reciprocal + one Newton step: sum-to-one holds to ~1e-6; assert at 1e-4.
    assert bool(jnp.allclose(jnp.sum(vp, axis=-1), 1.0, atol=1e-4))
    assert bool(jnp.allclose(jnp.sum(cp, axis=-1), 1.0, atol=1e-4))
    print("KERNEL_OK")
</pallas_src>

<mosaic_0001>
module attributes {stable_mosaic.version = 11 : i64} {
  func.func @gnn_kernel(%arg0: i32, %arg1: memref<2x16x8xf32, #tpu.memory_space<vmem>>, %arg2: memref<2x8x8xf32, #tpu.memory_space<vmem>>, %arg3: memref<1x16x32xbf16, #tpu.memory_space<vmem>>, %arg4: memref<2x16x128xf32, #tpu.memory_space<vmem>>, %arg5: memref<2x8x128xf32, #tpu.memory_space<vmem>>, %arg6: memref<8x128xbf16, #tpu.memory_space<vmem>>, %arg7: memref<1x128xf32, #tpu.memory_space<vmem>>, %arg8: memref<8x128xbf16, #tpu.memory_space<vmem>>, %arg9: memref<1x128xf32, #tpu.memory_space<vmem>>, %arg10: memref<3x256x128xbf16, #tpu.memory_space<vmem>>, %arg11: memref<3x1x128xf32, #tpu.memory_space<vmem>>, %arg12: memref<3x128x128xbf16, #tpu.memory_space<vmem>>, %arg13: memref<3x1x128xf32, #tpu.memory_space<vmem>>, %arg14: memref<3x256x128xbf16, #tpu.memory_space<vmem>>, %arg15: memref<3x1x128xf32, #tpu.memory_space<vmem>>, %arg16: memref<3x128x128xbf16, #tpu.memory_space<vmem>>, %arg17: memref<3x1x128xf32, #tpu.memory_space<vmem>>, %arg18: memref<128x128xbf16, #tpu.memory_space<vmem>>, %arg19: memref<1x128xf32, #tpu.memory_space<vmem>>, %arg20: memref<128x128xbf16, #tpu.memory_space<vmem>>, %arg21: memref<1x128xf32, #tpu.memory_space<vmem>>, %arg22: memref<2x16x128xf32, #tpu.memory_space<vmem>>, %arg23: memref<2x8x128xf32, #tpu.memory_space<vmem>>, %arg24: memref<2x16x128xf32, #tpu.memory_space<vmem>>, %arg25: memref<2x8x128xf32, #tpu.memory_space<vmem>>) attributes {dimension_semantics = [#tpu.dimension_semantics<parallel>], iteration_bounds = array<i64: 3>, scalar_prefetch = 0 : i64, scratch_operands = 0 : i64, tpu.core_type = #tpu.core_type<tc>, window_params = [{transform_indices = @transform_0, window_bounds = array<i64: 2, 16, 8>}, {transform_indices = @transform_1, window_bounds = array<i64: 2, 8, 8>}, {transform_indices = @transform_2, window_bounds = array<i64: 1, 16, 32>}, {transform_indices = @transform_3, window_bounds = array<i64: 2, 16, 128>}, {transform_indices = @transform_4, window_bounds = array<i64: 2, 8, 128>}, {pipeline_mode = #tpu.pipeline_mode<synchronous>, transform_indices = @transform_5, window_bounds = array<i64: 8, 128>}, {pipeline_mode = #tpu.pipeline_mode<synchronous>, transform_indices = @transform_6, window_bounds = array<i64: 1, 128>}, {pipeline_mode = #tpu.pipeline_mode<synchronous>, transform_indices = @transform_7, window_bounds = array<i64: 8, 128>}, {pipeline_mode = #tpu.pipeline_mode<synchronous>, transform_indices = @transform_8, window_bounds = array<i64: 1, 128>}, {pipeline_mode = #tpu.pipeline_mode<synchronous>, transform_indices = @transform_9, window_bounds = array<i64: 3, 256, 128>}, {pipeline_mode = #tpu.pipeline_mode<synchronous>, transform_indices = @transform_10, window_bounds = array<i64: 3, 1, 128>}, {pipeline_mode = #tpu.pipeline_mode<synchronous>, transform_indices = @transform_11, window_bounds = array<i64: 3, 128, 128>}, {pipeline_mode = #tpu.pipeline_mode<synchronous>, transform_indices = @transform_12, window_bounds = array<i64: 3, 1, 128>}, {pipeline_mode = #tpu.pipeline_mode<synchronous>, transform_indices = @transform_13, window_bounds = array<i64: 3, 256, 128>}, {pipeline_mode = #tpu.pipeline_mode<synchronous>, transform_indices = @transform_14, window_bounds = array<i64: 3, 1, 128>}, {pipeline_mode = #tpu.pipeline_mode<synchronous>, transform_indices = @transform_15, window_bounds = array<i64: 3, 128, 128>}, {pipeline_mode = #tpu.pipeline_mode<synchronous>, transform_indices = @transform_16, window_bounds = array<i64: 3, 1, 128>}, {pipeline_mode = #tpu.pipeline_mode<synchronous>, transform_indices = @transform_17, window_bounds = array<i64: 128, 128>}, {pipeline_mode = #tpu.pipeline_mode<synchronous>, transform_indices = @transform_18, window_bounds = array<i64: 1, 128>}, {pipeline_mode = #tpu.pipeline_mode<synchronous>, transform_indices = @transform_19, window_bounds = array<i64: 128, 128>}, {pipeline_mode = #tpu.pipeline_mode<synchronous>, transform_indices = @transform_20, window_bounds = array<i64: 1, 128>}, {transform_indices = @transform_21, window_bounds = array<i64: 2, 16, 128>}, {transform_indices = @transform_22, window_bounds = array<i64: 2, 8, 128>}, {transform_indices = @transform_23, window_bounds = array<i64: 2, 16, 128>}, {transform_indices = @transform_24, window_bounds = array<i64: 2, 8, 128>}]} {
    %c0 = arith.constant 0 : index
    %c0_0 = arith.constant 0 : index
    %c0_1 = arith.constant 0 : index
    %0 = vector.load %arg1[%c0, %c0_0, %c0_1] : memref<2x16x8xf32, #tpu.memory_space<vmem>>, vector<2x16x8xf32>
    %1 = vector.shape_cast %0 : vector<2x16x8xf32> to vector<32x8xf32>
    %2 = arith.truncf %1 : vector<32x8xf32> to vector<32x8xbf16>
    %c0_2 = arith.constant 0 : index
    %c0_3 = arith.constant 0 : index
    %c0_4 = arith.constant 0 : index
    %3 = vector.load %arg2[%c0_2, %c0_3, %c0_4] : memref<2x8x8xf32, #tpu.memory_space<vmem>>, vector<2x8x8xf32>
    %4 = vector.shape_cast %3 : vector<2x8x8xf32> to vector<16x8xf32>
    %5 = arith.truncf %4 : vector<16x8xf32> to vector<16x8xbf16>
    %c0_5 = arith.constant 0 : index
    %c0_6 = arith.constant 0 : index
    %6 = vector.load %arg6[%c0_5, %c0_6] : memref<8x128xbf16, #tpu.memory_space<vmem>>, vector<8x128xbf16>
    %cst = arith.constant dense<0.000000e+00> : vector<32x128xf32>
    %7 = tpu.matmul %2, %6, %cst {dimension_numbers = #tpu.dot_dimension_numbers<[1], [0], [0], [1], [0, 0, 1, 1], [], []>} : vector<32x8xbf16>, vector<8x128xbf16>, vector<32x128xf32> -> vector<32x128xf32>
    %c0_7 = arith.constant 0 : index
    %c0_8 = arith.constant 0 : index
    %8 = vector.load %arg7[%c0_7, %c0_8] : memref<1x128xf32, #tpu.memory_space<vmem>>, vector<1x128xf32>
    %9 = vector.broadcast %8 : vector<1x128xf32> to vector<32x128xf32>
    %10 = arith.addf %7, %9 : vector<32x128xf32>
    %cst_9 = arith.constant 0.000000e+00 : f32
    %11 = vector.broadcast %cst_9 : f32 to vector<32x128xf32>
    %12 = arith.maximumf %10, %11 : vector<32x128xf32>
    %c0_10 = arith.constant 0 : index
    %c0_11 = arith.constant 0 : index
    %13 = vector.load %arg8[%c0_10, %c0_11] : memref<8x128xbf16, #tpu.memory_space<vmem>>, vector<8x128xbf16>
    %cst_12 = arith.constant dense<0.000000e+00> : vector<16x128xf32>
    %14 = tpu.matmul %5, %13, %cst_12 {dimension_numbers = #tpu.dot_dimension_numbers<[1], [0], [0], [1], [0, 0, 1, 1], [], []>} : vector<16x8xbf16>, vector<8x128xbf16>, vector<16x128xf32> -> vector<16x128xf32>
    %c0_13 = arith.constant 0 : index
    %c0_14 = arith.constant 0 : index
    %15 = vector.load %arg9[%c0_13, %c0_14] : memref<1x128xf32, #tpu.memory_space<vmem>>, vector<1x128xf32>
    %16 = vector.broadcast %15 : vector<1x128xf32> to vector<16x128xf32>
    %17 = arith.addf %14, %16 : vector<16x128xf32>
    %cst_15 = arith.constant 0.000000e+00 : f32
    %18 = vector.broadcast %cst_15 : f32 to vector<16x128xf32>
    %19 = arith.maximumf %17, %18 : vector<16x128xf32>
    %c0_16 = arith.constant 0 : index
    %c0_17 = arith.constant 0 : index
    %c0_18 = arith.constant 0 : index
    %20 = vector.load %arg3[%c0_16, %c0_17, %c0_18] : memref<1x16x32xbf16, #tpu.memory_space<vmem>>, vector<1x16x32xbf16>
    %21 = vector.shape_cast %20 : vector<1x16x32xbf16> to vector<16x32xbf16>
    %22 = arith.truncf %12 : vector<32x128xf32> to vector<32x128xbf16>
    %23 = arith.truncf %19 : vector<16x128xf32> to vector<16x128xbf16>
    %cst_19 = arith.constant dense<0.000000e+00> : vector<16x128xf32>
    %24 = tpu.matmul %21, %22, %cst_19 {dimension_numbers = #tpu.dot_dimension_numbers<[1], [0], [0], [1], [0, 0, 1, 1], [], []>} : vector<16x32xbf16>, vector<32x128xbf16>, vector<16x128xf32> -> vector<16x128xf32>
    %cst_20 = arith.constant dense<0.000000e+00> : vector<32x128xf32>
    %25 = tpu.matmul %21, %23, %cst_20 {dimension_numbers = #tpu.dot_dimension_numbers<[0], [0], [1], [1], [0, 1, 1, 1], [], []>} : vector<16x32xbf16>, vector<16x128xbf16>, vector<32x128xf32> -> vector<32x128xf32>
    %26 = arith.truncf %25 : vector<32x128xf32> to vector<32x128xbf16>
    %27 = tpu.concatenate %22, %26 in 1 : vector<32x128xbf16>, vector<32x128xbf16> -> vector<32x256xbf16>
    %28 = arith.truncf %24 : vector<16x128xf32> to vector<16x128xbf16>
    %29 = tpu.concatenate %23, %28 in 1 : vector<16x128xbf16>, vector<16x128xbf16> -> vector<16x256xbf16>
    %c0_21 = arith.constant 0 : index
    %c0_22 = arith.constant 0 : index
    %c0_23 = arith.constant 0 : index
    %30 = vector.load %arg10[%c0_21, %c0_22, %c0_23] : memref<3x256x128xbf16, #tpu.memory_space<vmem>>, vector<1x256x128xbf16>
    %31 = vector.shape_cast %30 : vector<1x256x128xbf16> to vector<256x128xbf16>
    %cst_24 = arith.constant dense<0.000000e+00> : vector<32x128xf32>
    %32 = tpu.matmul %27, %31, %cst_24 {dimension_numbers = #tpu.dot_dimension_numbers<[1], [0], [0], [1], [0, 0, 1, 1], [], []>} : vector<32x256xbf16>, vector<256x128xbf16>, vector<32x128xf32> -> vector<32x128xf32>
    %c0_25 = arith.constant 0 : index
    %c0_26 = arith.constant 0 : index
    %c0_27 = arith.constant 0 : index
    %33 = vector.load %arg11[%c0_25, %c0_26, %c0_27] : memref<3x1x128xf32, #tpu.memory_space<vmem>>, vector<1x1x128xf32>
    %34 = vector.shape_cast %33 : vector<1x1x128xf32> to vector<1x128xf32>
    %35 = vector.broadcast %34 : vector<1x128xf32> to vector<32x128xf32>
    %36 = arith.addf %32, %35 : vector<32x128xf32>
    %cst_28 = arith.constant 0.000000e+00 : f32
    %37 = vector.broadcast %cst_28 : f32 to vector<32x128xf32>
    %38 = arith.maximumf %36, %37 : vector<32x128xf32>
    %39 = arith.truncf %38 : vector<32x128xf32> to vector<32x128xbf16>
    %c0_29 = arith.constant 0 : index
    %c0_30 = arith.constant 0 : index
    %c0_31 = arith.constant 0 : index
    %40 = vector.load %arg12[%c0_29, %c0_30, %c0_31] : memref<3x128x128xbf16, #tpu.memory_space<vmem>>, vector<1x128x128xbf16>
    %41 = vector.shape_cast %40 : vector<1x128x128xbf16> to vector<128x128xbf16>
    %cst_32 = arith.constant dense<0.000000e+00> : vector<32x128xf32>
    %42 = tpu.matmul %39, %41, %cst_32 {dimension_numbers = #tpu.dot_dimension_numbers<[1], [0], [0], [1], [0, 0, 1, 1], [], []>} : vector<32x128xbf16>, vector<128x128xbf16>, vector<32x128xf32> -> vector<32x128xf32>
    %c0_33 = arith.constant 0 : index
    %c0_34 = arith.constant 0 : index
    %c0_35 = arith.constant 0 : index
    %43 = vector.load %arg13[%c0_33, %c0_34, %c0_35] : memref<3x1x128xf32, #tpu.memory_space<vmem>>, vector<1x1x128xf32>
    %44 = vector.shape_cast %43 : vector<1x1x128xf32> to vector<1x128xf32>
    %45 = vector.broadcast %44 : vector<1x128xf32> to vector<32x128xf32>
    %46 = arith.addf %42, %45 : vector<32x128xf32>
    %c0_36 = arith.constant 0 : index
    %c0_37 = arith.constant 0 : index
    %c0_38 = arith.constant 0 : index
    %47 = vector.load %arg14[%c0_36, %c0_37, %c0_38] : memref<3x256x128xbf16, #tpu.memory_space<vmem>>, vector<1x256x128xbf16>
    %48 = vector.shape_cast %47 : vector<1x256x128xbf16> to vector<256x128xbf16>
    %cst_39 = arith.constant dense<0.000000e+00> : vector<16x128xf32>
    %49 = tpu.matmul %29, %48, %cst_39 {dimension_numbers = #tpu.dot_dimension_numbers<[1], [0], [0], [1], [0, 0, 1, 1], [], []>} : vector<16x256xbf16>, vector<256x128xbf16>, vector<16x128xf32> -> vector<16x128xf32>
    %c0_40 = arith.constant 0 : index
    %c0_41 = arith.constant 0 : index
    %c0_42 = arith.constant 0 : index
    %50 = vector.load %arg15[%c0_40, %c0_41, %c0_42] : memref<3x1x128xf32, #tpu.memory_space<vmem>>, vector<1x1x128xf32>
    %51 = vector.shape_cast %50 : vector<1x1x128xf32> to vector<1x128xf32>
    %52 = vector.broadcast %51 : vector<1x128xf32> to vector<16x128xf32>
    %53 = arith.addf %49, %52 : vector<16x128xf32>
    %cst_43 = arith.constant 0.000000e+00 : f32
    %54 = vector.broadcast %cst_43 : f32 to vector<16x128xf32>
    %55 = arith.maximumf %53, %54 : vector<16x128xf32>
    %56 = arith.truncf %55 : vector<16x128xf32> to vector<16x128xbf16>
    %c0_44 = arith.constant 0 : index
    %c0_45 = arith.constant 0 : index
    %c0_46 = arith.constant 0 : index
    %57 = vector.load %arg16[%c0_44, %c0_45, %c0_46] : memref<3x128x128xbf16, #tpu.memory_space<vmem>>, vector<1x128x128xbf16>
    %58 = vector.shape_cast %57 : vector<1x128x128xbf16> to vector<128x128xbf16>
    %cst_47 = arith.constant dense<0.000000e+00> : vector<16x128xf32>
    %59 = tpu.matmul %56, %58, %cst_47 {dimension_numbers = #tpu.dot_dimension_numbers<[1], [0], [0], [1], [0, 0, 1, 1], [], []>} : vector<16x128xbf16>, vector<128x128xbf16>, vector<16x128xf32> -> vector<16x128xf32>
    %c0_48 = arith.constant 0 : index
    %c0_49 = arith.constant 0 : index
    %c0_50 = arith.constant 0 : index
    %60 = vector.load %arg17[%c0_48, %c0_49, %c0_50] : memref<3x1x128xf32, #tpu.memory_space<vmem>>, vector<1x1x128xf32>
    %61 = vector.shape_cast %60 : vector<1x1x128xf32> to vector<1x128xf32>
    %62 = vector.broadcast %61 : vector<1x128xf32> to vector<16x128xf32>
    %63 = arith.addf %59, %62 : vector<16x128xf32>
    %64 = arith.addf %12, %46 : vector<32x128xf32>
    %65 = arith.addf %19, %63 : vector<16x128xf32>
    %66 = arith.truncf %64 : vector<32x128xf32> to vector<32x128xbf16>
    %67 = arith.truncf %65 : vector<16x128xf32> to vector<16x128xbf16>
    %cst_51 = arith.constant dense<0.000000e+00> : vector<16x128xf32>
    %68 = tpu.matmul %21, %66, %cst_51 {dimension_numbers = #tpu.dot_dimension_numbers<[1], [0], [0], [1], [0, 0, 1, 1], [], []>} : vector<16x32xbf16>, vector<32x128xbf16>, vector<16x128xf32> -> vector<16x128xf32>
    %cst_52 = arith.constant dense<0.000000e+00> : vector<32x128xf32>
    %69 = tpu.matmul %21, %67, %cst_52 {dimension_numbers = #tpu.dot_dimension_numbers<[0], [0], [1], [1], [0, 1, 1, 1], [], []>} : vector<16x32xbf16>, vector<16x128xbf16>, vector<32x128xf32> -> vector<32x128xf32>
    %70 = arith.truncf %69 : vector<32x128xf32> to vector<32x128xbf16>
    %71 = tpu.concatenate %66, %70 in 1 : vector<32x128xbf16>, vector<32x128xbf16> -> vector<32x256xbf16>
    %72 = arith.truncf %68 : vector<16x128xf32> to vector<16x128xbf16>
    %73 = tpu.concatenate %67, %72 in 1 : vector<16x128xbf16>, vector<16x128xbf16> -> vector<16x256xbf16>
    %c1 = arith.constant 1 : index
    %c0_53 = arith.constant 0 : index
    %c0_54 = arith.constant 0 : index
    %74 = vector.load %arg10[%c1, %c0_53, %c0_54] : memref<3x256x128xbf16, #tpu.memory_space<vmem>>, vector<1x256x128xbf16>
    %75 = vector.shape_cast %74 : vector<1x256x128xbf16> to vector<256x128xbf16>
    %cst_55 = arith.constant dense<0.000000e+00> : vector<32x128xf32>
    %76 = tpu.matmul %71, %75, %cst_55 {dimension_numbers = #tpu.dot_dimension_numbers<[1], [0], [0], [1], [0, 0, 1, 1], [], []>} : vector<32x256xbf16>, vector<256x128xbf16>, vector<32x128xf32> -> vector<32x128xf32>
    %c1_56 = arith.constant 1 : index
    %c0_57 = arith.constant 0 : index
    %c0_58 = arith.constant 0 : index
    %77 = vector.load %arg11[%c1_56, %c0_57, %c0_58] : memref<3x1x128xf32, #tpu.memory_space<vmem>>, vector<1x1x128xf32>
    %78 = vector.shape_cast %77 : vector<1x1x128xf32> to vector<1x128xf32>
    %79 = vector.broadcast %78 : vector<1x128xf32> to vector<32x128xf32>
    %80 = arith.addf %76, %79 : vector<32x128xf32>
    %cst_59 = arith.constant 0.000000e+00 : f32
    %81 = vector.broadcast %cst_59 : f32 to vector<32x128xf32>
    %82 = arith.maximumf %80, %81 : vector<32x128xf32>
    %83 = arith.truncf %82 : vector<32x128xf32> to vector<32x128xbf16>
    %c1_60 = arith.constant 1 : index
    %c0_61 = arith.constant 0 : index
    %c0_62 = arith.constant 0 : index
    %84 = vector.load %arg12[%c1_60, %c0_61, %c0_62] : memref<3x128x128xbf16, #tpu.memory_space<vmem>>, vector<1x128x128xbf16>
    %85 = vector.shape_cast %84 : vector<1x128x128xbf16> to vector<128x128xbf16>
    %cst_63 = arith.constant dense<0.000000e+00> : vector<32x128xf32>
    %86 = tpu.matmul %83, %85, %cst_63 {dimension_numbers = #tpu.dot_dimension_numbers<[1], [0], [0], [1], [0, 0, 1, 1], [], []>} : vector<32x128xbf16>, vector<128x128xbf16>, vector<32x128xf32> -> vector<32x128xf32>
    %c1_64 = arith.constant 1 : index
    %c0_65 = arith.constant 0 : index
    %c0_66 = arith.constant 0 : index
    %87 = vector.load %arg13[%c1_64, %c0_65, %c0_66] : memref<3x1x128xf32, #tpu.memory_space<vmem>>, vector<1x1x128xf32>
    %88 = vector.shape_cast %87 : vector<1x1x128xf32> to vector<1x128xf32>
    %89 = vector.broadcast %88 : vector<1x128xf32> to vector<32x128xf32>
    %90 = arith.addf %86, %89 : vector<32x128xf32>
    %c1_67 = arith.constant 1 : index
    %c0_68 = arith.constant 0 : index
    %c0_69 = arith.constant 0 : index
    %91 = vector.load %arg14[%c1_67, %c0_68, %c0_69] : memref<3x256x128xbf16, #tpu.memory_space<vmem>>, vector<1x256x128xbf16>
    %92 = vector.shape_cast %91 : vector<1x256x128xbf16> to vector<256x128xbf16>
    %cst_70 = arith.constant dense<0.000000e+00> : vector<16x128xf32>
    %93 = tpu.matmul %73, %92, %cst_70 {dimension_numbers = #tpu.dot_dimension_numbers<[1], [0], [0], [1], [0, 0, 1, 1], [], []>} : vector<16x256xbf16>, vector<256x128xbf16>, vector<16x128xf32> -> vector<16x128xf32>
    %c1_71 = arith.constant 1 : index
    %c0_72 = arith.constant 0 : index
    %c0_73 = arith.constant 0 : index
    %94 = vector.load %arg15[%c1_71, %c0_72, %c0_73] : memref<3x1x128xf32, #tpu.memory_space<vmem>>, vector<1x1x128xf32>
    %95 = vector.shape_cast %94 : vector<1x1x128xf32> to vector<1x128xf32>
    %96 = vector.broadcast %95 : vector<1x128xf32> to vector<16x128xf32>
    %97 = arith.addf %93, %96 : vector<16x128xf32>
    %cst_74 = arith.constant 0.000000e+00 : f32
    %98 = vector.broadcast %cst_74 : f32 to vector<16x128xf32>
    %99 = arith.maximumf %97, %98 : vector<16x128xf32>
    %100 = arith.truncf %99 : vector<16x128xf32> to vector<16x128xbf16>
    %c1_75 = arith.constant 1 : index
    %c0_76 = arith.constant 0 : index
    %c0_77 = arith.constant 0 : index
    %101 = vector.load %arg16[%c1_75, %c0_76, %c0_77] : memref<3x128x128xbf16, #tpu.memory_space<vmem>>, vector<1x128x128xbf16>
    %102 = vector.shape_cast %101 : vector<1x128x128xbf16> to vector<128x128xbf16>
    %cst_78 = arith.constant dense<0.000000e+00> : vector<16x128xf32>
    %103 = tpu.matmul %100, %102, %cst_78 {dimension_numbers = #tpu.dot_dimension_numbers<[1], [0], [0], [1], [0, 0, 1, 1], [], []>} : vector<16x128xbf16>, vector<128x128xbf16>, vector<16x128xf32> -> vector<16x128xf32>
    %c1_79 = arith.constant 1 : index
    %c0_80 = arith.constant 0 : index
    %c0_81 = arith.constant 0 : index
    %104 = vector.load %arg17[%c1_79, %c0_80, %c0_81] : memref<3x1x128xf32, #tpu.memory_space<vmem>>, vector<1x1x128xf32>
    %105 = vector.shape_cast %104 : vector<1x1x128xf32> to vector<1x128xf32>
    %106 = vector.broadcast %105 : vector<1x128xf32> to vector<16x128xf32>
    %107 = arith.addf %103, %106 : vector<16x128xf32>
    %108 = arith.addf %64, %90 : vector<32x128xf32>
    %109 = arith.addf %65, %107 : vector<16x128xf32>
    %110 = arith.truncf %108 : vector<32x128xf32> to vector<32x128xbf16>
    %111 = arith.truncf %109 : vector<16x128xf32> to vector<16x128xbf16>
    %cst_82 = arith.constant dense<0.000000e+00> : vector<16x128xf32>
    %112 = tpu.matmul %21, %110, %cst_82 {dimension_numbers = #tpu.dot_dimension_numbers<[1], [0], [0], [1], [0, 0, 1, 1], [], []>} : vector<16x32xbf16>, vector<32x128xbf16>, vector<16x128xf32> -> vector<16x128xf32>
    %cst_83 = arith.constant dense<0.000000e+00> : vector<32x128xf32>
    %113 = tpu.matmul %21, %111, %cst_83 {dimension_numbers = #tpu.dot_dimension_numbers<[0], [0], [1], [1], [0, 1, 1, 1], [], []>} : vector<16x32xbf16>, vector<16x128xbf16>, vector<32x128xf32> -> vector<32x128xf32>
    %114 = arith.truncf %113 : vector<32x128xf32> to vector<32x128xbf16>
    %115 = tpu.concatenate %110, %114 in 1 : vector<32x128xbf16>, vector<32x128xbf16> -> vector<32x256xbf16>
    %116 = arith.truncf %112 : vector<16x128xf32> to vector<16x128xbf16>
    %117 = tpu.concatenate %111, %116 in 1 : vector<16x128xbf16>, vector<16x128xbf16> -> vector<16x256xbf16>
    %c2 = arith.constant 2 : index
    %c0_84 = arith.constant 0 : index
    %c0_85 = arith.constant 0 : index
    %118 = vector.load %arg10[%c2, %c0_84, %c0_85] : memref<3x256x128xbf16, #tpu.memory_space<vmem>>, vector<1x256x128xbf16>
    %119 = vector.shape_cast %118 : vector<1x256x128xbf16> to vector<256x128xbf16>
    %cst_86 = arith.constant dense<0.000000e+00> : vector<32x128xf32>
    %120 = tpu.matmul %115, %119, %cst_86 {dimension_numbers = #tpu.dot_dimension_numbers<[1], [0], [0], [1], [0, 0, 1, 1], [], []>} : vector<32x256xbf16>, vector<256x128xbf16>, vector<32x128xf32> -> vector<32x128xf32>
    %c2_87 = arith.constant 2 : index
    %c0_88 = arith.constant 0 : index
    %c0_89 = arith.constant 0 : index
    %121 = vector.load %arg11[%c2_87, %c0_88, %c0_89] : memref<3x1x128xf32, #tpu.memory_space<vmem>>, vector<1x1x128xf32>
    %122 = vector.shape_cast %121 : vector<1x1x128xf32> to vector<1x128xf32>
    %123 = vector.broadcast %122 : vector<1x128xf32> to vector<32x128xf32>
    %124 = arith.addf %120, %123 : vector<32x128xf32>
    %cst_90 = arith.constant 0.000000e+00 : f32
    %125 = vector.broadcast %cst_90 : f32 to vector<32x128xf32>
    %126 = arith.maximumf %124, %125 : vector<32x128xf32>
    %127 = arith.truncf %126 : vector<32x128xf32> to vector<32x128xbf16>
    %c2_91 = arith.constant 2 : index
    %c0_92 = arith.constant 0 : index
    %c0_93 = arith.constant 0 : index
    %128 = vector.load %arg12[%c2_91, %c0_92, %c0_93] : memref<3x128x128xbf16, #tpu.memory_space<vmem>>, vector<1x128x128xbf16>
    %129 = vector.shape_cast %128 : vector<1x128x128xbf16> to vector<128x128xbf16>
    %cst_94 = arith.constant dense<0.000000e+00> : vector<32x128xf32>
    %130 = tpu.matmul %127, %129, %cst_94 {dimension_numbers = #tpu.dot_dimension_numbers<[1], [0], [0], [1], [0, 0, 1, 1], [], []>} : vector<32x128xbf16>, vector<128x128xbf16>, vector<32x128xf32> -> vector<32x128xf32>
    %c2_95 = arith.constant 2 : index
    %c0_96 = arith.constant 0 : index
    %c0_97 = arith.constant 0 : index
    %131 = vector.load %arg13[%c2_95, %c0_96, %c0_97] : memref<3x1x128xf32, #tpu.memory_space<vmem>>, vector<1x1x128xf32>
    %132 = vector.shape_cast %131 : vector<1x1x128xf32> to vector<1x128xf32>
    %133 = vector.broadcast %132 : vector<1x128xf32> to vector<32x128xf32>
    %134 = arith.addf %130, %133 : vector<32x128xf32>
    %c2_98 = arith.constant 2 : index
    %c0_99 = arith.constant 0 : index
    %c0_100 = arith.constant 0 : index
    %135 = vector.load %arg14[%c2_98, %c0_99, %c0_100] : memref<3x256x128xbf16, #tpu.memory_space<vmem>>, vector<1x256x128xbf16>
    %136 = vector.shape_cast %135 : vector<1x256x128xbf16> to vector<256x128xbf16>
    %cst_101 = arith.constant dense<0.000000e+00> : vector<16x128xf32>
    %137 = tpu.matmul %117, %136, %cst_101 {dimension_numbers = #tpu.dot_dimension_numbers<[1], [0], [0], [1], [0, 0, 1, 1], [], []>} : vector<16x256xbf16>, vector<256x128xbf16>, vector<16x128xf32> -> vector<16x128xf32>
    %c2_102 = arith.constant 2 : index
    %c0_103 = arith.constant 0 : index
    %c0_104 = arith.constant 0 : index
    %138 = vector.load %arg15[%c2_102, %c0_103, %c0_104] : memref<3x1x128xf32, #tpu.memory_space<vmem>>, vector<1x1x128xf32>
    %139 = vector.shape_cast %138 : vector<1x1x128xf32> to vector<1x128xf32>
    %140 = vector.broadcast %139 : vector<1x128xf32> to vector<16x128xf32>
    %141 = arith.addf %137, %140 : vector<16x128xf32>
    %cst_105 = arith.constant 0.000000e+00 : f32
    %142 = vector.broadcast %cst_105 : f32 to vector<16x128xf32>
    %143 = arith.maximumf %141, %142 : vector<16x128xf32>
    %144 = arith.truncf %143 : vector<16x128xf32> to vector<16x128xbf16>
    %c2_106 = arith.constant 2 : index
    %c0_107 = arith.constant 0 : index
    %c0_108 = arith.constant 0 : index
    %145 = vector.load %arg16[%c2_106, %c0_107, %c0_108] : memref<3x128x128xbf16, #tpu.memory_space<vmem>>, vector<1x128x128xbf16>
    %146 = vector.shape_cast %145 : vector<1x128x128xbf16> to vector<128x128xbf16>
    %cst_109 = arith.constant dense<0.000000e+00> : vector<16x128xf32>
    %147 = tpu.matmul %144, %146, %cst_109 {dimension_numbers = #tpu.dot_dimension_numbers<[1], [0], [0], [1], [0, 0, 1, 1], [], []>} : vector<16x128xbf16>, vector<128x128xbf16>, vector<16x128xf32> -> vector<16x128xf32>
    %c2_110 = arith.constant 2 : index
    %c0_111 = arith.constant 0 : index
    %c0_112 = arith.constant 0 : index
    %148 = vector.load %arg17[%c2_110, %c0_111, %c0_112] : memref<3x1x128xf32, #tpu.memory_space<vmem>>, vector<1x1x128xf32>
    %149 = vector.shape_cast %148 : vector<1x1x128xf32> to vector<1x128xf32>
    %150 = vector.broadcast %149 : vector<1x128xf32> to vector<16x128xf32>
    %151 = arith.addf %147, %150 : vector<16x128xf32>
    %152 = arith.addf %108, %134 : vector<32x128xf32>
    %153 = arith.addf %109, %151 : vector<16x128xf32>
    %154 = arith.truncf %152 : vector<32x128xf32> to vector<32x128xbf16>
    %c0_113 = arith.constant 0 : index
    %c0_114 = arith.constant 0 : index
    %155 = vector.load %arg18[%c0_113, %c0_114] : memref<128x128xbf16, #tpu.memory_space<vmem>>, vector<128x128xbf16>
    %cst_115 = arith.constant dense<0.000000e+00> : vector<32x128xf32>
    %156 = tpu.matmul %154, %155, %cst_115 {dimension_numbers = #tpu.dot_dimension_numbers<[1], [0], [0], [1], [0, 0, 1, 1], [], []>} : vector<32x128xbf16>, vector<128x128xbf16>, vector<32x128xf32> -> vector<32x128xf32>
    %c0_116 = arith.constant 0 : index
    %c0_117 = arith.constant 0 : index
    %157 = vector.load %arg19[%c0_116, %c0_117] : memref<1x128xf32, #tpu.memory_space<vmem>>, vector<1x128xf32>
    %158 = vector.broadcast %157 : vector<1x128xf32> to vector<32x128xf32>
    %159 = arith.addf %156, %158 : vector<32x128xf32>
    %c0_118 = arith.constant 0 : index
    %c0_119 = arith.constant 0 : index
    %c0_120 = arith.constant 0 : index
    %160 = vector.load %arg4[%c0_118, %c0_119, %c0_120] : memref<2x16x128xf32, #tpu.memory_space<vmem>>, vector<2x16x128xf32>
    %161 = vector.shape_cast %160 : vector<2x16x128xf32> to vector<32x128xf32>
    %162 = arith.addf %159, %161 : vector<32x128xf32>
    %163 = arith.truncf %153 : vector<16x128xf32> to vector<16x128xbf16>
    %c0_121 = arith.constant 0 : index
    %c0_122 = arith.constant 0 : index
    %164 = vector.load %arg20[%c0_121, %c0_122] : memref<128x128xbf16, #tpu.memory_space<vmem>>, vector<128x128xbf16>
    %cst_123 = arith.constant dense<0.000000e+00> : vector<16x128xf32>
    %165 = tpu.matmul %163, %164, %cst_123 {dimension_numbers = #tpu.dot_dimension_numbers<[1], [0], [0], [1], [0, 0, 1, 1], [], []>} : vector<16x128xbf16>, vector<128x128xbf16>, vector<16x128xf32> -> vector<16x128xf32>
    %c0_124 = arith.constant 0 : index
    %c0_125 = arith.constant 0 : index
    %166 = vector.load %arg21[%c0_124, %c0_125] : memref<1x128xf32, #tpu.memory_space<vmem>>, vector<1x128xf32>
    %167 = vector.broadcast %166 : vector<1x128xf32> to vector<16x128xf32>
    %168 = arith.addf %165, %167 : vector<16x128xf32>
    %c0_126 = arith.constant 0 : index
    %c0_127 = arith.constant 0 : index
    %c0_128 = arith.constant 0 : index
    %169 = vector.load %arg5[%c0_126, %c0_127, %c0_128] : memref<2x8x128xf32, #tpu.memory_space<vmem>>, vector<2x8x128xf32>
    %170 = vector.shape_cast %169 : vector<2x8x128xf32> to vector<16x128xf32>
    %171 = arith.addf %168, %170 : vector<16x128xf32>
    %172 = vector.shape_cast %162 : vector<32x128xf32> to vector<2x16x128xf32>
    %c0_129 = arith.constant 0 : index
    %c0_130 = arith.constant 0 : index
    %c0_131 = arith.constant 0 : index
    %173 = vector.load %arg24[%c0_129, %c0_130, %c0_131] : memref<2x16x128xf32, #tpu.memory_space<vmem>>, vector<2x16x128xf32>
    tpu.vector_store %arg24[%c0_129, %c0_130, %c0_131], %172 {strides = array<i32>} : memref<2x16x128xf32, #tpu.memory_space<vmem>>, vector<2x16x128xf32>,
    %174 = vector.shape_cast %171 : vector<16x128xf32> to vector<2x8x128xf32>
    %c0_132 = arith.constant 0 : index
    %c0_133 = arith.constant 0 : index
    %c0_134 = arith.constant 0 : index
    %175 = vector.load %arg25[%c0_132, %c0_133, %c0_134] : memref<2x8x128xf32, #tpu.memory_space<vmem>>, vector<2x8x128xf32>
    tpu.vector_store %arg25[%c0_132, %c0_133, %c0_134], %174 {strides = array<i32>} : memref<2x8x128xf32, #tpu.memory_space<vmem>>, vector<2x8x128xf32>,
    %cst_135 = arith.constant dense<0xFF800000> : vector<32xf32>
    %176 = vector.multi_reduction <maximumf>, %162, %cst_135 [1] : vector<32x128xf32> to vector<32xf32>
    %177 = vector.shape_cast %176 : vector<32xf32> to vector<32x1xf32>
    %178 = vector.broadcast %177 : vector<32x1xf32> to vector<32x128xf32>
    %179 = arith.subf %162, %178 : vector<32x128xf32>
    %180 = math.exp %179 : vector<32x128xf32>
    %cst_136 = arith.constant dense<0.000000e+00> : vector<32xf32>
    %181 = vector.multi_reduction <add>, %180, %cst_136 [1] : vector<32x128xf32> to vector<32xf32>
    %182 = vector.shape_cast %181 : vector<32xf32> to vector<32x1xf32>
    %183 = tpu.reciprocal %182 {approx = true} : vector<32x1xf32> -> vector<32x1xf32>
    %184 = arith.mulf %182, %183 : vector<32x1xf32>
    %cst_137 = arith.constant 2.000000e+00 : f32
    %185 = vector.broadcast %cst_137 : f32 to vector<32x1xf32>
    %186 = arith.subf %185, %184 : vector<32x1xf32>
    %187 = arith.mulf %183, %186 : vector<32x1xf32>
    %188 = vector.broadcast %187 : vector<32x1xf32> to vector<32x128xf32>
    %189 = arith.mulf %180, %188 : vector<32x128xf32>
    %190 = vector.shape_cast %189 : vector<32x128xf32> to vector<2x16x128xf32>
    %c0_138 = arith.constant 0 : index
    %c0_139 = arith.constant 0 : index
    %c0_140 = arith.constant 0 : index
    %191 = vector.load %arg22[%c0_138, %c0_139, %c0_140] : memref<2x16x128xf32, #tpu.memory_space<vmem>>, vector<2x16x128xf32>
    tpu.vector_store %arg22[%c0_138, %c0_139, %c0_140], %190 {strides = array<i32>} : memref<2x16x128xf32, #tpu.memory_space<vmem>>, vector<2x16x128xf32>,
    %cst_141 = arith.constant dense<0xFF800000> : vector<16xf32>
    %192 = vector.multi_reduction <maximumf>, %171, %cst_141 [1] : vector<16x128xf32> to vector<16xf32>
    %193 = vector.shape_cast %192 : vector<16xf32> to vector<16x1xf32>
    %194 = vector.broadcast %193 : vector<16x1xf32> to vector<16x128xf32>
    %195 = arith.subf %171, %194 : vector<16x128xf32>
    %196 = math.exp %195 : vector<16x128xf32>
    %cst_142 = arith.constant dense<0.000000e+00> : vector<16xf32>
    %197 = vector.multi_reduction <add>, %196, %cst_142 [1] : vector<16x128xf32> to vector<16xf32>
    %198 = vector.shape_cast %197 : vector<16xf32> to vector<16x1xf32>
    %199 = tpu.reciprocal %198 {approx = true} : vector<16x1xf32> -> vector<16x1xf32>
    %200 = arith.mulf %198, %199 : vector<16x1xf32>
    %cst_143 = arith.constant 2.000000e+00 : f32
    %201 = vector.broadcast %cst_143 : f32 to vector<16x1xf32>
    %202 = arith.subf %201, %200 : vector<16x1xf32>
    %203 = arith.mulf %199, %202 : vector<16x1xf32>
    %204 = vector.broadcast %203 : vector<16x1xf32> to vector<16x128xf32>
    %205 = arith.mulf %196, %204 : vector<16x128xf32>
    %206 = vector.shape_cast %205 : vector<16x128xf32> to vector<2x8x128xf32>
    %c0_144 = arith.constant 0 : index
    %c0_145 = arith.constant 0 : index
    %c0_146 = arith.constant 0 : index
    %207 = vector.load %arg23[%c0_144, %c0_145, %c0_146] : memref<2x8x128xf32, #tpu.memory_space<vmem>>, vector<2x8x128xf32>
    tpu.vector_store %arg23[%c0_144, %c0_145, %c0_146], %206 {strides = array<i32>} : memref<2x8x128xf32, #tpu.memory_space<vmem>>, vector<2x8x128xf32>,
    return
  }
  func.func @transform_0(%arg0: i32) -> (i32, i32, i32) {
    %c0_i32 = arith.constant 0 : i32
    %c0_i32_0 = arith.constant 0 : i32
    %c0_i32_1 = arith.constant 0 : i32
    return %arg0, %c0_i32, %c0_i32_0 : i32, i32, i32
  }
  func.func @transform_1(%arg0: i32) -> (i32, i32, i32) {
    %c0_i32 = arith.constant 0 : i32
    %c0_i32_0 = arith.constant 0 : i32
    %c0_i32_1 = arith.constant 0 : i32
    return %arg0, %c0_i32, %c0_i32_0 : i32, i32, i32
  }
  func.func @transform_2(%arg0: i32) -> (i32, i32, i32) {
    %c0_i32 = arith.constant 0 : i32
    %c0_i32_0 = arith.constant 0 : i32
    %c0_i32_1 = arith.constant 0 : i32
    return %arg0, %c0_i32, %c0_i32_0 : i32, i32, i32
  }
  func.func @transform_3(%arg0: i32) -> (i32, i32, i32) {
    %c0_i32 = arith.constant 0 : i32
    %c0_i32_0 = arith.constant 0 : i32
    %c0_i32_1 = arith.constant 0 : i32
    return %arg0, %c0_i32, %c0_i32_0 : i32, i32, i32
  }
  func.func @transform_4(%arg0: i32) -> (i32, i32, i32) {
    %c0_i32 = arith.constant 0 : i32
    %c0_i32_0 = arith.constant 0 : i32
    %c0_i32_1 = arith.constant 0 : i32
    return %arg0, %c0_i32, %c0_i32_0 : i32, i32, i32
  }
  func.func @transform_5(%arg0: i32) -> (i32, i32) {
    %c0_i32 = arith.constant 0 : i32
    %c0_i32_0 = arith.constant 0 : i32
    %c0_i32_1 = arith.constant 0 : i32
    return %c0_i32, %c0_i32_0 : i32, i32
  }
  func.func @transform_6(%arg0: i32) -> (i32, i32) {
    %c0_i32 = arith.constant 0 : i32
    %c0_i32_0 = arith.constant 0 : i32
    %c0_i32_1 = arith.constant 0 : i32
    return %c0_i32, %c0_i32_0 : i32, i32
  }
  func.func @transform_7(%arg0: i32) -> (i32, i32) {
    %c0_i32 = arith.constant 0 : i32
    %c0_i32_0 = arith.constant 0 : i32
    %c0_i32_1 = arith.constant 0 : i32
    return %c0_i32, %c0_i32_0 : i32, i32
  }
  func.func @transform_8(%arg0: i32) -> (i32, i32) {
    %c0_i32 = arith.constant 0 : i32
    %c0_i32_0 = arith.constant 0 : i32
    %c0_i32_1 = arith.constant 0 : i32
    return %c0_i32, %c0_i32_0 : i32, i32
  }
  func.func @transform_9(%arg0: i32) -> (i32, i32, i32) {
    %c0_i32 = arith.constant 0 : i32
    %c0_i32_0 = arith.constant 0 : i32
    %c0_i32_1 = arith.constant 0 : i32
    %c0_i32_2 = arith.constant 0 : i32
    return %c0_i32, %c0_i32_0, %c0_i32_1 : i32, i32, i32
  }
  func.func @transform_10(%arg0: i32) -> (i32, i32, i32) {
    %c0_i32 = arith.constant 0 : i32
    %c0_i32_0 = arith.constant 0 : i32
    %c0_i32_1 = arith.constant 0 : i32
    %c0_i32_2 = arith.constant 0 : i32
    return %c0_i32, %c0_i32_0, %c0_i32_1 : i32, i32, i32
  }
  func.func @transform_11(%arg0: i32) -> (i32, i32, i32) {
    %c0_i32 = arith.constant 0 : i32
    %c0_i32_0 = arith.constant 0 : i32
    %c0_i32_1 = arith.constant 0 : i32
    %c0_i32_2 = arith.constant 0 : i32
    return %c0_i32, %c0_i32_0, %c0_i32_1 : i32, i32, i32
  }
  func.func @transform_12(%arg0: i32) -> (i32, i32, i32) {
    %c0_i32 = arith.constant 0 : i32
    %c0_i32_0 = arith.constant 0 : i32
    %c0_i32_1 = arith.constant 0 : i32
    %c0_i32_2 = arith.constant 0 : i32
    return %c0_i32, %c0_i32_0, %c0_i32_1 : i32, i32, i32
  }
  func.func @transform_13(%arg0: i32) -> (i32, i32, i32) {
    %c0_i32 = arith.constant 0 : i32
    %c0_i32_0 = arith.constant 0 : i32
    %c0_i32_1 = arith.constant 0 : i32
    %c0_i32_2 = arith.constant 0 : i32
    return %c0_i32, %c0_i32_0, %c0_i32_1 : i32, i32, i32
  }
  func.func @transform_14(%arg0: i32) -> (i32, i32, i32) {
    %c0_i32 = arith.constant 0 : i32
    %c0_i32_0 = arith.constant 0 : i32
    %c0_i32_1 = arith.constant 0 : i32
    %c0_i32_2 = arith.constant 0 : i32
    return %c0_i32, %c0_i32_0, %c0_i32_1 : i32, i32, i32
  }
  func.func @transform_15(%arg0: i32) -> (i32, i32, i32) {
    %c0_i32 = arith.constant 0 : i32
    %c0_i32_0 = arith.constant 0 : i32
    %c0_i32_1 = arith.constant 0 : i32
    %c0_i32_2 = arith.constant 0 : i32
    return %c0_i32, %c0_i32_0, %c0_i32_1 : i32, i32, i32
  }
  func.func @transform_16(%arg0: i32) -> (i32, i32, i32) {
    %c0_i32 = arith.constant 0 : i32
    %c0_i32_0 = arith.constant 0 : i32
    %c0_i32_1 = arith.constant 0 : i32
    %c0_i32_2 = arith.constant 0 : i32
    return %c0_i32, %c0_i32_0, %c0_i32_1 : i32, i32, i32
  }
  func.func @transform_17(%arg0: i32) -> (i32, i32) {
    %c0_i32 = arith.constant 0 : i32
    %c0_i32_0 = arith.constant 0 : i32
    %c0_i32_1 = arith.constant 0 : i32
    return %c0_i32, %c0_i32_0 : i32, i32
  }
  func.func @transform_18(%arg0: i32) -> (i32, i32) {
    %c0_i32 = arith.constant 0 : i32
    %c0_i32_0 = arith.constant 0 : i32
    %c0_i32_1 = arith.constant 0 : i32
    return %c0_i32, %c0_i32_0 : i32, i32
  }
  func.func @transform_19(%arg0: i32) -> (i32, i32) {
    %c0_i32 = arith.constant 0 : i32
    %c0_i32_0 = arith.constant 0 : i32
    %c0_i32_1 = arith.constant 0 : i32
    return %c0_i32, %c0_i32_0 : i32, i32
  }
  func.func @transform_20(%arg0: i32) -> (i32, i32) {
    %c0_i32 = arith.constant 0 : i32
    %c0_i32_0 = arith.constant 0 : i32
    %c0_i32_1 = arith.constant 0 : i32
    return %c0_i32, %c0_i32_0 : i32, i32
  }
  func.func @transform_21(%arg0: i32) -> (i32, i32, i32) {
    %c0_i32 = arith.constant 0 : i32
    %c0_i32_0 = arith.constant 0 : i32
    %c0_i32_1 = arith.constant 0 : i32
    return %arg0, %c0_i32, %c0_i32_0 : i32, i32, i32
  }
  func.func @transform_22(%arg0: i32) -> (i32, i32, i32) {
    %c0_i32 = arith.constant 0 : i32
    %c0_i32_0 = arith.constant 0 : i32
    %c0_i32_1 = arith.constant 0 : i32
    return %arg0, %c0_i32, %c0_i32_0 : i32, i32, i32
  }
  func.func @transform_23(%arg0: i32) -> (i32, i32, i32) {
    %c0_i32 = arith.constant 0 : i32
    %c0_i32_0 = arith.constant 0 : i32
    %c0_i32_1 = arith.constant 0 : i32
    return %arg0, %c0_i32, %c0_i32_0 : i32, i32, i32
  }
  func.func @transform_24(%arg0: i32) -> (i32, i32, i32) {
    %c0_i32 = arith.constant 0 : i32
    %c0_i32_0 = arith.constant 0 : i32
    %c0_i32_1 = arith.constant 0 : i32
    return %arg0, %c0_i32, %c0_i32_0 : i32, i32, i32
  }
}

</mosaic_0001>

<bundles_post_ra>
// kernel: tpu_custom_call.1
= control target key start
LH: loop header
LB: loop body
LE: loop exit
PB: predicated region body
PF: predicated region fallthrough
CT: control target
= control target key end

     0   :  { %s7068_s0 = inlined_call_operand.vmem [shape: f32[6,16,8], index: 0, kind: input, shape index: {}]   ;;  %s7069_s1 = inlined_call_operand.hbm [shape: f32[6,8,8], index: 1, kind: input, shape index: {}]   ;;  %s7070_s2 = inlined_call_operand.hbm [shape: bf16[3,16,32], index: 2, kind: input, shape index: {}]   ;;  %s7071_s3 = inlined_call_operand.hbm [shape: f32[6,16,128], index: 3, kind: input, shape index: {}]   ;;  %s7072_s4 = inlined_call_operand.hbm [shape: f32[6,8,128], index: 4, kind: input, shape index: {}]   ;;  %s7073_s5 = inlined_call_operand.vmem [shape: bf16[8,128], index: 5, kind: input, shape index: {}]   ;;  %s7074_s6 = inlined_call_operand.hbm [shape: f32[1,128], index: 6, kind: input, shape index: {}]   ;;  %s7075_s7 = inlined_call_operand.vmem [shape: bf16[8,128], index: 7, kind: input, shape index: {}]   ;;  %s7076_s8 = inlined_call_operand.hbm [shape: f32[1,128], index: 8, kind: input, shape index: {}]   ;;  %s7077_s9 = inlined_call_operand.hbm [shape: bf16[3,256,128], index: 9, kind: input, shape index: {}]   ;;  %s7078_s10 = inlined_call_operand.hbm [shape: f32[3,1,128], index: 10, kind: input, shape index: {}]   ;;  %s7079_s11 = inlined_call_operand.hbm [shape: bf16[3,128,128], index: 11, kind: input, shape index: {}]   ;;  %s7080_s12 = inlined_call_operand.hbm [shape: f32[3,1,128], index: 12, kind: input, shape index: {}]   ;;  %s7081_s13 = inlined_call_operand.hbm [shape: bf16[3,256,128], index: 13, kind: input, shape index: {}]   ;;  %s7082_s14 = inlined_call_operand.hbm [shape: f32[3,1,128], index: 14, kind: input, shape index: {}]   ;;  %s7083_s15 = inlined_call_operand.vmem [shape: bf16[3,128,128], index: 15, kind: input, shape index: {}]   ;;  %s7084_s16 = inlined_call_operand.vmem [shape: f32[3,1,128], index: 16, kind: input, shape index: {}]   ;;  %s7085_s17 = inlined_call_operand.hbm [shape: bf16[128,128], index: 17, kind: input, shape index: {}]   ;;  %s7086_s18 = inlined_call_operand.vmem [shape: f32[1,128], index: 18, kind: input, shape index: {}]   ;;  %s7087_s19 = inlined_call_operand.hbm [shape: bf16[128,128], index: 19, kind: input, shape index: {}]   ;;  %s7088_s20 = inlined_call_operand.vmem [shape: f32[1,128], index: 20, kind: input, shape index: {}]   ;;  %s7089_s21 = inlined_call_operand.hbm [shape: f32[6,16,128], index: 21, kind: output, shape index: {0}]   ;;  %s7090_s22 = inlined_call_operand.hbm [shape: f32[6,8,128], index: 22, kind: output, shape index: {1}]   ;;  %s7091_s23 = inlined_call_operand.hbm [shape: f32[6,16,128], index: 23, kind: output, shape index: {2}]   ;;  %s7092_s24 = inlined_call_operand.hbm [shape: f32[6,8,128], index: 24, kind: output, shape index: {3}]  }
   0x1   :  { %7132 = sst [smem:[#allocation48_spill]] %s7068_s0 }
   0x2   :  { %7133 = sst [smem:[#allocation49_spill]] %s7069_s1 }
   0x3   :  { %7134 = sst [smem:[#allocation50_spill]] %s7070_s2 }
   0x4   :  { %7135 = sst [smem:[#allocation51_spill]] %s7071_s3 }
   0x5   :  { %7136 = sst [smem:[#allocation52_spill]] %s7072_s4 }
   0x6   :  { %7137 = sst [smem:[#allocation53_spill]] %s7073_s5 }
   0x7   :  { %7138 = sst [smem:[#allocation54_spill]] %s7074_s6 }
   0x8   :  { %7139 = sst [smem:[#allocation55_spill]] %s7075_s7 }
   0x9   :  { %7140 = sst [smem:[#allocation56_spill]] %s7076_s8 }
   0xa   :  { %7141 = sst [smem:[#allocation57_spill]] %s7077_s9 }
   0xb   :  { %7142 = sst [smem:[#allocation58_spill]] %s7078_s10 }
   0xc   :  { %7143 = sst [smem:[#allocation59_spill]] %s7079_s11 }
   0xd   :  { %7144 = sst [smem:[#allocation60_spill]] %s7080_s12 }
   0xe   :  { %7145 = sst [smem:[#allocation61_spill]] %s7081_s13 }
   0xf   :  { %7146 = sst [smem:[#allocation62_spill]] %s7082_s14 }
  0x10   :  { %7147 = sst [smem:[#allocation63_spill]] %s7083_s15 }
  0x11   :  { %7148 = sst [smem:[#allocation64_spill]] %s7084_s16 }
  0x12   :  { %7149 = sst [smem:[#allocation65_spill]] %s7085_s17 }
  0x13   :  { %7150 = sst [smem:[#allocation66_spill]] %s7086_s18 }
  0x14   :  { %7151 = sst [smem:[#allocation67_spill]] %s7087_s19 }
  0x15   :  { %7152 = sst [smem:[#allocation68_spill]] %s7088_s20 }
  0x16   :  { %7153 = sst [smem:[#allocation69_spill]] %s7089_s21 }
  0x17   :  { %7154 = sst [smem:[#allocation70_spill]] %s7090_s22 }
  0x18   :  { %7155 = sst [smem:[#allocation71_spill]] %s7091_s23 }
  0x19   :  { %7156 = sst [smem:[#allocation72_spill]] %s7092_s24 }
  0x1a   :  { %30 = vsyncpa [#allocation3], 0 }
  0x1b   :  { %32 = vsyncpa [#allocation3 + $0x1], 0 }
  0x1c   :  { %33 = vsyncpa [#allocation6], 0 }
  0x1d   :  { %35 = vsyncpa [#allocation6 + $0x1], 0 }
  0x1e   :  { %36 = vsyncpa [#allocation9], 0 }
  0x1f   :  { %38 = vsyncpa [#allocation9 + $0x1], 0 }
  0x20   :  { %39 = vsyncpa [#allocation12], 0 }
  0x21   :  { %40 = vsyncpa [#allocation15], 0 }
  0x22   :  { %41 = vsyncpa [#allocation18], 0 }
  0x23   :  { %42 = vsyncpa [#allocation21], 0 }
  0x24   :  { %43 = vsyncpa [#allocation24], 0 }
  0x25   :  { %44 = vsyncpa [#allocation4], 0 }
  0x26   :  { %46 = vsyncpa [#allocation4 + $0x1], 0 }
  0x27   :  { %47 = vsyncpa [#allocation27], 0 }
  0x28   :  { %49 = vsyncpa [#allocation27 + $0x1], 0 }
  0x29   :  { %50 = vsyncpa [#allocation30], 0 }
  0x2a   :  { %52 = vsyncpa [#allocation30 + $0x1], 0  ;;  %s6005_s5 = smov 0   ;;  %s6007_s26 = smov 0  }
  0x2b   :  { %s6009_s27 = smov 0   ;;  %s6011_s28 = smov 0  }
  0x2c LB: > { %7157 = sst [smem:[#allocation43_spill]] %s5846_s27  ;;  %s5852_s6 = smov [#allocation10]   ;;  %s5850_s28 = sphi %s6011_s28, %s7222_s28   ;;  %s5846_s27 = sphi %s6009_s27, %s7224_s27   ;;  %s5842_s26 = sphi %s6007_s26, %s7226_s26   ;;  %s5838_s5 = sphi %s6005_s5, %s7225_s5  }
  0x2d   : > { %s649_s2 = sshll.u32 %s5852_s6, 4  ;;  %s6026_s29 = sadd.s32 4294967295, %s5850_s28   ;;  %s650_s2 = int_to_ptr.vmem [resolvable:$true] %s649_s2 }
  0x2e   : > { %p4124_p0 = scmp.ge.s32.totalorder %s5850_s28, 1  ;;  %p7103_p1 = scmp.eq.s32.totalorder %s6026_s29, 0 }
  0x2f   : > { %p633_p2 = scmp.lt.s32.totalorder %s5850_s28, 4  ;;  %s5853_s7 = smov [#allocation11]  }
  0x30   : > { %s663_s30 = sshll.u32 %s5853_s7, 4  ;;  %s5854_s3 = smov [#allocation14]   ;;  %s6037_s30 = int_to_ptr.vmem [resolvable:$true] %s663_s30 }
  0x31   : > { %p6031_p3 = pnand %p4124_p0, %p633_p2  ;;  %s686_s25 = sshll.u32 %s5854_s3, 4  ;;  %s6045_s25 = int_to_ptr.vmem [resolvable:$true] %s686_s25 }
  0x32   : > { %s7161_s6 = sld [smem:[#allocation54_spill]] }
  0x33   : > { %s7158_s0 = scalar_select %p6031_p3, 1, 0 }
  0x34   : > { %p4942_p4 = pneg %p6031_p3 }
  0x35   : > { %7159 = sst [smem:[#allocation44_spill]] %s7158_s0 }
  0x36   : > { %p6041_p5 = pnand %p4942_p4, %p7103_p1 }
  0x38   : > { %s7160_s8 = scalar_select %p6041_p5, 1, 0 }
  0x39   : > { %s5260_s21 = scalar_lea.hbm %s7161_s6, 16  ;;  %p6055_p7 = pneg %p6041_p5 }
  0x3a   : > { %p5261_p6 = scmp.ne.s32.totalorder %s7161_s6, %s5260_s21  ;;  %p5267_p10 = scmp.lt.u32.totalorder %s5260_s21, %s7161_s6 }
  0x3b   : > { %s7162_s7 = scalar_select %p6055_p7, 1, 0 }
  0x3c   : > { %p5263_p8 = pnand %p6055_p7, %p5261_p6 }
  0x3e   : > { %p5264_p9 = pneg %p5263_p8 }
  0x40   : > { %p5269_p11 = pnand %p5267_p10, %p5264_p9 }
  0x42   : > { %5272 = shalt.err (!%p5269_p11)
}
  0x43   : > { %s5273_s4 = scalar_lea.vmem %s650_s2, 16  ;;  %s5280_s22 = scalar_lea.vmem %s650_s2, 32 }
  0x44   : > { %p5274_p12 = scmp.ne.s32.totalorder %s650_s2, %s5273_s4  ;;  %p5281_p2 = scmp.lt.s32.totalorder %s650_s2, %s650_s2 }
  0x45   : > { %p5282_p4 = scmp.lt.s32.totalorder %s5280_s22, %s5273_s4 }
  0x46   : > { %p5276_p13 = pnand %p5274_p12, %p6055_p7 }
  0x47   : > { %p5283_p1 = por %p5282_p4, %p5281_p2 }
  0x48   : > { %p5277_p0 = pneg %p5276_p13 }
  0x4a   : > { %p5284_p3 = pnand %p5283_p1, %p5277_p0 }
  0x4c   : > { %5287 = shalt.err (!%p5284_p3)
}
  0x4d   : > { %4945 = dma.hbm_to_vmem [thread:$0]  (!%p6041_p5), %s7161_s6, 16, %s650_s2, [#allocation9]  }
  0x4e   : > { %s7163_s3 = sld [smem:[#allocation56_spill]] }
  0x54   : > { %s5288_s20 = scalar_lea.hbm %s7163_s3, 16 }
  0x55   : > { %p5289_p6 = scmp.ne.s32.totalorder %s7163_s3, %s5288_s20  ;;  %p5295_p1 = scmp.lt.u32.totalorder %s5288_s20, %s7163_s3 }
  0x57   : > { %p5291_p8 = pnand %p5289_p6, %p6055_p7 }
  0x59   : > { %p5292_p9 = pneg %p5291_p8 }
  0x5b   : > { %p5297_p3 = pnand %p5295_p1, %p5292_p9 }
  0x5d   : > { %5300 = shalt.err (!%p5297_p3)
}
  0x5e   : > { %s5301_s2 = scalar_lea.vmem %s6037_s30, 16  ;;  %s5308_s16 = scalar_lea.vmem %s6037_s30, 32 }
  0x5f   : > { %p5302_p10 = scmp.ne.s32.totalorder %s6037_s30, %s5301_s2  ;;  %p5309_p13 = scmp.lt.s32.totalorder %s6037_s30, %s6037_s30 }
  0x60   : > { %p5310_p0 = scmp.lt.s32.totalorder %s5308_s16, %s5301_s2 }
  0x61   : > { %p5304_p11 = pnand %p5302_p10, %p6055_p7 }
  0x62   : > { %p5311_p2 = por %p5310_p0, %p5309_p13 }
  0x63   : > { %p5305_p12 = pneg %p5304_p11 }
  0x65   : > { %p5312_p4 = pnand %p5311_p2, %p5305_p12 }
  0x67   : > { %5315 = shalt.err (!%p5312_p4)
}
  0x68   : > { %4948 = dma.hbm_to_vmem [thread:$0]  (!%p6041_p5), %s7163_s3, 16, %s6037_s30, [#allocation12]  }
  0x69   : > { %s7164_s10 = sld [smem:[#allocation58_spill]] }
  0x6f   : > { %s5316_s21 = scalar_lea.hbm %s7164_s10, 48 }
  0x70   : > { %p5317_p6 = scmp.ne.s32.totalorder %s7164_s10, %s5316_s21  ;;  %p5323_p1 = scmp.lt.u32.totalorder %s5316_s21, %s7164_s10 }
  0x72   : > { %p5319_p8 = pnand %p5317_p6, %p6055_p7 }
  0x74   : > { %p5320_p9 = pneg %p5319_p8 }
  0x76   : > { %p5325_p3 = pnand %p5323_p1, %p5320_p9 }
  0x78   : > { %5328 = shalt.err (!%p5325_p3)
}
  0x79   : > { %s5329_s30 = scalar_lea.vmem %s6045_s25, 48  ;;  %s5336_s16 = scalar_lea.vmem %s6045_s25, 64 }
  0x7a   : > { %p5330_p10 = scmp.ne.s32.totalorder %s6045_s25, %s5329_s30  ;;  %p5337_p13 = scmp.lt.s32.totalorder %s6045_s25, %s6045_s25 }
  0x7b   : > { %p5338_p0 = scmp.lt.s32.totalorder %s5336_s16, %s5329_s30 }
  0x7c   : > { %p5332_p11 = pnand %p5330_p10, %p6055_p7 }
  0x7d   : > { %p5339_p2 = por %p5338_p0, %p5337_p13 }
  0x7e   : > { %p5333_p12 = pneg %p5332_p11 }
  0x80   : > { %p5340_p4 = pnand %p5339_p2, %p5333_p12 }
  0x82   : > { %5343 = shalt.err (!%p5340_p4)
}
  0x83   : > { %s5855_s18 = smov 16   ;;  %s5856_s20 = smov 1  }
  0x84   : > { %4954 = dma.hbm_to_vmem [thread:$0]  (!%p6041_p5), %s7164_s10, 48, %s6045_s25, [#allocation15], %s5855_s18, %s5855_s18, %s5856_s20  }
  0x85   : > { %s5857_s21 = smov [#allocation17]   ;;  %s5858_s4 = smov [#allocation20]  }
  0x86   : > { %s712_s24 = sshll.u32 %s5857_s21, 4  ;;  %s738_s22 = sshll.u32 %s5858_s4, 4  ;;  %s713_s24 = int_to_ptr.vmem [resolvable:$true] %s712_s24  ;;  %s739_s22 = int_to_ptr.vmem [resolvable:$true] %s738_s22 }
  0x87   : > { %s7165_s12 = sld [smem:[#allocation60_spill]] }
  0x8d   : > { %s5344_s16 = scalar_lea.hbm %s7165_s12, 48 }
  0x8e   : > { %p5345_p6 = scmp.ne.s32.totalorder %s7165_s12, %s5344_s16  ;;  %p5351_p1 = scmp.lt.u32.totalorder %s5344_s16, %s7165_s12 }
  0x90   : > { %p5347_p8 = pnand %p5345_p6, %p6055_p7 }
  0x92   : > { %p5348_p9 = pneg %p5347_p8 }
  0x94   : > { %p5353_p3 = pnand %p5351_p1, %p5348_p9 }
  0x96   : > { %5356 = shalt.err (!%p5353_p3)
}
  0x97   : > { %s5357_s25 = scalar_lea.vmem %s713_s24, 48  ;;  %s5364_s23 = scalar_lea.vmem %s713_s24, 64 }
  0x98   : > { %p5358_p10 = scmp.ne.s32.totalorder %s713_s24, %s5357_s25  ;;  %p5365_p13 = scmp.lt.s32.totalorder %s713_s24, %s713_s24 }
  0x99   : > { %p5366_p0 = scmp.lt.s32.totalorder %s5364_s23, %s5357_s25 }
  0x9a   : > { %p5360_p11 = pnand %p5358_p10, %p6055_p7 }
  0x9b   : > { %p5367_p2 = por %p5366_p0, %p5365_p13 }
  0x9c   : > { %p5361_p12 = pneg %p5360_p11 }
  0x9e   : > { %p5368_p4 = pnand %p5367_p2, %p5361_p12 }
  0xa0   : > { %5371 = shalt.err (!%p5368_p4)
}
  0xa1   : > { %4960 = dma.hbm_to_vmem [thread:$0]  (!%p6041_p5), %s7165_s12, 48, %s713_s24, [#allocation18], %s5855_s18, %s5855_s18, %s5856_s20  }
  0xa2   : > { %s7166_s14 = sld [smem:[#allocation62_spill]] }
  0xa8   : > { %s5372_s1 = scalar_lea.hbm %s7166_s14, 48 }
  0xa9   : > { %p5373_p6 = scmp.ne.s32.totalorder %s7166_s14, %s5372_s1  ;;  %p5379_p1 = scmp.lt.u32.totalorder %s5372_s1, %s7166_s14 }
  0xab   : > { %p5375_p8 = pnand %p5373_p6, %p6055_p7 }
  0xad   : > { %p5376_p9 = pneg %p5375_p8 }
  0xaf   : > { %p5381_p3 = pnand %p5379_p1, %p5376_p9 }
  0xb1   : > { %5384 = shalt.err (!%p5381_p3)
}
  0xb2   : > { %s5385_s16 = scalar_lea.vmem %s739_s22, 48  ;;  %s5392_s24 = scalar_lea.vmem %s739_s22, 64 }
  0xb3   : > { %p5386_p10 = scmp.ne.s32.totalorder %s739_s22, %s5385_s16  ;;  %p5393_p13 = scmp.lt.s32.totalorder %s739_s22, %s739_s22 }
  0xb4   : > { %p5394_p0 = scmp.lt.s32.totalorder %s5392_s24, %s5385_s16 }
  0xb5   : > { %p5388_p11 = pnand %p5386_p10, %p6055_p7 }
  0xb6   : > { %p5395_p2 = por %p5394_p0, %p5393_p13 }
  0xb7   : > { %p5389_p12 = pneg %p5388_p11 }
  0xb9   : > { %p5396_p4 = pnand %p5395_p2, %p5389_p12 }
  0xbb   : > { %5399 = shalt.err (!%p5396_p4)
}
  0xbc   : > { %4966 = dma.hbm_to_vmem [thread:$0]  (!%p6041_p5), %s7166_s14, 48, %s739_s22, [#allocation21], %s5855_s18, %s5855_s18, %s5856_s20  }
  0xbd   : > { %s7110_s15 = sadd.s32 4294967294, %s5850_s28   ;;  %s6166_s0 = sadd.s32 1, %s5850_s28  }
  0xbe   : > { %7167 = sst [smem:[#allocation45_spill]] %s6166_s0  ;;  %s91_s6 = sadd.s32 1, %s5846_s27 }
  0xbf   : > { %s88_s3 = ssub.s32 %s5850_s28, %s6166_s0  ;;  %p98_p6 = scmp.ne.s32.totalorder %s5846_s27, %s5842_s26 }
  0xc0   : > { %p89_p8 = scmp.eq.s32.totalorder %s88_s3, 0  ;;  %p99_p9 = scmp.eq.s32.totalorder %s5850_s28, 0 }
  0xc1   : > { %p104_p1 = scmp.ne.s32.totalorder %s5842_s26, %s5838_s5  ;;  %p542_p3 = scmp.eq.s32.totalorder %s6026_s29, 2 }
  0xc2   : > { %s6178_s1 = scalar_select %p89_p8, %s5846_s27, %s91_s6  }
  0xc3   : > { %p100_p10 = por %p99_p9, %p98_p6  ;;  %p7169_p11 = scmp.eq.s32.totalorder %s6026_s29, 0 }
  0xc4   : > { %7168 = sst [smem:[#allocation46_spill]] %s6178_s1  ;;  %p6186_p13 = por %p542_p3, %p98_p6 }
  0xc5   : > { %p6182_p12 = por %p7169_p11, %p104_p1  ;;  %p548_p0 = scmp.eq.s32.totalorder %s7110_s15, 2 }
  0xc6   : > { %s7171_s20 = scalar_select %p6186_p13, 1, 0 }
  0xc7   : > { %s7170_s18 = scalar_select %p6182_p12, 1, 0 }
  0xc8   : > { %p6192_p2 = por %p548_p0, %p104_p1  ;;  %p5009_p4 = scmp.lt.s32.totalorder %s5850_s28, 3 }
  0xc9   : > { %s6198_s21 = sand.u32 1, %s5846_s27   ;;  %s7112_s4 = sand.u32 1, %s5850_s28  }
  0xca   : > { %s7172_s22 = scalar_select %p6192_p2, 1, 0 }
  0xcb   : > { %p6201_p8 = pnand %p5009_p4, %p100_p10  ;;  %s4139_s30 = sshll.u32 %s6198_s21, 3 }
  0xcc   : > { %7173 = sst [smem:[#allocation47_spill]] %s7172_s22  ;;  %s4411_s16 = sshll.u32 %s5850_s28, 7 }
  0xcd   : > { %s7174_s2 = scalar_select %p6201_p8, 1, 0 }
  0xce   : > { %s7175_s23 = sld [smem:[#allocation50_spill]]  ;;  %s825_s3 = scalar_lea.vmem [#allocation5], %s4139_s30 }
  0xcf   : > { %s832_s15 = sshll.u32 %s825_s3, 4  ;;  %s6216_s10 = scalar_lea.sflag [#allocation6], %s7112_s4  ;;  %s6212_s15 = int_to_ptr.vmem [resolvable:$true] %s832_s15 }
  0xd0   : > { %p6222_p9 = pneg %p6201_p8 }
  0xd2   : > { %s7176_s14 = scalar_select %p6222_p9, 1, 0 }
  0xd4   : > { %s6210_s6 = scalar_lea.hbm %s7175_s23, %s4411_s16  ;;  %s5405_s30 = scalar_lea.hbm %s7175_s23, 384 }
  0xd5   : > { %s5400_s12 = scalar_lea.hbm %s6210_s6, 128  ;;  %p5406_p10 = scmp.lt.u32.totalorder %s6210_s6, %s7175_s23 }
  0xd6   : > { %p5401_p6 = scmp.ne.s32.totalorder %s6210_s6, %s5400_s12  ;;  %p5407_p11 = scmp.lt.u32.totalorder %s5405_s30, %s5400_s12 }
  0xd7   : > { %p5409_p4 = scmp.lt.u32.totalorder %s5400_s12, %s6210_s6 }
  0xd8   : > { %p5403_p1 = pnand %p6222_p9, %p5401_p6  ;;  %p5408_p0 = por %p5407_p11, %p5406_p10 }
  0xda   : > { %p5404_p3 = pneg %p5403_p1  ;;  %p5410_p2 = por %p5409_p4, %p5408_p0 }
  0xdc   : > { %p5411_p13 = pnand %p5410_p2, %p5404_p3 }
  0xde   : > { %5414 = shalt.err (!%p5411_p13)
}
  0xdf   : > { %s5415_s4 = scalar_lea.vmem %s6212_s15, 128  ;;  %s5859_s16 = smov [#allocation5]  }
  0xe0   : > { %p5416_p6 = scmp.ne.s32.totalorder %s6212_s15, %s5415_s4  ;;  %s5420_s24 = sshll.u32 %s5859_s16, 4  ;;  %s5421_s24 = int_to_ptr.vmem [resolvable:$false] %s5420_s24 }
  0xe1   : > { %s5422_s25 = scalar_lea.vmem %s5421_s24, 256  ;;  %p5423_p5 = scmp.lt.s32.totalorder %s6212_s15, %s5421_s24 }
  0xe2   : > { %p5418_p1 = pnand %p5416_p6, %p6222_p9  ;;  %p5424_p7 = scmp.lt.s32.totalorder %s5422_s25, %s5415_s4 }
  0xe4   : > { %p5419_p12 = pneg %p5418_p1  ;;  %p5425_p10 = por %p5424_p7, %p5423_p5 }
  0xe6   : > { %p5426_p11 = pnand %p5425_p10, %p5419_p12 }
  0xe8   : > { %5429 = shalt.err (!%p5426_p11)
}
  0xe9   : > { %s5860_s12 = smov 64   ;;  %s5861_s30 = smov 4  }
  0xea   : > { %4979 = dma.hbm_to_vmem [thread:$0]  (!%p6201_p8), %s6210_s6, 128, %s6212_s15, %s6216_s10, %s5860_s12, %s5860_s12, %s5861_s30  }
  0xeb   : > { %s5862_s3 = smov [#allocation13]   ;;  %s5863_s23 = smov [#allocation16]  }
  0xec   : > { %s673_s16 = sshll.u32 %s5862_s3, 4  ;;  %s699_s24 = sshll.u32 %s5863_s23, 4  ;;  %s674_s16 = int_to_ptr.vmem [resolvable:$true] %s673_s16  ;;  %s6249_s24 = int_to_ptr.vmem [resolvable:$true] %s699_s24 }
  0xed   : > { %s7177_s9 = sld [smem:[#allocation57_spill]]  ;;  %p7178_p7 = scmp.ne.s32.totalorder %s7162_s7, 0 }
  0xf3   : > { %s5430_s1 = scalar_lea.hbm %s7177_s9, 6144 }
  0xf4   : > { %p5431_p5 = scmp.ne.s32.totalorder %s7177_s9, %s5430_s1  ;;  %p5437_p2 = scmp.lt.u32.totalorder %s5430_s1, %s7177_s9 }
  0xf6   : > { %p5433_p12 = pnand %p5431_p5, %p7178_p7 }
  0xf8   : > { %p5434_p13 = pneg %p5433_p12 }
  0xfa   : > { %p5439_p3 = pnand %p5437_p2, %p5434_p13 }
  0xfc   : > { %5442 = shalt.err (!%p5439_p3)
}
  0xfd   : > { %s5443_s23 = scalar_lea.vmem %s674_s16, 6144  ;;  %p5451_p1 = scmp.lt.s32.totalorder %s674_s16, %s674_s16 }
  0xfe   : > { %p5444_p0 = scmp.ne.s32.totalorder %s674_s16, %s5443_s23  ;;  %p5452_p10 = scmp.lt.s32.totalorder %s5443_s23, %s5443_s23 }
 0x100   : > { %p5446_p4 = pnand %p5444_p0, %p7178_p7  ;;  %p5453_p11 = por %p5452_p10, %p5451_p1 }
 0x102   : > { %p5447_p6 = pneg %p5446_p4 }
 0x104   : > { %p5454_p8 = pnand %p5453_p11, %p5447_p6 }
 0x106   : > { %5457 = shalt.err (!%p5454_p8)
}
 0x107   : > { %p7179_p5 = scmp.ne.s32.totalorder %s7160_s8, 0  ;;  %s7180_s11 = sld [smem:[#allocation59_spill]] }
 0x109   : > { %4951 = dma.hbm_to_vmem [thread:$0]  (!%p7179_p5), %s7177_s9, 6144, %s674_s16, [#allocation12], %s5860_s12, %s5860_s12, %s5861_s30  }
 0x10d   : > { %s5458_s6 = scalar_lea.hbm %s7180_s11, 3072 }
 0x10e   : > { %p5459_p12 = scmp.ne.s32.totalorder %s7180_s11, %s5458_s6  ;;  %p5465_p2 = scmp.lt.u32.totalorder %s5458_s6, %s7180_s11 }
 0x110   : > { %p5461_p8 = pnand %p5459_p12, %p7178_p7 }
 0x112   : > { %p5462_p13 = pneg %p5461_p8 }
 0x114   : > { %p5467_p3 = pnand %p5465_p2, %p5462_p13 }
 0x116   : > { %5470 = shalt.err (!%p5467_p3)
}
 0x117   : > { %s5471_s16 = scalar_lea.vmem %s6249_s24, 3072  ;;  %p5479_p1 = scmp.lt.s32.totalorder %s6249_s24, %s6249_s24 }
 0x118   : > { %p5472_p0 = scmp.ne.s32.totalorder %s6249_s24, %s5471_s16  ;;  %p5480_p10 = scmp.lt.s32.totalorder %s5471_s16, %s5471_s16 }
 0x11a   : > { %p5474_p4 = pnand %p5472_p0, %p7178_p7  ;;  %p5481_p11 = por %p5480_p10, %p5479_p1 }
 0x11c   : > { %p5475_p6 = pneg %p5474_p4 }
 0x11e   : > { %p5482_p12 = pnand %p5481_p11, %p5475_p6 }
 0x120   : > { %5485 = shalt.err (!%p5482_p12)
}
 0x121   : > { %4957 = dma.hbm_to_vmem [thread:$0]  (!%p7179_p5), %s7180_s11, 3072, %s6249_s24, [#allocation15], %s5860_s12, %s5860_s12, %s5861_s30  }
 0x122   : > { %s5864_s0 = smov [#allocation19]   ;;  %s5865_s22 = smov [#allocation22]  }
 0x123   : > { %s725_s1 = sshll.u32 %s5864_s0, 4  ;;  %s757_s6 = sshll.u32 %s5865_s22, 4  ;;  %s726_s1 = int_to_ptr.vmem [resolvable:$true] %s725_s1  ;;  %s6298_s6 = int_to_ptr.vmem [resolvable:$true] %s757_s6 }
 0x124   : > { %s7181_s13 = sld [smem:[#allocation61_spill]] }
 0x12a   : > { %s5486_s25 = scalar_lea.hbm %s7181_s13, 6144 }
 0x12b   : > { %p5487_p8 = scmp.ne.s32.totalorder %s7181_s13, %s5486_s25  ;;  %p5493_p3 = scmp.lt.u32.totalorder %s5486_s25, %s7181_s13 }
 0x12d   : > { %p5489_p13 = pnand %p5487_p8, %p7178_p7 }
 0x12f   : > { %p5490_p2 = pneg %p5489_p13 }
 0x131   : > { %p5495_p0 = pnand %p5493_p3, %p5490_p2 }
 0x133   : > { %5498 = shalt.err (!%p5495_p0)
}
 0x134   : > { %s5499_s27 = scalar_lea.vmem %s726_s1, 6144  ;;  %p5507_p10 = scmp.lt.s32.totalorder %s726_s1, %s726_s1 }
 0x135   : > { %p5500_p4 = scmp.ne.s32.totalorder %s726_s1, %s5499_s27  ;;  %p5508_p11 = scmp.lt.s32.totalorder %s5499_s27, %s5499_s27 }
 0x137   : > { %p5502_p6 = pnand %p5500_p4, %p7178_p7  ;;  %p5509_p12 = por %p5508_p11, %p5507_p10 }
 0x139   : > { %p5503_p1 = pneg %p5502_p6 }
 0x13b   : > { %p5510_p9 = pnand %p5509_p12, %p5503_p1 }
 0x13d   : > { %5513 = shalt.err (!%p5510_p9)
}
 0x13e   : > { %4963 = dma.hbm_to_vmem [thread:$0]  (!%p7179_p5), %s7181_s13, 6144, %s726_s1, [#allocation18], %s5860_s12, %s5860_s12, %s5861_s30  }
 0x13f   : > { %s7182_s17 = sld [smem:[#allocation65_spill]] }
 0x145   : > { %s5514_s25 = scalar_lea.hbm %s7182_s17, 1024 }
 0x146   : > { %p5515_p8 = scmp.ne.s32.totalorder %s7182_s17, %s5514_s25  ;;  %p5521_p2 = scmp.lt.u32.totalorder %s5514_s25, %s7182_s17 }
 0x148   : > { %p5517_p9 = pnand %p5515_p8, %p7178_p7 }
 0x14a   : > { %p5518_p13 = pneg %p5517_p9 }
 0x14c   : > { %p5523_p3 = pnand %p5521_p2, %p5518_p13 }
 0x14e   : > { %5526 = shalt.err (!%p5523_p3)
}
 0x14f   : > { %s5527_s1 = scalar_lea.vmem %s6298_s6, 1024  ;;  %p5535_p1 = scmp.lt.s32.totalorder %s6298_s6, %s6298_s6 }
 0x150   : > { %p5528_p0 = scmp.ne.s32.totalorder %s6298_s6, %s5527_s1  ;;  %p5536_p10 = scmp.lt.s32.totalorder %s5527_s1, %s5527_s1 }
 0x152   : > { %p5530_p4 = pnand %p5528_p0, %p7178_p7  ;;  %p5537_p11 = por %p5536_p10, %p5535_p1 }
 0x154   : > { %p5531_p6 = pneg %p5530_p4 }
 0x156   : > { %p5538_p12 = pnand %p5537_p11, %p5531_p6 }
 0x158   : > { %5541 = shalt.err (!%p5538_p12)
}
 0x159   : > { %4969 = dma.hbm_to_vmem [thread:$0]  (!%p7179_p5), %s7182_s17, 1024, %s6298_s6, [#allocation21], %s5860_s12, %s5860_s12, %s5861_s30  }
 0x15a   : > { %s5866_s22 = smov [#allocation23]   ;;  %s4136_s4 = sshll.u32 %s6198_s21, 4 }
 0x15b   : > { %s773_s3 = sshll.u32 %s5866_s22, 4  ;;  %s7183_s19 = sld [smem:[#allocation67_spill]]  ;;  %s774_s3 = int_to_ptr.vmem [resolvable:$true] %s773_s3 }
 0x161   : > { %s5542_s16 = scalar_lea.hbm %s7183_s19, 1024 }
 0x162   : > { %p5543_p8 = scmp.ne.s32.totalorder %s7183_s19, %s5542_s16  ;;  %p5549_p2 = scmp.lt.u32.totalorder %s5542_s16, %s7183_s19 }
 0x164   : > { %p5545_p9 = pnand %p5543_p8, %p7178_p7 }
 0x166   : > { %p5546_p13 = pneg %p5545_p9 }
 0x168   : > { %p5551_p3 = pnand %p5549_p2, %p5546_p13 }
 0x16a   : > { %5554 = shalt.err (!%p5551_p3)
}
 0x16b   : > { %s5555_s6 = scalar_lea.vmem %s774_s3, 1024  ;;  %p5563_p1 = scmp.lt.s32.totalorder %s774_s3, %s774_s3 }
 0x16c   : > { %p5556_p0 = scmp.ne.s32.totalorder %s774_s3, %s5555_s6  ;;  %p5564_p10 = scmp.lt.s32.totalorder %s5555_s6, %s5555_s6 }
 0x16e   : > { %p5558_p4 = pnand %p5556_p0, %p7178_p7  ;;  %p5565_p11 = por %p5564_p10, %p5563_p1 }
 0x170   : > { %p5559_p6 = pneg %p5558_p4 }
 0x172   : > { %p5566_p12 = pnand %p5565_p11, %p5559_p6 }
 0x174   : > { %5569 = shalt.err (!%p5566_p12)
}
 0x175   : > { %4972 = dma.hbm_to_vmem [thread:$0]  (!%p7179_p5), %s7183_s19, 1024, %s774_s3, [#allocation24], %s5860_s12, %s5860_s12, %s5861_s30  }
 0x176   : > { %s4410_s7 = sshll.u32 %s5850_s28, 8  ;;  %s804_s25 = scalar_lea.vmem [#allocation2], %s4136_s4 }
 0x177   : > { %s811_s15 = sshll.u32 %s804_s25, 4  ;;  %s7184_s8 = sld [smem:[#allocation49_spill]]  ;;  %s6379_s15 = int_to_ptr.vmem [resolvable:$true] %s811_s15 }
 0x178   : > { %s801_s1 = scalar_lea.sflag [#allocation3], %s6198_s21  ;;  %p7185_p5 = scmp.ne.s32.totalorder %s7176_s14, 0 }
 0x17d   : > { %s6377_s24 = scalar_lea.hbm %s7184_s8, %s4410_s7  ;;  %s5575_s3 = scalar_lea.hbm %s7184_s8, 768 }
 0x17e   : > { %s5570_s27 = scalar_lea.hbm %s6377_s24, 256  ;;  %p5576_p13 = scmp.lt.u32.totalorder %s6377_s24, %s7184_s8 }
 0x17f   : > { %p5571_p7 = scmp.ne.s32.totalorder %s6377_s24, %s5570_s27  ;;  %p5577_p2 = scmp.lt.u32.totalorder %s5575_s3, %s5570_s27 }
 0x180   : > { %p5579_p0 = scmp.lt.u32.totalorder %s5570_s27, %s6377_s24 }
 0x181   : > { %p5573_p8 = pnand %p5571_p7, %p7185_p5  ;;  %p5578_p3 = por %p5577_p2, %p5576_p13 }
 0x183   : > { %p5574_p9 = pneg %p5573_p8  ;;  %p5580_p4 = por %p5579_p0, %p5578_p3 }
 0x185   : > { %p5581_p6 = pnand %p5580_p4, %p5574_p9 }
 0x187   : > { %5584 = shalt.err (!%p5581_p6)
}
 0x188   : > { %s5585_s22 = scalar_lea.vmem %s6379_s15, 256  ;;  %s5867_s25 = smov [#allocation2]  }
 0x189   : > { %p5586_p1 = scmp.ne.s32.totalorder %s6379_s15, %s5585_s22  ;;  %s5590_s16 = sshll.u32 %s5867_s25, 4  ;;  %s5591_s16 = int_to_ptr.vmem [resolvable:$false] %s5590_s16 }
 0x18a   : > { %s5592_s23 = scalar_lea.vmem %s5591_s16, 512  ;;  %p5593_p12 = scmp.lt.s32.totalorder %s6379_s15, %s5591_s16 }
 0x18b   : > { %p5588_p10 = pnand %p5586_p1, %p7185_p5  ;;  %p5594_p7 = scmp.lt.s32.totalorder %s5592_s23, %s5585_s22 }
 0x18d   : > { %p5589_p11 = pneg %p5588_p10  ;;  %p5595_p8 = por %p5594_p7, %p5593_p12 }
 0x18f   : > { %p5596_p13 = pnand %p5595_p8, %p5589_p11 }
 0x191   : > { %5599 = shalt.err (!%p5596_p13)
}
 0x192   : > { %s5868_s27 = smov 128   ;;  %s5869_s12 = smov 8  }
 0x193   : > { %p7186_p9 = scmp.ne.s32.totalorder %s7174_s2, 0  ;;  %s7187_s6 = sld [smem:[#allocation52_spill]] }
 0x194   : > { %s868_s22 = scalar_lea.vmem [#allocation8], %s4136_s4  ;;  %s4142_s16 = sshll.u32 %s6198_s21, 5 }
 0x195   : > { %4976 = dma.hbm_to_vmem [thread:$0]  (!%p7186_p9), %s6377_s24, 256, %s6379_s15, %s801_s1, %s5868_s27, %s5868_s27, %s5869_s12  }
 0x196   : > { %s875_s25 = sshll.u32 %s868_s22, 4  ;;  %s4413_s23 = sshll.u32 %s5850_s28, 9  ;;  %s6418_s25 = int_to_ptr.vmem [resolvable:$true] %s875_s25 }
 0x197   : > { %s846_s8 = scalar_lea.vmem [#allocation7], %s4142_s16  ;;  %s7188_s17 = sld [smem:[#allocation51_spill]] }
 0x198   : > { %s854_s9 = sshll.u32 %s846_s8, 4  ;;  %s6426_s9 = int_to_ptr.vmem [resolvable:$true] %s854_s9 }
 0x199   : > { %s6413_s0 = scalar_lea.hbm %s7187_s6, %s4410_s7 }
 0x19d   : > { %s6424_s19 = scalar_lea.hbm %s7188_s17, %s4413_s23  ;;  %s5605_s15 = scalar_lea.hbm %s7188_s17, 1536 }
 0x19e   : > { %s5600_s7 = scalar_lea.hbm %s6424_s19, 512  ;;  %p5606_p4 = scmp.lt.u32.totalorder %s6424_s19, %s7188_s17 }
 0x19f   : > { %p5601_p2 = scmp.ne.s32.totalorder %s6424_s19, %s5600_s7  ;;  %p5607_p6 = scmp.lt.u32.totalorder %s5605_s15, %s5600_s7 }
 0x1a0   : > { %p5609_p10 = scmp.lt.u32.totalorder %s5600_s7, %s6424_s19 }
 0x1a1   : > { %p5603_p3 = pnand %p5601_p2, %p7185_p5  ;;  %p5608_p1 = por %p5607_p6, %p5606_p4 }
 0x1a3   : > { %p5604_p0 = pneg %p5603_p3  ;;  %p5610_p11 = por %p5609_p10, %p5608_p1 }
 0x1a5   : > { %p5611_p12 = pnand %p5610_p11, %p5604_p0 }
 0x1a7   : > { %5614 = shalt.err (!%p5611_p12)
}
 0x1a8   : > { %s5615_s11 = scalar_lea.vmem %s6426_s9, 512  ;;  %s5870_s13 = smov [#allocation7]  }
 0x1a9   : > { %p5616_p7 = scmp.ne.s32.totalorder %s6426_s9, %s5615_s11  ;;  %s5620_s1 = sshll.u32 %s5870_s13, 4  ;;  %s5621_s1 = int_to_ptr.vmem [resolvable:$false] %s5620_s1 }
 0x1aa   : > { %s5622_s30 = scalar_lea.vmem %s5621_s1, 1024  ;;  %p5623_p2 = scmp.lt.s32.totalorder %s6426_s9, %s5621_s1 }
 0x1ab   : > { %p5618_p8 = pnand %p5616_p7, %p7185_p5  ;;  %p5624_p3 = scmp.lt.s32.totalorder %s5622_s30, %s5615_s11 }
 0x1ad   : > { %p5619_p13 = pneg %p5618_p8  ;;  %p5625_p4 = por %p5624_p3, %p5623_p2 }
 0x1af   : > { %p5626_p6 = pnand %p5625_p4, %p5619_p13 }
 0x1b1   : > { %5629 = shalt.err (!%p5626_p6)
}
 0x1b2   : > { %4982 = dma.hbm_to_vmem [thread:$0]  (!%p7186_p9), %s6424_s19, 512, %s6426_s9, %s6216_s10, %s5868_s27, %s5868_s27, %s5869_s12  }
 0x1b3   : > { %s7189_s3 = sand.u32 1, %s5850_s28   ;;  %s5630_s16 = scalar_lea.hbm %s6413_s0, 256 }
 0x1b4   : > { %s6455_s22 = scalar_lea.sflag [#allocation9], %s7189_s3  ;;  %p5631_p0 = scmp.ne.s32.totalorder %s6413_s0, %s5630_s16 }
 0x1b5   : > { %s5635_s21 = scalar_lea.hbm %s7187_s6, 768  ;;  %p5636_p11 = scmp.lt.u32.totalorder %s6413_s0, %s7187_s6 }
 0x1b6   : > { %p5633_p1 = pnand %p5631_p0, %p7185_p5  ;;  %p5637_p12 = scmp.lt.u32.totalorder %s5635_s21, %s5630_s16 }
 0x1b7   : > { %p5639_p8 = scmp.lt.u32.totalorder %s5630_s16, %s6413_s0 }
 0x1b8   : > { %p5634_p10 = pneg %p5633_p1  ;;  %p5638_p7 = por %p5637_p12, %p5636_p11 }
 0x1ba   : > { %p5640_p13 = por %p5639_p8, %p5638_p7 }
 0x1bc   : > { %p5641_p2 = pnand %p5640_p13, %p5634_p10 }
 0x1be   : > { %5644 = shalt.err (!%p5641_p2)
}
 0x1bf   : > { %s5645_s9 = scalar_lea.vmem %s6418_s25, 256  ;;  %s5871_s10 = smov [#allocation8]  }
 0x1c0   : > { %p5646_p3 = scmp.ne.s32.totalorder %s6418_s25, %s5645_s9  ;;  %s5650_s19 = sshll.u32 %s5871_s10, 4  ;;  %s5651_s19 = int_to_ptr.vmem [resolvable:$false] %s5650_s19 }
 0x1c1   : > { %s5652_s8 = scalar_lea.vmem %s5651_s19, 512  ;;  %p5653_p0 = scmp.lt.s32.totalorder %s6418_s25, %s5651_s19 }
 0x1c2   : > { %p5648_p4 = pnand %p5646_p3, %p7185_p5  ;;  %p5654_p1 = scmp.lt.s32.totalorder %s5652_s8, %s5645_s9 }
 0x1c4   : > { %p5649_p6 = pneg %p5648_p4  ;;  %p5655_p11 = por %p5654_p1, %p5653_p0 }
 0x1c6   : > { %p5656_p12 = pnand %p5655_p11, %p5649_p6 }
 0x1c8   : > { %5659 = shalt.err (!%p5656_p12)
}
 0x1c9   : > { %4985 = dma.hbm_to_vmem [thread:$0]  (!%p7186_p9), %s6413_s0, 256, %s6418_s25, %s6455_s22, %s5868_s27, %s5868_s27, %s5869_s12  }
 0x1ca   : > { %s7190_s14 = sld [smem:[#allocation44_spill]] }
 0x1d0   : > { %p7191_p5 = scmp.ne.s32.totalorder %s7190_s14, 0 }
 0x1d1   : > { %s6485_s24 = sand.u32 (!%p7191_p5), 1, %s5842_s26   ;;  %p7192_p10 = scmp.ne.s32.totalorder (!%p7191_p5), %s7170_s18, 0 }
 0x1d2   : > { %887 = sbr.rel (%p7191_p5) target bundleno = 3441 (0xd71), region = 104  ;;  %s6488_s11 = sshll.u32 (!%p7191_p5), %s6485_s24, 4 }
 0x1d3   : > { %s890_s2 = scalar_lea.sflag (!%p7191_p5), [#allocation3], %s6485_s24  ;;  %s893_s13 = scalar_lea.vmem (!%p7191_p5), [#allocation2], %s6488_s11 }
 0x1d9   : > { %5789 = dma.done.wait (%p7192_p10), %s890_s2, 256  }
 0x1da   : > { %5791 = vsyncadd (%p7192_p10), %s890_s2, 4294967040  ;;  %s6497_s27 = sand.u32 1, %s6026_s29   ;;  %s4151_s12 = sshll.u32 %s6485_s24, 3 }
 0x1db   : > { %s899_s0 = scalar_lea.sflag [#allocation6], %s6497_s27  ;;  %s6501_s25 = scalar_lea.vmem [#allocation5], %s4151_s12 }
 0x1dc   : > { %5793 = dma.done.wait (%p7192_p10), %s899_s0, 640  }
 0x1dd   : > { %5795 = vsyncadd (%p7192_p10), %s899_s0, 4294966656  ;;  %s6508_s1 = sshll.u32 %s6485_s24, 5  ;;  %s917_s3 = scalar_lea.sflag [#allocation9], %s6497_s27 }
 0x1de   : > { %s6511_s30 = scalar_lea.vmem [#allocation7], %s6508_s1  ;;  %s920_s22 = scalar_lea.vmem [#allocation8], %s6488_s11 }
 0x1df   : > { %5797 = dma.done.wait (%p7192_p10), %s917_s3, 256  }
 0x1e0   : > { %5799 = vsyncadd (%p7192_p10), %s917_s3, 4294967040  ;;  %p7193_p9 = scmp.eq.s32.totalorder %s6026_s29, 0 }
 0x1e2   : > { %5801 = dma.done.wait (%p7193_p9), [#allocation9], 16   ;;  %p7194_p7 = pmov %p7193_p9 }
 0x1e4   : > { %5803 = vsyncadd (%p7194_p7), [#allocation9], 4294967280  ;;  %p7195_p8 = pmov %p7194_p7 }
 0x1e5   : > { %p7196_p13 = pmov %p7194_p7 }
 0x1e6   : > { %5805 = dma.done.wait (%p7195_p8), [#allocation12], 6160  }
 0x1e7   : > { %5807 = vsyncadd (%p7196_p13), [#allocation12], 4294961136  ;;  %p7197_p2 = pmov %p7194_p7 }
 0x1e9   : > { %5809 = dma.done.wait (%p7197_p2), [#allocation15], 3120   ;;  %p7198_p3 = pmov %p7197_p2 }
 0x1ea   : > { %p7199_p4 = pmov %p7197_p2 }
 0x1eb   : > { %5811 = vsyncadd (%p7198_p3), [#allocation15], 4294964176 }
 0x1ec   : > { %5813 = dma.done.wait (%p7199_p4), [#allocation18], 6192   ;;  %p7200_p6 = pmov %p7197_p2 }
 0x1ed   : > { %p7201_p0 = pmov %p7197_p2 }
 0x1ee   : > { %5815 = vsyncadd (%p7200_p6), [#allocation18], 4294961104 }
 0x1ef   : > { %5817 = dma.done.wait (%p7201_p0), [#allocation21], 1072   ;;  %p7202_p1 = pmov %p7201_p0 }
 0x1f0   : > { %p7203_p11 = pmov %p7201_p0 }
 0x1f1   : > { %5819 = vsyncadd (%p7202_p1), [#allocation21], 4294966224 }
 0x1f2   : > { %5821 = dma.done.wait (%p7203_p11), [#allocation24], 1024   ;;  %p7204_p12 = pmov %p7201_p0 }
 0x1f3   : > { %v5872_v0 = vmov 0.0   ;;  %vm5873_vm0 = vmmov 0   ;;  %s4168_s18 = sshll.u32 %s6026_s29, 1  ;;  %vm1100_vm1 = vcmask 1043456   ;;  %s7205_s21 = sld [smem:[#allocation55_spill]]  ;;  %v1082_v2 = vld [vmem:[%s893_s13] sm:$0xff] }
 0x1f4   : > { %5823 = vsyncadd (%p7204_p12), [#allocation24], 4294966272  ;;  %4677 = vmatprep.subr.bf16.mxu1 %v5872_v0  ;;  %4679 = vmatprep.mubr.msk.bf16.mxu1 %vm5873_vm0, %v5872_v0  ;;  %p1062_p5 = scmp.lt.s32.totalorder %s4168_s18, 5  ;;  %v1083_v3 = vld [vmem:[%s893_s13 + $0x8] sm:$0xff]  ;;  %s7206_s9 = sld [smem:[#allocation48_spill]]  ;;  %vm1093_vm2 = vcmask 64512  }
 0x1f5   : > { %v1084_v5 = vpack.c.bf16 %v1083_v3, %v1082_v2  ;;  %s7207_s14 = sld [smem:[#allocation53_spill]]  ;;  %v5074_v14 = vld [vmem:[%s6501_s25] sm:$0xff]   ;;  %vm1286_vm3 = vcmask 130048   ;;  %v4174_v16 = vld [vmem:[#allocation11] ss:$0 sm:$0xff]  ;;  %v5075_v42 = vld [vmem:[#allocation13 + $0x40] sm:$0xff]  }
 0x1f6   : > { %s7228_s18 = smov (!%p1062_p5, %s4168_s18), 5  ;;  %1270 = vxpose.xlu0.c.b16.start.end [1/1] (short) (narrow) %v5074_v14, 32  ;;  %v4171_v18 = vld [vmem:[#allocation10] ss:$0 sm:$0xff]  ;;  %vm1224_vm4 = vcmask 261120   ;;  %v5076_v43 = vld [vmem:[#allocation13] sm:$0xff]  }
 0x1f7   : > { %s4415_s16 = sshll.u32 %s7228_s18, 4  ;;  %v5077_v44 = vld [vmem:[#allocation13 + $0x48] sm:$0xff]   ;;  %v5079_v46 = vld [vmem:[#allocation13 + $0x50] sm:$0xff]   ;;  %v5081_v48 = vld [vmem:[#allocation13 + $0x58] sm:$0xff]   ;;  %s7208_s12 = sld [smem:[#allocation63_spill]] }
 0x1f8   : > { %v5078_v45 = vld [vmem:[#allocation13 + $0x8] sm:$0xff]   ;;  %v5080_v47 = vld [vmem:[#allocation13 + $0x10] sm:$0xff]   ;;  %v5082_v49 = vld [vmem:[#allocation13 + $0x18] sm:$0xff]   ;;  %s7209_s0 = sld [smem:[#allocation64_spill]]  ;;  %s6855_s4 = scalar_lea.vmem [#allocation28], %s6508_s1 }
 0x1f9   : > { %v1157_v1 = vld [vmem:[%s7205_s21] sm:$0xf]  ;;  %v5083_v50 = vld [vmem:[#allocation13 + $0x60] sm:$0xff]   ;;  %v5087_v54 = vld [vmem:[#allocation13 + $0x70] sm:$0xff]   ;;  %s7210_s21 = sld [smem:[#allocation66_spill]]  ;;  %s4418_s19 = sshll.u32 %s6026_s29, 8 }
 0x1fa   : > { %s1066_s10 = scalar_lea.vmem %s7206_s9, %s4415_s16  ;;  %v1169_v4 = vsel %vm1100_vm1, %v1157_v1, 0  ;;  %v5084_v51 = vld [vmem:[#allocation13 + $0x20] sm:$0xff]   ;;  %v5085_v52 = vld [vmem:[#allocation13 + $0x68] sm:$0xff]   ;;  %v5088_v55 = vld [vmem:[#allocation13 + $0x30] sm:$0xff]   ;;  %s7211_s9 = sld [smem:[#allocation68_spill]] }
 0x1fb   : > { %v1085_v6 = vld [vmem:[%s7207_s14] sm:$0xf]  ;;  %v1077_v8 = vld [vmem:[%s1066_s10 + $0x8] sm:$0xff]  ;;  %4678 = vmatpush3.bf16.msra.mxu1 %v1169_v4  ;;  %v1078_v11 = vld [vmem:[%s1066_s10 + $0x10] sm:$0xff]  ;;  %s7212_s2 = sld [smem:[#allocation72_spill]]  ;;  %p7213_p9 = scmp.ne.s32.totalorder %s7171_s20, 0 }
 0x1fc   : > { %v1076_v7 = vld [vmem:[%s1066_s10] sm:$0xff]  ;;  %4885 = vmatprep.subr.msk.bf16.mxu0 %vm1100_vm1, %v1085_v6  ;;  %v1102_v9 = vsel %vm1100_vm1, %v1085_v6, 0  ;;  %v1079_v12 = vld [vmem:[%s1066_s10 + $0x18] sm:$0xff]  ;;  %v5089_v56 = vld [vmem:[#allocation13 + $0x78] sm:$0xff]   ;;  %s6869_s10 = scalar_lea.vmem [#allocation29], %s6488_s11  ;;  %s5874_s18 = smov [#allocation29]  }
 0x1fd   : > { %v1080_v10 = vpack.c.bf16 %v1077_v8, %v1076_v7  ;;  %4672 = vmatpush3.bf16.msra.mxu0 %v1102_v9  ;;  %v1081_v13 = vpack.c.bf16 %v1079_v12, %v1078_v11  ;;  %v5086_v53 = vld [vmem:[#allocation13 + $0x28] sm:$0xff]   ;;  %v5090_v57 = vld [vmem:[#allocation13 + $0x38] sm:$0xff]   ;;  %v5093_v7 = vld [vmem:[#allocation19 + $0x48] sm:$0xff]   ;;  %s5664_s16 = sshll.u32 %s5874_s18, 4  ;;  %s5665_s16 = int_to_ptr.vmem [resolvable:$false] %s5664_s16 }
 0x1fe   : > { %4683 = vmatprep.subr.bf16.mxu0 %v5872_v0  ;;  %4680 = vmatmul.mubr.msk.bf16.vlgmr.msra.gmra.mrb[0].mxu1 %vm1093_vm2, %v1084_v5  ;;  %v5091_v58 = vld [vmem:[#allocation19 + $0x40] sm:$0xff]   ;;  %v5109_v61 = vld [vmem:[#allocation16 + $0x10] sm:$0xff]   ;;  %v5110_v62 = vld [vmem:[#allocation16 + $0x18] sm:$0xff]   ;;  %s5666_s23 = scalar_lea.vmem %s5665_s16, 512 }
 0x1ff   : > { %4673 = vmatprep.mubr.msk.bf16.mxu0 %vm1093_vm2, %v1080_v10  ;;  %v5107_v59 = vld [vmem:[#allocation16] sm:$0xff]   ;;  %v5108_v60 = vld [vmem:[#allocation16 + $0x8] sm:$0xff]  }
 0x200   : > { %4674 = vmatmul.mubr.msk.bf16.vlgmr.msra.gmra.mrb[0].mxu0 %vm1093_vm2, %v1081_v13  ;;  %v5092_v6 = vld [vmem:[#allocation19] sm:$0xff]   ;;  %v5094_v11 = vld [vmem:[#allocation19 + $0x8] sm:$0xff]  }
 0x201   : > { %4687 = vmatprep.mubr.msk.bf16.mxu0 %vm5873_vm0, %v5872_v0  ;;  %s6900_s13 = scalar_lea.hbm %s7212_s2, %s4418_s19 }
 0x25c   : > { %v6564_v15 = vpop.trf.xlu0 }
 0x25d   : > { %4693 = vmatprep.mubr.msk.bf16.mxu1 %vm1286_vm3, %v6564_v15 }
 0x260   : > { %v6600_v40 = vpop.trf.xlu0 }
 0x2d1   : > { %v1205_v17 = vpop.f32.mrb[0].mxu1 }
 0x2d2   : > { %v6568_v19 = vadd.f32 %v4174_v16, %v1205_v17  ;;  %v4681_v20 = vpop.f32.mrb[1].mxu1  ;;  %v5097_v17 = vld [vmem:[#allocation19 + $0x58] sm:$0xff]  }
 0x2d3   : > { %v4675_v21 = vpop.f32.mrb[0].mxu0  ;;  %v1208_v22 = vpop.f32.mrb[2].mxu1  ;;  %v5099_v20 = vld [vmem:[#allocation19 + $0x60] sm:$0xff]  }
 0x2d4   : > { %v1138_v23 = vpop.f32.mrb[1].mxu0  ;;  %v6570_v24 = vadd.f32 %v4174_v16, %v1208_v22  ;;  %v4682_v25 = vpop.f32.mrb[3].mxu1  ;;  %v6572_v26 = vadd.f32 %v4675_v21, %v4171_v18  ;;  %v1212_v31 = vmax.f32 %v6568_v19, 0.0  ;;  %v5096_v16 = vld [vmem:[#allocation19 + $0x10] sm:$0xff]   ;;  %v5100_v21 = vld [vmem:[#allocation19 + $0x20] sm:$0xff]   ;;  %v5101_v22 = vld [vmem:[#allocation19 + $0x68] sm:$0xff]  }
 0x2d5   : > { %v6574_v27 = vadd.f32 %v4171_v18, %v1138_v23  ;;  %v4676_v28 = vpop.f32.mrb[2].mxu0  ;;  %v5102_v23 = vld [vmem:[#allocation19 + $0x28] sm:$0xff]   ;;  %v5103_v25 = vld [vmem:[#allocation19 + $0x70] sm:$0xff]  }
 0x2d6   : > { %v6576_v29 = vadd.f32 %v4676_v28, %v4171_v18  ;;  %v1141_v30 = vpop.f32.mrb[3].mxu0  ;;  %v1213_v32 = vmax.f32 %v6570_v24, 0.0  ;;  %v1155_v36 = vmax.f32 %v6572_v26, 0.0  ;;  %v5104_v28 = vld [vmem:[#allocation19 + $0x30] sm:$0xff]   ;;  %v5126_v26 = vld [vmem:[#allocation13 + $0x88] sm:$0xff]  }
 0x2d7   : > { %v1153_v33 = vmax.f32 %v6574_v27, 0.0  ;;  %v6581_v34 = vadd.f32 %v4171_v18, %v1141_v30  ;;  %v5098_v18 = vld [vmem:[#allocation19 + $0x18] sm:$0xff]   ;;  %v5137_v19 = vld [vmem:[#allocation13 + $0xf8] sm:$0xff]   ;;  %v5139_v24 = vld [vmem:[#allocation19 + $0xc0] sm:$0xff]  }
 0x2d8   : > { %v6587_v35 = vpack.c.bf16 %v1213_v32, %v1212_v31  ;;  %v1156_v37 = vmax.f32 %v6576_v29, 0.0  ;;  %v5105_v30 = vld [vmem:[#allocation19 + $0x78] sm:$0xff]  }
 0x2d9   : > { %v1154_v38 = vmax.f32 %v6581_v34, 0.0  ;;  %v5123_v27 = vld [vmem:[#allocation13 + $0xc0] sm:$0xff]   ;;  %v5125_v34 = vld [vmem:[#allocation13 + $0xc8] sm:$0xff]  }
 0x2da   : > { %4691 = vmatprep.subr.bf16.mxu1 %v6587_v35  ;;  %v6606_v41 = vpack.c.bf16 %v1156_v37, %v1155_v36  ;;  %v5124_v29 = vld [vmem:[#allocation13 + $0x80] sm:$0xff]  }
 0x2db   : > { %v6597_v39 = vpack.c.bf16 %v1154_v38, %v1153_v33  ;;  %4692 = vmatpush3.bf16.msra.mxu1 %v6587_v35 }
 0x2dc   : > { %4697 = vmatprep.subr.bf16.mxu1 %v5107_v59 }
 0x2dd   : > { %4684 = vmatpush3.bf16.msra.mxu0 %v6597_v39 }
 0x2de   : > { %4685 = vmatprep.subr.bf16.mxu0 %v5872_v0  ;;  %4694 = vmatmul.mubr.msk.bf16.vlgmr.msra.gmra.mrb[4].mxu1 %vm1286_vm3, %v6600_v40 }
 0x2df   : > { %4698 = vmatpush3.bf16.msra.mxu1 %v5107_v59 }
 0x2e0   : > { %4699 = vmatprep.subr.bf16.mxu1 %v5108_v60 }
 0x2e1   : > { %4686 = vmatpush3.bf16.msra.mxu0 %v6606_v41 }
 0x2e2   : > { %4433 = vmatprep.subr.bf16.mxu0 %v5075_v42  ;;  %v5112_v42 = vld [vmem:[#allocation16 + $0x28] sm:$0xff]  }
 0x2e3   : > { %4700 = vmatpush3.bf16.msra.mxu1 %v5108_v60 }
 0x2e4   : > { %4688 = vmatmul.mubr.msk.bf16.vlgmr.msra.gmra.mrb[4].mxu0 %vm1224_vm4, %v5074_v14  ;;  %4701 = vmatprep.subr.bf16.mxu1 %v5109_v61  ;;  %v5095_v14 = vld [vmem:[#allocation19 + $0x50] sm:$0xff]  }
 0x2e5   : > { %4434 = vmatpush3.bf16.msra.mxu0 %v5076_v43  ;;  %v5113_v43 = vld [vmem:[#allocation16 + $0x30] sm:$0xff]  }
 0x2e6   : > { %4435 = vmatprep.subr.bf16.mxu0 %v5077_v44  ;;  %v5114_v44 = vld [vmem:[#allocation16 + $0x38] sm:$0xff]  }
 0x2e7   : > { %4702 = vmatpush3.bf16.msra.mxu1 %v5109_v61 }
 0x2e8   : > { %4703 = vmatprep.subr.bf16.mxu1 %v5110_v62 }
 0x2e9   : > { %4436 = vmatpush3.bf16.msra.mxu0 %v5078_v45 }
 0x2ea   : > { %4437 = vmatprep.subr.bf16.mxu0 %v5079_v46  ;;  %v4180_v46 = vld [vmem:[#allocation14] ss:$0 sm:$0xff] }
 0x2eb   : > { %4704 = vmatpush3.bf16.msra.mxu1 %v5110_v62 }
 0x2ed   : > { %4438 = vmatpush3.bf16.msra.mxu0 %v5080_v47 }
 0x2ee   : > { %4439 = vmatprep.subr.bf16.mxu0 %v5081_v48 }
 0x2f1   : > { %4440 = vmatpush3.bf16.msra.mxu0 %v5082_v49 }
 0x2f2   : > { %4441 = vmatprep.subr.bf16.mxu0 %v5083_v50 }
 0x2f5   : > { %4442 = vmatpush3.bf16.msra.mxu0 %v5084_v51 }
 0x2f6   : > { %4443 = vmatprep.subr.bf16.mxu0 %v5085_v52 }
 0x2f9   : > { %4444 = vmatpush3.bf16.msra.mxu0 %v5086_v53 }
 0x2fa   : > { %4445 = vmatprep.subr.bf16.mxu0 %v5087_v54 }
 0x2fd   : > { %4446 = vmatpush3.bf16.msra.mxu0 %v5088_v55 }
 0x2fe   : > { %4447 = vmatprep.subr.bf16.mxu0 %v5089_v56 }
 0x301   : > { %4448 = vmatpush3.bf16.msra.mxu0 %v5090_v57 }
 0x302   : > { %4471 = vmatprep.subr.bf16.mxu0 %v5091_v58 }
 0x3b1   : > { %v4695_v63 = vpop.f32.mrb[4].mxu1 }
 0x3b2   : > { %v1327_v1 = vpop.f32.mrb[5].mxu1 }
 0x3b3   : > { %v4696_v2 = vpop.f32.mrb[6].mxu1 }
 0x3b4   : > { %v1343_v3 = vpack.c.bf16 %v4696_v2, %v4695_v63  ;;  %v1330_v4 = vpop.f32.mrb[7].mxu1 }
 0x3b5   : > { %v1342_v5 = vpack.c.bf16 %v1330_v4, %v1327_v1 }
 0x3b7   : > { %v1262_v8 = vpop.f32.mrb[4].mxu0  ;;  %1512 = vmatprep.mubr.bf16.mxu0 %v1342_v5  ;;  %v5116_v5 = vld [vmem:[%s7208_s12 + $0x8] sm:$0xff]  }
 0x3b8   : > { %v4689_v9 = vpop.f32.mrb[5].mxu0  ;;  %1513 = vmatmul.mubr.bf16.vlgmr.msra.gmra.mrb[8].mxu0 %v6597_v39  ;;  %v5106_v39 = vld [vmem:[#allocation19 + $0x38] sm:$0xff]  }
 0x3b9   : > { %v1265_v10 = vpop.f32.mrb[6].mxu0  ;;  %4472 = vmatpush3.bf16.msra.mxu0 %v5092_v6  ;;  %1520 = vmatprep.mubr.bf16.mxu0 %v1343_v3  ;;  %v5115_v3 = vld [vmem:[%s7208_s12] sm:$0xff]   ;;  %v5117_v6 = vld [vmem:[%s7208_s12 + $0x10] sm:$0xff]   ;;  %v4206_v9 = vld [vmem:[#allocation20] ss:$0 sm:$0xff] }
 0x3ba   : > { %v1344_v12 = vpack.c.bf16 %v1265_v10, %v1262_v8  ;;  %v4690_v13 = vpop.f32.mrb[7].mxu0  ;;  %4473 = vmatprep.subr.bf16.mxu0 %v5093_v7  ;;  %v5118_v7 = vld [vmem:[%s7208_s12 + $0x18] sm:$0xff]  }
 0x3bd   : > { %4474 = vmatpush3.bf16.msra.mxu0 %v5094_v11  ;;  %v5119_v11 = vld [vmem:[%s7208_s12 + $0x20] sm:$0xff]  }
 0x3be   : > { %4475 = vmatprep.subr.bf16.mxu0 %v5095_v14 }
 0x3c0   : > { %1521 = vmatmul.mubr.bf16.gmra.mrb[12].mxu0 %v6606_v41  ;;  %v5111_v41 = vld [vmem:[#allocation16 + $0x20] sm:$0xff]  }
 0x3c1   : > { %4476 = vmatpush3.bf16.msra.mxu0 %v5096_v16  ;;  %1822 = vmatprep.mubr.bf16.mxu0 %v1344_v12 }
 0x3c2   : > { %4477 = vmatprep.subr.bf16.mxu0 %v5097_v17  ;;  %4705 = vmatprep.subr.bf16.mxu1 %v5111_v41 }
 0x3c3   : > { %4706 = vmatpush3.bf16.msra.mxu1 %v5111_v41 }
 0x3c4   : > { %4707 = vmatprep.subr.bf16.mxu1 %v5112_v42 }
 0x3c5   : > { %4478 = vmatpush3.bf16.msra.mxu0 %v5098_v18  ;;  %v5120_v18 = vld [vmem:[%s7208_s12 + $0x28] sm:$0xff]  }
 0x3c6   : > { %4479 = vmatprep.subr.bf16.mxu0 %v5099_v20 }
 0x3c7   : > { %4708 = vmatpush3.bf16.msra.mxu1 %v5112_v42 }
 0x3c8   : > { %4709 = vmatprep.subr.bf16.mxu1 %v5113_v43 }
 0x3c9   : > { %4480 = vmatpush3.bf16.msra.mxu0 %v5100_v21 }
 0x3ca   : > { %4481 = vmatprep.subr.bf16.mxu0 %v5101_v22 }
 0x3cb   : > { %4710 = vmatpush3.bf16.msra.mxu1 %v5113_v43 }
 0x3cc   : > { %4711 = vmatprep.subr.bf16.mxu1 %v5114_v44 }
 0x3cd   : > { %4482 = vmatpush3.bf16.msra.mxu0 %v5102_v23  ;;  %v5121_v23 = vld [vmem:[%s7208_s12 + $0x30] sm:$0xff]  }
 0x3ce   : > { %4483 = vmatprep.subr.bf16.mxu0 %v5103_v25 }
 0x3cf   : > { %4712 = vmatpush3.bf16.msra.mxu1 %v5114_v44 }
 0x3d0   : > { %4717 = vmatprep.subr.bf16.mxu1 %v5872_v0 }
 0x3d1   : > { %4484 = vmatpush3.bf16.msra.mxu0 %v5104_v28  ;;  %v5122_v28 = vld [vmem:[%s7208_s12 + $0x38] sm:$0xff]  }
 0x3d2   : > { %4485 = vmatprep.subr.bf16.mxu0 %v5105_v30  ;;  %v4197_v30 = vld [vmem:[#allocation17] ss:$0 sm:$0xff] }
 0x3d5   : > { %4486 = vmatpush3.bf16.msra.mxu0 %v5106_v39 }
 0x3d6   : > { %4737 = vmatprep.subr.bf16.mxu0 %v5872_v0 }
 0x3d8   : > { %1823 = vmatmul.mubr.bf16.vlgmr.msra.gmra.mrb[16].mxu0 %v6587_v35 }
 0x3d9   : > { %4741 = vmatprep.mubr.msk.bf16.mxu0 %vm5873_vm0, %v5872_v0 }
 0x48b   : > { %v4449_v45 = vpop.f32.mrb[8].mxu0 }
 0x48c   : > { %v4450_v35 = vpop.f32.mrb[9].mxu0 }
 0x48d   : > { %v4451_v47 = vadd.f32 %v4450_v35, %v4449_v45  ;;  %v4452_v48 = vpop.f32.mrb[10].mxu0 }
 0x48e   : > { %v4453_v49 = vpop.f32.mrb[11].mxu0 }
 0x48f   : > { %v1515_v50 = vadd.f32 %v4451_v47, %v4180_v46  ;;  %v4454_v51 = vadd.f32 %v4453_v49, %v4452_v48 }
 0x491   : > { %v1518_v52 = vadd.f32 %v4454_v51, %v4180_v46  ;;  %v1529_v53 = vmax.f32 %v1515_v50, 0.0 }
 0x493   : > { %v1530_v54 = vmax.f32 %v1518_v52, 0.0  ;;  %v4455_v55 = vpop.f32.mrb[12].mxu0  ;;  %v5129_v52 = vld [vmem:[#allocation13 + $0xd8] sm:$0xff]  }
 0x494   : > { %v4456_v56 = vpop.f32.mrb[13].mxu0 }
 0x495   : > { %v4457_v57 = vadd.f32 %v4456_v56, %v4455_v55  ;;  %v4458_v58 = vpop.f32.mrb[14].mxu0  ;;  %v1533_v59 = vpack.c.bf16 %v1530_v54, %v1529_v53  ;;  %v5130_v53 = vld [vmem:[#allocation13 + $0x98] sm:$0xff]   ;;  %v5131_v54 = vld [vmem:[#allocation13 + $0xe0] sm:$0xff]   ;;  %v4223_v55 = vld [vmem:[%s7209_s0] ss:$0 sm:$0xff] }
 0x496   : > { %v4459_v60 = vpop.f32.mrb[15].mxu0  ;;  %v5132_v56 = vld [vmem:[#allocation13 + $0xa0] sm:$0xff]  }
 0x497   : > { %v1523_v61 = vadd.f32 %v4457_v57, %v4180_v46  ;;  %v4460_v62 = vadd.f32 %v4459_v60, %v4458_v58  ;;  %4713 = vmatprep.mubr.bf16.mxu1 %v1533_v59  ;;  %v5133_v57 = vld [vmem:[#allocation13 + $0xe8] sm:$0xff]  }
 0x499   : > { %v1526_v63 = vadd.f32 %v4460_v62, %v4180_v46  ;;  %v1531_v1 = vmax.f32 %v1523_v61, 0.0  ;;  %v5134_v62 = vld [vmem:[#allocation13 + $0xa8] sm:$0xff]  }
 0x49b   : > { %v1532_v2 = vmax.f32 %v1526_v63, 0.0 }
 0x49d   : > { %v1534_v4 = vpack.c.bf16 %v1532_v2, %v1531_v1  ;;  %v5135_v2 = vld [vmem:[#allocation13 + $0xf0] sm:$0xff]  }
 0x49f   : > { %4714 = vmatmul.mubr.bf16.vlgmr.msra.gmra.mrb[8].mxu1 %v1534_v4 }
 0x4a0   : > { %4718 = vmatpush3.bf16.msra.mxu1 %v5115_v3  ;;  %4733 = vmatprep.mubr.msk.bf16.mxu1 %vm5873_vm0, %v5872_v0 }
 0x4a1   : > { %4719 = vmatprep.subr.bf16.mxu1 %v5872_v0 }
 0x4a4   : > { %4720 = vmatpush3.bf16.msra.mxu1 %v5116_v5  ;;  %v5136_v5 = vld [vmem:[#allocation13 + $0xb0] sm:$0xff]  }
 0x4a5   : > { %4721 = vmatprep.subr.bf16.mxu1 %v5872_v0 }
 0x4a8   : > { %4722 = vmatpush3.bf16.msra.mxu1 %v5117_v6 }
 0x4a9   : > { %4723 = vmatprep.subr.bf16.mxu1 %v5872_v0 }
 0x4ab   : > { %v4487_v8 = vpop.f32.mrb[16].mxu0 }
 0x4ac   : > { %v4488_v10 = vpop.f32.mrb[17].mxu0  ;;  %4724 = vmatpush3.bf16.msra.mxu1 %v5118_v7  ;;  %v5156_v7 = vld [vmem:[#allocation16 + $0x48] sm:$0xff]  }
 0x4ad   : > { %v4489_v12 = vadd.f32 %v4488_v10, %v4487_v8  ;;  %v4490_v13 = vpop.f32.mrb[18].mxu0  ;;  %4725 = vmatprep.subr.bf16.mxu1 %v5872_v0  ;;  %v5157_v8 = vld [vmem:[#allocation16 + $0x50] sm:$0xff]  }
 0x4ae   : > { %v4491_v14 = vpop.f32.mrb[19].mxu0 }
 0x4af   : > { %v1825_v16 = vadd.f32 %v4489_v12, %v4206_v9  ;;  %v4492_v17 = vadd.f32 %v4491_v14, %v4490_v13 }
 0x4b0   : > { %4726 = vmatpush3.bf16.msra.mxu1 %v5119_v11 }
 0x4b1   : > { %v1828_v20 = vadd.f32 %v4492_v17, %v4206_v9  ;;  %4727 = vmatprep.subr.bf16.mxu1 %v5872_v0  ;;  %v1831_v21 = vmax.f32 %v1825_v16, 0.0  ;;  %v5158_v9 = vld [vmem:[#allocation16 + $0x58] sm:$0xff]  }
 0x4b3   : > { %v1832_v22 = vmax.f32 %v1828_v20, 0.0 }
 0x4b4   : > { %4728 = vmatpush3.bf16.msra.mxu1 %v5120_v18 }
 0x4b5   : > { %v1833_v25 = vpack.c.bf16 %v1832_v22, %v1831_v21  ;;  %4729 = vmatprep.subr.bf16.mxu1 %v5872_v0 }
 0x4b8   : > { %4730 = vmatpush3.bf16.msra.mxu1 %v5121_v23  ;;  %v5140_v23 = vld [vmem:[#allocation19 + $0x80] sm:$0xff]  }
 0x4b9   : > { %4731 = vmatprep.subr.bf16.mxu1 %v5872_v0 }
 0x4bc   : > { %4732 = vmatpush3.bf16.msra.mxu1 %v5122_v28  ;;  %v5142_v28 = vld [vmem:[#allocation19 + $0x88] sm:$0xff]  }
 0x4bf   : > { %4734 = vmatmul.mubr.bf16.vlgmr.msra.gmra.mrb[12].mxu1 %v1833_v25  ;;  %v5141_v25 = vld [vmem:[#allocation19 + $0xc8] sm:$0xff]  }
 0x4c0   : > { %4747 = vmatprep.mubr.msk.bf16.mxu1 %vm1286_vm3, %v6564_v15 }
 0x572   : > { %v4715_v39 = vpop.f32.mrb[8].mxu1 }
 0x573   : > { %v1640_v41 = vpop.f32.mrb[9].mxu1  ;;  %v1649_v35 = vadd.f32 %v4715_v39, %v4197_v30  ;;  %v5144_v39 = vld [vmem:[#allocation19 + $0x90] sm:$0xff]  }
 0x574   : > { %v1641_v42 = vadd.f32 %v4197_v30, %v1640_v41  ;;  %v4716_v43 = vpop.f32.mrb[10].mxu1  ;;  %v5145_v41 = vld [vmem:[#allocation19 + $0xd8] sm:$0xff]  }
 0x575   : > { %v1643_v44 = vpop.f32.mrb[11].mxu1  ;;  %v1652_v45 = vadd.f32 %v4716_v43, %v4197_v30  ;;  %v6674_v51 = vadd.f32 %v1649_v35, %v1155_v36  ;;  %v5127_v36 = vld [vmem:[#allocation13 + $0xd0] sm:$0xff]   ;;  %v5147_v43 = vld [vmem:[#allocation19 + $0xe0] sm:$0xff]   ;;  %v5151_v35 = vld [vmem:[#allocation19 + $0xf0] sm:$0xff]  }
 0x576   : > { %v1644_v46 = vadd.f32 %v4197_v30, %v1643_v44  ;;  %v6658_v47 = vadd.f32 %v1641_v42, %v1153_v33  ;;  %v5143_v30 = vld [vmem:[#allocation19 + $0xd0] sm:$0xff]   ;;  %v5146_v42 = vld [vmem:[#allocation19 + $0x98] sm:$0xff]   ;;  %v5148_v44 = vld [vmem:[#allocation19 + $0xa0] sm:$0xff]  }
 0x577   : > { %v6666_v49 = vadd.f32 %v1652_v45, %v1156_v37  ;;  %v6684_v37 = vld [vmem:[%s6501_s25] sm:$0xff]   ;;  %s3721_s25 = scalar_lea.sflag [#allocation30], %s6485_s24 }
 0x578   : > { %v6662_v48 = vadd.f32 %v1644_v46, %v1154_v38  ;;  %v5128_v38 = vld [vmem:[#allocation13 + $0x90] sm:$0xff]  }
 0x579   : > { %v6680_v33 = vpack.c.bf16 %v6666_v49, %v6674_v51  ;;  %v5149_v45 = vld [vmem:[#allocation19 + $0xe8] sm:$0xff]  }
 0x57a   : > { %v6670_v50 = vpack.c.bf16 %v6662_v48, %v6658_v47  ;;  %v5150_v46 = vld [vmem:[#allocation19 + $0xa8] sm:$0xff]  }
 0x57c   : > { %4738 = vmatpush3.bf16.msra.mxu0 %v6670_v50 }
 0x57d   : > { %4739 = vmatprep.subr.bf16.mxu0 %v5872_v0 }
 0x580   : > { %4740 = vmatpush3.bf16.msra.mxu0 %v6680_v33 }
 0x581   : > { %4508 = vmatprep.subr.bf16.mxu0 %v5123_v27  ;;  %v5153_v27 = vld [vmem:[#allocation19 + $0xf8] sm:$0xff]  }
 0x583   : > { %4742 = vmatmul.mubr.msk.bf16.vlgmr.msra.gmra.mrb[20].mxu0 %vm1224_vm4, %v6684_v37 }
 0x584   : > { %4509 = vmatpush3.bf16.msra.mxu0 %v5124_v29  ;;  %v5154_v29 = vld [vmem:[#allocation19 + $0xb8] sm:$0xff]  }
 0x585   : > { %4510 = vmatprep.subr.bf16.mxu0 %v5125_v34  ;;  %v5160_v34 = vld [vmem:[#allocation16 + $0x68] sm:$0xff]  }
 0x588   : > { %4511 = vmatpush3.bf16.msra.mxu0 %v5126_v26  ;;  %v5161_v26 = vld [vmem:[#allocation16 + $0x70] sm:$0xff]  }
 0x589   : > { %4512 = vmatprep.subr.bf16.mxu0 %v5127_v36  ;;  %v5162_v36 = vld [vmem:[#allocation16 + $0x78] sm:$0xff]  }
 0x58c   : > { %4513 = vmatpush3.bf16.msra.mxu0 %v5128_v38 }
 0x58d   : > { %4514 = vmatprep.subr.bf16.mxu0 %v5129_v52  ;;  %v4235_v52 = vld [vmem:[#allocation14 + $0x1] ss:$0 sm:$0xff] }
 0x590   : > { %4515 = vmatpush3.bf16.msra.mxu0 %v5130_v53 }
 0x591   : > { %4516 = vmatprep.subr.bf16.mxu0 %v5131_v54 }
 0x592   : > { %v1939_v58 = vpop.f32.mrb[12].mxu1 }
 0x593   : > { %v1940_v59 = vadd.f32 %v4223_v55, %v1939_v58  ;;  %v4735_v60 = vpop.f32.mrb[13].mxu1 }
 0x594   : > { %v1942_v61 = vpop.f32.mrb[14].mxu1  ;;  %4517 = vmatpush3.bf16.msra.mxu0 %v5132_v56 }
 0x595   : > { %v1943_v63 = vadd.f32 %v4223_v55, %v1942_v61  ;;  %v4736_v1 = vpop.f32.mrb[15].mxu1  ;;  %4518 = vmatprep.subr.bf16.mxu0 %v5133_v57  ;;  %v6693_v3 = vadd.f32 %v1940_v59, %v1212_v31  ;;  %v5138_v31 = vld [vmem:[#allocation13 + $0xb8] sm:$0xff]  }
 0x597   : > { %v6697_v4 = vadd.f32 %v1943_v63, %v1213_v32  ;;  %v5155_v32 = vld [vmem:[#allocation16 + $0x40] sm:$0xff]  }
 0x598   : > { %4519 = vmatpush3.bf16.msra.mxu0 %v5134_v62 }
 0x599   : > { %v6701_v6 = vpack.c.bf16 %v6697_v4, %v6693_v3  ;;  %4520 = vmatprep.subr.bf16.mxu0 %v5135_v2 }
 0x59b   : > { %4745 = vmatprep.subr.bf16.mxu1 %v6701_v6 }
 0x59c   : > { %4746 = vmatpush3.bf16.msra.mxu1 %v6701_v6  ;;  %4521 = vmatpush3.bf16.msra.mxu0 %v5136_v5 }
 0x59d   : > { %4522 = vmatprep.subr.bf16.mxu0 %v5137_v19  ;;  %4751 = vmatprep.subr.bf16.mxu1 %v5155_v32 }
 0x59f   : > { %4748 = vmatmul.mubr.msk.bf16.vlgmr.msra.gmra.mrb[16].mxu1 %vm1286_vm3, %v6600_v40 }
 0x5a0   : > { %4523 = vmatpush3.bf16.msra.mxu0 %v5138_v31  ;;  %4752 = vmatpush3.bf16.msra.mxu1 %v5155_v32 }
 0x5a1   : > { %4546 = vmatprep.subr.bf16.mxu0 %v5139_v24  ;;  %4753 = vmatprep.subr.bf16.mxu1 %v5156_v7 }
 0x5a4   : > { %4754 = vmatpush3.bf16.msra.mxu1 %v5156_v7 }
 0x5a5   : > { %4755 = vmatprep.subr.bf16.mxu1 %v5157_v8 }
 0x5a8   : > { %4756 = vmatpush3.bf16.msra.mxu1 %v5157_v8  ;;  %v5163_v8 = vld [vmem:[%s7208_s12 + $0x40] sm:$0xff]  }
 0x5a9   : > { %4757 = vmatprep.subr.bf16.mxu1 %v5158_v9 }
 0x5ac   : > { %4758 = vmatpush3.bf16.msra.mxu1 %v5158_v9 }
 0x656   : > { %v1989_v10 = vpop.f32.mrb[20].mxu0 }
 0x657   : > { %v4743_v11 = vpop.f32.mrb[21].mxu0 }
 0x658   : > { %v1992_v12 = vpop.f32.mrb[22].mxu0  ;;  %v5165_v11 = vld [vmem:[%s7208_s12 + $0x50] sm:$0xff]  }
 0x659   : > { %v2047_v13 = vpack.c.bf16 %v1992_v12, %v1989_v10  ;;  %v4744_v14 = vpop.f32.mrb[23].mxu0  ;;  %v5164_v10 = vld [vmem:[%s7208_s12 + $0x48] sm:$0xff]   ;;  %v5166_v12 = vld [vmem:[%s7208_s12 + $0x58] sm:$0xff]  }
 0x65a   : > { %v4261_v14 = vld [vmem:[#allocation20 + $0x1] ss:$0 sm:$0xff] }
 0x672   : > { %v4749_v16 = vpop.f32.mrb[16].mxu1 }
 0x673   : > { %v2030_v17 = vpop.f32.mrb[17].mxu1 }
 0x674   : > { %v4750_v18 = vpop.f32.mrb[18].mxu1 }
 0x675   : > { %v2046_v20 = vpack.c.bf16 %v4750_v18, %v4749_v16  ;;  %v2033_v21 = vpop.f32.mrb[19].mxu1 }
 0x676   : > { %v2045_v22 = vpack.c.bf16 %v2033_v21, %v2030_v17  ;;  %v5167_v17 = vld [vmem:[%s7208_s12 + $0x60] sm:$0xff]  }
 0x678   : > { %2217 = vmatprep.mubr.bf16.mxu0 %v2045_v22 }
 0x679   : > { %2218 = vmatmul.mubr.bf16.vlgmr.msra.gmra.mrb[24].mxu0 %v6670_v50  ;;  %v5152_v50 = vld [vmem:[#allocation19 + $0xb0] sm:$0xff]  }
 0x67a   : > { %4547 = vmatpush3.bf16.msra.mxu0 %v5140_v23  ;;  %2225 = vmatprep.mubr.bf16.mxu0 %v2046_v20 }
 0x67b   : > { %4548 = vmatprep.subr.bf16.mxu0 %v5141_v25  ;;  %v5168_v25 = vld [vmem:[%s7208_s12 + $0x68] sm:$0xff]  }
 0x67e   : > { %4549 = vmatpush3.bf16.msra.mxu0 %v5142_v28 }
 0x67f   : > { %4550 = vmatprep.subr.bf16.mxu0 %v5143_v30 }
 0x681   : > { %2226 = vmatmul.mubr.bf16.gmra.mrb[28].mxu0 %v6680_v33  ;;  %v5159_v33 = vld [vmem:[#allocation16 + $0x60] sm:$0xff]  }
 0x682   : > { %4551 = vmatpush3.bf16.msra.mxu0 %v5144_v39  ;;  %2531 = vmatprep.mubr.bf16.mxu0 %v2047_v13 }
 0x683   : > { %4552 = vmatprep.subr.bf16.mxu0 %v5145_v41  ;;  %4759 = vmatprep.subr.bf16.mxu1 %v5159_v33  ;;  %v5169_v41 = vld [vmem:[%s7208_s12 + $0x70] sm:$0xff]  }
 0x684   : > { %4760 = vmatpush3.bf16.msra.mxu1 %v5159_v33 }
 0x685   : > { %4761 = vmatprep.subr.bf16.mxu1 %v5160_v34 }
 0x686   : > { %4553 = vmatpush3.bf16.msra.mxu0 %v5146_v42 }
 0x687   : > { %4554 = vmatprep.subr.bf16.mxu0 %v5147_v43  ;;  %v5170_v43 = vld [vmem:[%s7208_s12 + $0x78] sm:$0xff]  }
 0x688   : > { %4762 = vmatpush3.bf16.msra.mxu1 %v5160_v34 }
 0x689   : > { %4763 = vmatprep.subr.bf16.mxu1 %v5161_v26 }
 0x68a   : > { %4555 = vmatpush3.bf16.msra.mxu0 %v5148_v44  ;;  %v4252_v44 = vld [vmem:[#allocation17 + $0x1] ss:$0 sm:$0xff] }
 0x68b   : > { %4556 = vmatprep.subr.bf16.mxu0 %v5149_v45 }
 0x68c   : > { %4764 = vmatpush3.bf16.msra.mxu1 %v5161_v26 }
 0x68d   : > { %4765 = vmatprep.subr.bf16.mxu1 %v5162_v36 }
 0x68e   : > { %4557 = vmatpush3.bf16.msra.mxu0 %v5150_v46 }
 0x68f   : > { %4558 = vmatprep.subr.bf16.mxu0 %v5151_v35 }
 0x690   : > { %4766 = vmatpush3.bf16.msra.mxu1 %v5162_v36 }
 0x691   : > { %4771 = vmatprep.subr.bf16.mxu1 %v5872_v0 }
 0x692   : > { %4559 = vmatpush3.bf16.msra.mxu0 %v5152_v50 }
 0x693   : > { %4560 = vmatprep.subr.bf16.mxu0 %v5153_v27 }
 0x696   : > { %4561 = vmatpush3.bf16.msra.mxu0 %v5154_v29 }
 0x697   : > { %4791 = vmatprep.subr.bf16.mxu0 %v5872_v0 }
 0x699   : > { %2532 = vmatmul.mubr.bf16.vlgmr.msra.gmra.mrb[32].mxu0 %v6701_v6 }
 0x69a   : > { %4795 = vmatprep.mubr.msk.bf16.mxu0 %vm5873_vm0, %v5872_v0 }
 0x74c   : > { %v4524_v38 = vpop.f32.mrb[24].mxu0 }
 0x74d   : > { %v4525_v53 = vpop.f32.mrb[25].mxu0 }
 0x74e   : > { %v4526_v54 = vadd.f32 %v4525_v53, %v4524_v38  ;;  %v4527_v55 = vpop.f32.mrb[26].mxu0  ;;  %v5171_v53 = vld [vmem:[#allocation13 + $0x140] sm:$0xff]  }
 0x74f   : > { %v4528_v56 = vpop.f32.mrb[27].mxu0 }
 0x750   : > { %v2220_v57 = vadd.f32 %v4526_v54, %v4235_v52  ;;  %v4529_v58 = vadd.f32 %v4528_v56, %v4527_v55  ;;  %v5175_v54 = vld [vmem:[#allocation13 + $0x150] sm:$0xff]   ;;  %v5177_v56 = vld [vmem:[#allocation13 + $0x158] sm:$0xff]  }
 0x751   : > { %v5176_v55 = vld [vmem:[#allocation13 + $0x110] sm:$0xff]  }
 0x752   : > { %v2223_v59 = vadd.f32 %v4529_v58, %v4235_v52  ;;  %v2234_v60 = vmax.f32 %v2220_v57, 0.0  ;;  %v5178_v57 = vld [vmem:[#allocation13 + $0x118] sm:$0xff]   ;;  %v5179_v58 = vld [vmem:[#allocation13 + $0x160] sm:$0xff]  }
 0x754   : > { %v2235_v61 = vmax.f32 %v2223_v59, 0.0  ;;  %v4530_v62 = vpop.f32.mrb[28].mxu0  ;;  %v4295_v59 = vld [vmem:[%s7209_s0 + $0x1] ss:$0 sm:$0xff] }
 0x755   : > { %v4531_v63 = vpop.f32.mrb[29].mxu0 }
 0x756   : > { %v4532_v1 = vadd.f32 %v4531_v63, %v4530_v62  ;;  %v4533_v2 = vpop.f32.mrb[30].mxu0  ;;  %v2238_v5 = vpack.c.bf16 %v2235_v61, %v2234_v60  ;;  %v5180_v60 = vld [vmem:[#allocation13 + $0x120] sm:$0xff]  }
 0x757   : > { %v4534_v6 = vpop.f32.mrb[31].mxu0 }
 0x758   : > { %v2228_v19 = vadd.f32 %v4532_v1, %v4235_v52  ;;  %v4535_v31 = vadd.f32 %v4534_v6, %v4533_v2  ;;  %4767 = vmatprep.mubr.bf16.mxu1 %v2238_v5  ;;  %v5182_v2 = vld [vmem:[#allocation13 + $0x128] sm:$0xff]  }
 0x75a   : > { %v2231_v24 = vadd.f32 %v4535_v31, %v4235_v52  ;;  %v2236_v32 = vmax.f32 %v2228_v19, 0.0  ;;  %v5183_v19 = vld [vmem:[#allocation13 + $0x170] sm:$0xff]  }
 0x75c   : > { %v2237_v7 = vmax.f32 %v2231_v24, 0.0 }
 0x75e   : > { %v2239_v9 = vpack.c.bf16 %v2237_v7, %v2236_v32  ;;  %v5184_v32 = vld [vmem:[#allocation13 + $0x130] sm:$0xff]  }
 0x760   : > { %4768 = vmatmul.mubr.bf16.vlgmr.msra.gmra.mrb[20].mxu1 %v2239_v9  ;;  %v5203_v9 = vld [vmem:[#allocation16 + $0x80] sm:$0xff]  }
 0x761   : > { %4772 = vmatpush3.bf16.msra.mxu1 %v5163_v8  ;;  %4787 = vmatprep.mubr.msk.bf16.mxu1 %vm5873_vm0, %v5872_v0  ;;  %v5186_v8 = vld [vmem:[#allocation13 + $0x138] sm:$0xff]  }
 0x762   : > { %4773 = vmatprep.subr.bf16.mxu1 %v5872_v0 }
 0x765   : > { %4774 = vmatpush3.bf16.msra.mxu1 %v5164_v10  ;;  %v5204_v10 = vld [vmem:[#allocation16 + $0x88] sm:$0xff]  }
 0x766   : > { %4775 = vmatprep.subr.bf16.mxu1 %v5872_v0 }
 0x769   : > { %4776 = vmatpush3.bf16.msra.mxu1 %v5165_v11  ;;  %v5205_v11 = vld [vmem:[#allocation16 + $0x90] sm:$0xff]  }
 0x76a   : > { %4777 = vmatprep.subr.bf16.mxu1 %v5872_v0 }
 0x76c   : > { %v4562_v13 = vpop.f32.mrb[32].mxu0 }
 0x76d   : > { %v4563_v16 = vpop.f32.mrb[33].mxu0  ;;  %4778 = vmatpush3.bf16.msra.mxu1 %v5166_v12  ;;  %v5206_v12 = vld [vmem:[#allocation16 + $0x98] sm:$0xff]  }
 0x76e   : > { %v4564_v18 = vadd.f32 %v4563_v16, %v4562_v13  ;;  %v4565_v20 = vpop.f32.mrb[34].mxu0  ;;  %4779 = vmatprep.subr.bf16.mxu1 %v5872_v0 }
 0x76f   : > { %v4566_v21 = vpop.f32.mrb[35].mxu0 }
 0x770   : > { %v2534_v22 = vadd.f32 %v4564_v18, %v4261_v14  ;;  %v4567_v23 = vadd.f32 %v4566_v21, %v4565_v20 }
 0x771   : > { %4780 = vmatpush3.bf16.msra.mxu1 %v5167_v17 }
 0x772   : > { %v2537_v28 = vadd.f32 %v4567_v23, %v4261_v14  ;;  %4781 = vmatprep.subr.bf16.mxu1 %v5872_v0  ;;  %v2540_v30 = vmax.f32 %v2534_v22, 0.0 }
 0x774   : > { %v2541_v39 = vmax.f32 %v2537_v28, 0.0  ;;  %v5188_v28 = vld [vmem:[#allocation19 + $0x100] sm:$0xff]  }
 0x775   : > { %4782 = vmatpush3.bf16.msra.mxu1 %v5168_v25 }
 0x776   : > { %v2542_v42 = vpack.c.bf16 %v2541_v39, %v2540_v30  ;;  %4783 = vmatprep.subr.bf16.mxu1 %v5872_v0  ;;  %v5189_v30 = vld [vmem:[#allocation19 + $0x148] sm:$0xff]  }
 0x777   : > { %v5190_v39 = vld [vmem:[#allocation19 + $0x108] sm:$0xff]  }
 0x779   : > { %4784 = vmatpush3.bf16.msra.mxu1 %v5169_v41  ;;  %v5191_v41 = vld [vmem:[#allocation19 + $0x150] sm:$0xff]  }
 0x77a   : > { %4785 = vmatprep.subr.bf16.mxu1 %v5872_v0 }
 0x77d   : > { %4786 = vmatpush3.bf16.msra.mxu1 %v5170_v43  ;;  %v5193_v43 = vld [vmem:[#allocation19 + $0x158] sm:$0xff]  }
 0x780   : > { %4788 = vmatmul.mubr.bf16.vlgmr.msra.gmra.mrb[24].mxu1 %v2542_v42  ;;  %v5192_v42 = vld [vmem:[#allocation19 + $0x110] sm:$0xff]  }
 0x781   : > { %4801 = vmatprep.mubr.msk.bf16.mxu1 %vm1286_vm3, %v6564_v15 }
 0x833   : > { %v4769_v45 = vpop.f32.mrb[20].mxu1 }
 0x834   : > { %v2347_v46 = vpop.f32.mrb[21].mxu1  ;;  %v2356_v34 = vadd.f32 %v4769_v45, %v4252_v44  ;;  %v5195_v45 = vld [vmem:[#allocation19 + $0x160] sm:$0xff]  }
 0x835   : > { %v2348_v35 = vadd.f32 %v4252_v44, %v2347_v46  ;;  %v4770_v50 = vpop.f32.mrb[22].mxu1  ;;  %v5196_v46 = vld [vmem:[#allocation19 + $0x120] sm:$0xff]  }
 0x836   : > { %v2350_v27 = vpop.f32.mrb[23].mxu1  ;;  %v2359_v29 = vadd.f32 %v4770_v50, %v4252_v44  ;;  %v6763_v52 = vadd.f32 %v2356_v34, %v6674_v51  ;;  %v5174_v51 = vld [vmem:[#allocation13 + $0x108] sm:$0xff]   ;;  %v5198_v50 = vld [vmem:[#allocation19 + $0x128] sm:$0xff]   ;;  %v5202_v34 = vld [vmem:[#allocation19 + $0x138] sm:$0xff]  }
 0x837   : > { %v2351_v33 = vadd.f32 %v4252_v44, %v2350_v27  ;;  %v6750_v26 = vadd.f32 %v2348_v35, %v6658_v47  ;;  %v5194_v44 = vld [vmem:[#allocation19 + $0x118] sm:$0xff]   ;;  %v5197_v35 = vld [vmem:[#allocation19 + $0x168] sm:$0xff]   ;;  %v5199_v27 = vld [vmem:[#allocation19 + $0x170] sm:$0xff]  }
 0x838   : > { %v6756_v38 = vadd.f32 %v2359_v29, %v6666_v49  ;;  %v5173_v49 = vld [vmem:[#allocation13 + $0x148] sm:$0xff]   ;;  %v5200_v29 = vld [vmem:[#allocation19 + $0x130] sm:$0xff]  }
 0x839   : > { %v6753_v36 = vadd.f32 %v2351_v33, %v6662_v48  ;;  %v5172_v48 = vld [vmem:[#allocation13 + $0x100] sm:$0xff]  }
 0x83a   : > { %v6769_v47 = vpack.c.bf16 %v6756_v38, %v6763_v52  ;;  %v5201_v33 = vld [vmem:[#allocation19 + $0x178] sm:$0xff]  }
 0x83b   : > { %v6760_v15 = vpack.c.bf16 %v6753_v36, %v6750_v26 }
 0x83d   : > { %4792 = vmatpush3.bf16.msra.mxu0 %v6760_v15 }
 0x83e   : > { %4793 = vmatprep.subr.bf16.mxu0 %v5872_v0 }
 0x841   : > { %4794 = vmatpush3.bf16.msra.mxu0 %v6769_v47 }
 0x842   : > { %4583 = vmatprep.subr.bf16.mxu0 %v5171_v53  ;;  %v5208_v53 = vld [vmem:[#allocation16 + $0xa8] sm:$0xff]  }
 0x844   : > { %4796 = vmatmul.mubr.msk.bf16.vlgmr.msra.gmra.mrb[36].mxu0 %vm1224_vm4, %v6684_v37  ;;  %v5181_v37 = vld [vmem:[#allocation13 + $0x168] sm:$0xff]  }
 0x845   : > { %4584 = vmatpush3.bf16.msra.mxu0 %v5172_v48  ;;  %v5210_v48 = vld [vmem:[#allocation16 + $0xb8] sm:$0xff]  }
 0x846   : > { %4585 = vmatprep.subr.bf16.mxu0 %v5173_v49  ;;  %v5219_v49 = vld [vmem:[#allocation22] sm:$0xff]  }
 0x849   : > { %4586 = vmatpush3.bf16.msra.mxu0 %v5174_v51  ;;  %v5220_v51 = vld [vmem:[#allocation22 + $0x8] sm:$0xff]  }
 0x84a   : > { %4587 = vmatprep.subr.bf16.mxu0 %v5175_v54  ;;  %v5221_v54 = vld [vmem:[#allocation22 + $0x10] sm:$0xff]  }
 0x84d   : > { %4588 = vmatpush3.bf16.msra.mxu0 %v5176_v55  ;;  %v5222_v55 = vld [vmem:[#allocation22 + $0x18] sm:$0xff]  }
 0x84e   : > { %4589 = vmatprep.subr.bf16.mxu0 %v5177_v56  ;;  %v5223_v56 = vld [vmem:[#allocation22 + $0x20] sm:$0xff]  }
 0x851   : > { %4590 = vmatpush3.bf16.msra.mxu0 %v5178_v57  ;;  %v5224_v57 = vld [vmem:[#allocation22 + $0x28] sm:$0xff]  }
 0x852   : > { %4591 = vmatprep.subr.bf16.mxu0 %v5179_v58 }
 0x853   : > { %v2650_v61 = vpop.f32.mrb[24].mxu1 }
 0x854   : > { %v2651_v62 = vadd.f32 %v4295_v59, %v2650_v61  ;;  %v4789_v63 = vpop.f32.mrb[25].mxu1 }
 0x855   : > { %v2653_v1 = vpop.f32.mrb[26].mxu1  ;;  %4592 = vmatpush3.bf16.msra.mxu0 %v5180_v60 }
 0x856   : > { %v2654_v5 = vadd.f32 %v4295_v59, %v2653_v1  ;;  %v4790_v6 = vpop.f32.mrb[27].mxu1  ;;  %4593 = vmatprep.subr.bf16.mxu0 %v5181_v37  ;;  %v6778_v31 = vadd.f32 %v2651_v62, %v6693_v3  ;;  %v5185_v3 = vld [vmem:[#allocation13 + $0x178] sm:$0xff]   ;;  %v4307_v59 = vld [vmem:[#allocation14 + $0x2] ss:$0 sm:$0xff] }
 0x858   : > { %v6781_v24 = vadd.f32 %v2654_v5, %v6697_v4  ;;  %v5187_v4 = vld [vmem:[#allocation19 + $0x140] sm:$0xff]  }
 0x859   : > { %4594 = vmatpush3.bf16.msra.mxu0 %v5182_v2 }
 0x85a   : > { %v6785_v7 = vpack.c.bf16 %v6781_v24, %v6778_v31  ;;  %4595 = vmatprep.subr.bf16.mxu0 %v5183_v19 }
 0x85c   : > { %4799 = vmatprep.subr.bf16.mxu1 %v6785_v7 }
 0x85d   : > { %4800 = vmatpush3.bf16.msra.mxu1 %v6785_v7  ;;  %4596 = vmatpush3.bf16.msra.mxu0 %v5184_v32 }
 0x85e   : > { %4597 = vmatprep.subr.bf16.mxu0 %v5185_v3  ;;  %4805 = vmatprep.subr.bf16.mxu1 %v5203_v9 }
 0x860   : > { %4802 = vmatmul.mubr.msk.bf16.vlgmr.msra.gmra.mrb[28].mxu1 %vm1286_vm3, %v6600_v40 }
 0x861   : > { %4598 = vmatpush3.bf16.msra.mxu0 %v5186_v8  ;;  %4806 = vmatpush3.bf16.msra.mxu1 %v5203_v9 }
 0x862   : > { %4621 = vmatprep.subr.bf16.mxu0 %v5187_v4  ;;  %4807 = vmatprep.subr.bf16.mxu1 %v5204_v10 }
 0x865   : > { %4808 = vmatpush3.bf16.msra.mxu1 %v5204_v10 }
 0x866   : > { %4809 = vmatprep.subr.bf16.mxu1 %v5205_v11 }
 0x869   : > { %4810 = vmatpush3.bf16.msra.mxu1 %v5205_v11 }
 0x86a   : > { %4811 = vmatprep.subr.bf16.mxu1 %v5206_v12 }
 0x86d   : > { %4812 = vmatpush3.bf16.msra.mxu1 %v5206_v12 }
 0x917   : > { %v2700_v13 = vpop.f32.mrb[36].mxu0 }
 0x918   : > { %v4797_v40 = vpop.f32.mrb[37].mxu0 }
 0x919   : > { %v2703_v14 = vpop.f32.mrb[38].mxu0  ;;  %v5211_v40 = vld [vmem:[%s7208_s12 + $0x80] sm:$0xff]  }
 0x91a   : > { %v2758_v16 = vpack.c.bf16 %v2703_v14, %v2700_v13  ;;  %v4798_v17 = vpop.f32.mrb[39].mxu0 }
 0x91b   : > { %v5213_v17 = vld [vmem:[%s7208_s12 + $0x90] sm:$0xff]  }
 0x933   : > { %v4803_v18 = vpop.f32.mrb[28].mxu1 }
 0x934   : > { %v2741_v20 = vpop.f32.mrb[29].mxu1 }
 0x935   : > { %v4804_v21 = vpop.f32.mrb[30].mxu1 }
 0x936   : > { %v2757_v22 = vpack.c.bf16 %v4804_v21, %v4803_v18  ;;  %v2744_v23 = vpop.f32.mrb[31].mxu1  ;;  %v5214_v18 = vld [vmem:[%s7208_s12 + $0x98] sm:$0xff]  }
 0x937   : > { %v2756_v25 = vpack.c.bf16 %v2744_v23, %v2741_v20  ;;  %v4333_v21 = vld [vmem:[#allocation20 + $0x2] ss:$0 sm:$0xff]  ;;  %v5215_v23 = vld [vmem:[%s7208_s12 + $0xa0] sm:$0xff]  }
 0x939   : > { %2928 = vmatprep.mubr.bf16.mxu0 %v2756_v25 }
 0x93a   : > { %2929 = vmatmul.mubr.bf16.vlgmr.msra.gmra.mrb[40].mxu0 %v6760_v15  ;;  %v5207_v15 = vld [vmem:[#allocation16 + $0xa0] sm:$0xff]  }
 0x93b   : > { %4622 = vmatpush3.bf16.msra.mxu0 %v5188_v28  ;;  %2936 = vmatprep.mubr.bf16.mxu0 %v2757_v22 }
 0x93c   : > { %4623 = vmatprep.subr.bf16.mxu0 %v5189_v30  ;;  %4813 = vmatprep.subr.bf16.mxu1 %v5207_v15 }
 0x93d   : > { %4814 = vmatpush3.bf16.msra.mxu1 %v5207_v15  ;;  %v5229_v15 = vld [vmem:[#allocation23 + $0x10] sm:$0xff]  }
 0x93e   : > { %4815 = vmatprep.subr.bf16.mxu1 %v5208_v53 }
 0x93f   : > { %4624 = vmatpush3.bf16.msra.mxu0 %v5190_v39 }
 0x940   : > { %4625 = vmatprep.subr.bf16.mxu0 %v5191_v41 }
 0x941   : > { %4816 = vmatpush3.bf16.msra.mxu1 %v5208_v53  ;;  %v5230_v53 = vld [vmem:[#allocation23 + $0x18] sm:$0xff]  }
 0x942   : > { %2937 = vmatmul.mubr.bf16.gmra.mrb[44].mxu0 %v6769_v47  ;;  %v5209_v47 = vld [vmem:[#allocation16 + $0xb0] sm:$0xff]  }
 0x943   : > { %4626 = vmatpush3.bf16.msra.mxu0 %v5192_v42  ;;  %3242 = vmatprep.mubr.bf16.mxu0 %v2758_v16  ;;  %v5212_v16 = vld [vmem:[%s7208_s12 + $0x88] sm:$0xff]  }
 0x944   : > { %4627 = vmatprep.subr.bf16.mxu0 %v5193_v43  ;;  %4817 = vmatprep.subr.bf16.mxu1 %v5209_v47  ;;  %v5216_v42 = vld [vmem:[%s7208_s12 + $0xa8] sm:$0xff]  }
 0x945   : > { %4818 = vmatpush3.bf16.msra.mxu1 %v5209_v47  ;;  %v5231_v47 = vld [vmem:[#allocation23 + $0x20] sm:$0xff]  }
 0x946   : > { %4819 = vmatprep.subr.bf16.mxu1 %v5210_v48 }
 0x947   : > { %4628 = vmatpush3.bf16.msra.mxu0 %v5194_v44 }
 0x948   : > { %4629 = vmatprep.subr.bf16.mxu0 %v5195_v45 }
 0x949   : > { %4820 = vmatpush3.bf16.msra.mxu1 %v5210_v48  ;;  %v5232_v48 = vld [vmem:[#allocation23 + $0x28] sm:$0xff]  }
 0x94a   : > { %4825 = vmatprep.subr.bf16.mxu1 %v5872_v0 }
 0x94b   : > { %4630 = vmatpush3.bf16.msra.mxu0 %v5196_v46  ;;  %v5217_v46 = vld [vmem:[%s7208_s12 + $0xb0] sm:$0xff]  }
 0x94c   : > { %4631 = vmatprep.subr.bf16.mxu0 %v5197_v35 }
 0x94f   : > { %4632 = vmatpush3.bf16.msra.mxu0 %v5198_v50  ;;  %v5218_v50 = vld [vmem:[%s7208_s12 + $0xb8] sm:$0xff]  }
 0x950   : > { %4633 = vmatprep.subr.bf16.mxu0 %v5199_v27  ;;  %v5225_v27 = vld [vmem:[#allocation22 + $0x30] sm:$0xff]  }
 0x953   : > { %4634 = vmatpush3.bf16.msra.mxu0 %v5200_v29  ;;  %v5226_v29 = vld [vmem:[#allocation22 + $0x38] sm:$0xff]  }
 0x954   : > { %4635 = vmatprep.subr.bf16.mxu0 %v5201_v33  ;;  %v5227_v33 = vld [vmem:[#allocation23] sm:$0xff]  }
 0x957   : > { %4636 = vmatpush3.bf16.msra.mxu0 %v5202_v34  ;;  %v5228_v34 = vld [vmem:[#allocation23 + $0x8] sm:$0xff]  }
 0x958   : > { %4845 = vmatprep.subr.bf16.mxu0 %v5219_v49 }
 0x95a   : > { %3243 = vmatmul.mubr.bf16.vlgmr.msra.gmra.mrb[48].mxu0 %v6785_v7 }
 0x95b   : > { %4846 = vmatpush3.bf16.msra.mxu0 %v5219_v49  ;;  %v5233_v49 = vld [vmem:[#allocation23 + $0x30] sm:$0xff]  }
 0x95c   : > { %4847 = vmatprep.subr.bf16.mxu0 %v5220_v51 }
 0x95f   : > { %4848 = vmatpush3.bf16.msra.mxu0 %v5220_v51  ;;  %v5234_v51 = vld [vmem:[#allocation23 + $0x38] sm:$0xff]  }
 0x960   : > { %4849 = vmatprep.subr.bf16.mxu0 %v5221_v54 }
 0x963   : > { %4850 = vmatpush3.bf16.msra.mxu0 %v5221_v54  ;;  %v4324_v54 = vld [vmem:[#allocation17 + $0x2] ss:$0 sm:$0xff] }
 0x964   : > { %4851 = vmatprep.subr.bf16.mxu0 %v5222_v55 }
 0x967   : > { %4852 = vmatpush3.bf16.msra.mxu0 %v5222_v55 }
 0x968   : > { %4853 = vmatprep.subr.bf16.mxu0 %v5223_v56 }
 0x96b   : > { %4854 = vmatpush3.bf16.msra.mxu0 %v5223_v56 }
 0x96c   : > { %4855 = vmatprep.subr.bf16.mxu0 %v5224_v57 }
 0x96f   : > { %4856 = vmatpush3.bf16.msra.mxu0 %v5224_v57 }
 0x970   : > { %4857 = vmatprep.subr.bf16.mxu0 %v5225_v27 }
 0x973   : > { %4858 = vmatpush3.bf16.msra.mxu0 %v5225_v27 }
 0x974   : > { %4859 = vmatprep.subr.bf16.mxu0 %v5226_v29 }
 0x977   : > { %4860 = vmatpush3.bf16.msra.mxu0 %v5226_v29 }
 0xa0d   : > { %v4599_v58 = vpop.f32.mrb[40].mxu0 }
 0xa0e   : > { %v4600_v60 = vpop.f32.mrb[41].mxu0 }
 0xa0f   : > { %v4601_v37 = vadd.f32 %v4600_v60, %v4599_v58  ;;  %v4602_v61 = vpop.f32.mrb[42].mxu0 }
 0xa10   : > { %v4603_v62 = vpop.f32.mrb[43].mxu0 }
 0xa11   : > { %v2931_v63 = vadd.f32 %v4601_v37, %v4307_v59  ;;  %v4604_v1 = vadd.f32 %v4603_v62, %v4602_v61 }
 0xa13   : > { %v2934_v2 = vadd.f32 %v4604_v1, %v4307_v59  ;;  %v2945_v5 = vmax.f32 %v2931_v63, 0.0 }
 0xa15   : > { %v2946_v6 = vmax.f32 %v2934_v2, 0.0  ;;  %v4605_v19 = vpop.f32.mrb[44].mxu0 }
 0xa16   : > { %v4606_v32 = vpop.f32.mrb[45].mxu0 }
 0xa17   : > { %v4607_v7 = vadd.f32 %v4606_v32, %v4605_v19  ;;  %v4608_v3 = vpop.f32.mrb[46].mxu0  ;;  %v2949_v8 = vpack.c.bf16 %v2946_v6, %v2945_v5  ;;  %v4367_v6 = vld [vmem:[%s7209_s0 + $0x2] ss:$0 sm:$0xff] }
 0xa18   : > { %v4609_v4 = vpop.f32.mrb[47].mxu0 }
 0xa19   : > { %v2939_v9 = vadd.f32 %v4607_v7, %v4307_v59  ;;  %v4610_v10 = vadd.f32 %v4609_v4, %v4608_v3  ;;  %4821 = vmatprep.mubr.bf16.mxu1 %v2949_v8  ;;  %v4376_v4 = vld [vmem:[%s7210_s21] ss:$0 sm:$0xff] }
 0xa1b   : > { %v2942_v11 = vadd.f32 %v4610_v10, %v4307_v59  ;;  %v2947_v12 = vmax.f32 %v2939_v9, 0.0  ;;  %v3498_v10 = vld [vmem:[%s6511_s30 + $0x10] sm:$0xff] }
 0xa1d   : > { %v2948_v13 = vmax.f32 %v2942_v11, 0.0 }
 0xa1f   : > { %v2950_v14 = vpack.c.bf16 %v2948_v13, %v2947_v12  ;;  %v3496_v13 = vld [vmem:[%s6511_s30] sm:$0xff] }
 0xa21   : > { %4822 = vmatmul.mubr.bf16.vlgmr.msra.gmra.mrb[32].mxu1 %v2950_v14 }
 0xa22   : > { %4826 = vmatpush3.bf16.msra.mxu1 %v5211_v40  ;;  %4841 = vmatprep.mubr.msk.bf16.mxu1 %vm5873_vm0, %v5872_v0 }
 0xa23   : > { %4827 = vmatprep.subr.bf16.mxu1 %v5872_v0 }
 0xa26   : > { %4828 = vmatpush3.bf16.msra.mxu1 %v5212_v16  ;;  %v3499_v16 = vld [vmem:[%s6511_s30 + $0x18] sm:$0xff] }
 0xa27   : > { %4829 = vmatprep.subr.bf16.mxu1 %v5872_v0 }
 0xa2a   : > { %4830 = vmatpush3.bf16.msra.mxu1 %v5213_v17 }
 0xa2b   : > { %4831 = vmatprep.subr.bf16.mxu1 %v5872_v0 }
 0xa2d   : > { %v4637_v20 = vpop.f32.mrb[48].mxu0 }
 0xa2e   : > { %v4638_v22 = vpop.f32.mrb[49].mxu0  ;;  %4832 = vmatpush3.bf16.msra.mxu1 %v5214_v18 }
 0xa2f   : > { %v4639_v25 = vadd.f32 %v4638_v22, %v4637_v20  ;;  %v4640_v28 = vpop.f32.mrb[50].mxu0  ;;  %4833 = vmatprep.subr.bf16.mxu1 %v5872_v0 }
 0xa30   : > { %v4641_v30 = vpop.f32.mrb[51].mxu0 }
 0xa31   : > { %v3245_v39 = vadd.f32 %v4639_v25, %v4333_v21  ;;  %v4642_v41 = vadd.f32 %v4641_v30, %v4640_v28  ;;  %v4385_v25 = vld [vmem:[%s7211_s9] ss:$0 sm:$0xff] }
 0xa32   : > { %4834 = vmatpush3.bf16.msra.mxu1 %v5215_v23  ;;  %v3617_v30 = vld [vmem:[%s920_s22] sm:$0xff] }
 0xa33   : > { %v3248_v43 = vadd.f32 %v4642_v41, %v4333_v21  ;;  %4835 = vmatprep.subr.bf16.mxu1 %v5872_v0  ;;  %v3251_v44 = vmax.f32 %v3245_v39, 0.0 }
 0xa35   : > { %v3252_v45 = vmax.f32 %v3248_v43, 0.0  ;;  %v3618_v43 = vld [vmem:[%s920_s22 + $0x8] sm:$0xff]  ;;  %s3784_s22 = sshll.u32 %s6869_s10, 4  ;;  %s6892_s22 = int_to_ptr.vmem [resolvable:$true] %s3784_s22 }
 0xa36   : > { %4836 = vmatpush3.bf16.msra.mxu1 %v5216_v42  ;;  %s5660_s3 = scalar_lea.vmem %s6892_s22, 256  ;;  %p5667_p13 = scmp.lt.s32.totalorder %s6892_s22, %s5665_s16 }
 0xa37   : > { %v3253_v35 = vpack.c.bf16 %v3252_v45, %v3251_v44  ;;  %4837 = vmatprep.subr.bf16.mxu1 %v5872_v0  ;;  %p5661_p10 = scmp.ne.s32.totalorder %s6892_s22, %s5660_s3  ;;  %p5668_p2 = scmp.lt.s32.totalorder %s5666_s23, %s5660_s3 }
 0xa39   : > { %p5662_p7 = pnand %p5661_p10, %p7213_p9  ;;  %p5669_p3 = por %p5668_p2, %p5667_p13 }
 0xa3a   : > { %4838 = vmatpush3.bf16.msra.mxu1 %v5217_v46 }
 0xa3b   : > { %4839 = vmatprep.subr.bf16.mxu1 %v5872_v0  ;;  %p5663_p8 = pneg %p5662_p7 }
 0xa3d   : > { %p5670_p4 = pnand %p5669_p3, %p5663_p8 }
 0xa3e   : > { %4840 = vmatpush3.bf16.msra.mxu1 %v5218_v50 }
 0xa3f   : > { %4865 = vmatprep.subr.bf16.mxu1 %v5872_v0 }
 0xa41   : > { %4842 = vmatmul.mubr.bf16.vlgmr.msra.gmra.mrb[36].mxu1 %v3253_v35 }
 0xa42   : > { %4881 = vmatprep.mubr.msk.bf16.mxu1 %vm5873_vm0, %v5872_v0  ;;  %4866 = vmatpush3.bf16.msra.mxu1 %v5227_v33 }
 0xa43   : > { %4867 = vmatprep.subr.bf16.mxu1 %v5872_v0 }
 0xa46   : > { %4868 = vmatpush3.bf16.msra.mxu1 %v5228_v34 }
 0xa47   : > { %4869 = vmatprep.subr.bf16.mxu1 %v5872_v0 }
 0xa4a   : > { %4870 = vmatpush3.bf16.msra.mxu1 %v5229_v15 }
 0xa4b   : > { %4871 = vmatprep.subr.bf16.mxu1 %v5872_v0 }
 0xa4e   : > { %4872 = vmatpush3.bf16.msra.mxu1 %v5230_v53 }
 0xa4f   : > { %4873 = vmatprep.subr.bf16.mxu1 %v5872_v0 }
 0xa52   : > { %4874 = vmatpush3.bf16.msra.mxu1 %v5231_v47 }
 0xa53   : > { %4875 = vmatprep.subr.bf16.mxu1 %v5872_v0 }
 0xa56   : > { %4876 = vmatpush3.bf16.msra.mxu1 %v5232_v48 }
 0xa57   : > { %4877 = vmatprep.subr.bf16.mxu1 %v5872_v0 }
 0xa5a   : > { %4878 = vmatpush3.bf16.msra.mxu1 %v5233_v49 }
 0xa5b   : > { %4879 = vmatprep.subr.bf16.mxu1 %v5872_v0 }
 0xa5e   : > { %4880 = vmatpush3.bf16.msra.mxu1 %v5234_v51 }
 0xaf4   : > { %v4823_v55 = vpop.f32.mrb[32].mxu1 }
 0xaf5   : > { %v3067_v56 = vadd.f32 %v4823_v55, %v4324_v54  ;;  %v3058_v57 = vpop.f32.mrb[33].mxu1 }
 0xaf6   : > { %v3059_v58 = vadd.f32 %v4324_v54, %v3058_v57  ;;  %v4824_v59 = vpop.f32.mrb[34].mxu1 }
 0xaf7   : > { %v3070_v60 = vadd.f32 %v4824_v59, %v4324_v54  ;;  %v3061_v37 = vpop.f32.mrb[35].mxu1  ;;  %v3370_v62 = vadd.f32 %v3067_v56, %v6763_v52 }
 0xaf8   : > { %v3062_v61 = vadd.f32 %v4324_v54, %v3061_v37  ;;  %v3368_v1 = vadd.f32 %v3059_v58, %v6750_v26 }
 0xaf9   : > { %v3371_v63 = vadd.f32 %v3070_v60, %v6756_v38 }
 0xafa   : > { %v3369_v2 = vadd.f32 %v3062_v61, %v6753_v36 }
 0xafb   : > { %v3375_v0 = vpack.c.bf16 %v3371_v63, %v3370_v62 }
 0xafc   : > { %v3374_v5 = vpack.c.bf16 %v3369_v2, %v3368_v1 }
 0xafe   : > { %4861 = vmatprep.mubr.bf16.mxu0 %v3374_v5 }
 0xaff   : > { %4862 = vmatmul.mubr.bf16.vlgmr.msra.gmra.mrb[52].mxu0 %v3375_v0 }
 0xb14   : > { %v3361_v19 = vpop.f32.mrb[36].mxu1 }
 0xb15   : > { %v3362_v32 = vadd.f32 %v4367_v6, %v3361_v19  ;;  %v4843_v7 = vpop.f32.mrb[37].mxu1 }
 0xb16   : > { %v3364_v52 = vpop.f32.mrb[38].mxu1 }
 0xb17   : > { %v3365_v38 = vadd.f32 %v4367_v6, %v3364_v52  ;;  %v4844_v3 = vpop.f32.mrb[39].mxu1  ;;  %v3372_v26 = vadd.f32 %v3362_v32, %v6778_v31 }
 0xb19   : > { %v3373_v36 = vadd.f32 %v3365_v38, %v6781_v24  ;;  %v3497_v24 = vld [vmem:[%s6511_s30 + $0x8] sm:$0xff] }
 0xb1b   : > { %v3504_v8 = vpack.c.bf16 %v3373_v36, %v3372_v26 }
 0xb1d   : > { %4882 = vmatmul.mubr.bf16.vlgmr.msra.gmra.mrb[40].mxu1 %v3504_v8 }
 0xbd2   : > { %v4863_v9 = vpop.f32.mrb[52].mxu0 }
 0xbd3   : > { %v3490_v11 = vadd.f32 %v4863_v9, %v4376_v4  ;;  %v3481_v12 = vpop.f32.mrb[53].mxu0 }
 0xbd4   : > { %v3482_v40 = vadd.f32 %v4376_v4, %v3481_v12  ;;  %v4864_v14 = vpop.f32.mrb[54].mxu0 }
 0xbd5   : > { %v3502_v17 = vadd.f32 %v3498_v10, %v3490_v11  ;;  %v3493_v31 = vadd.f32 %v4864_v14, %v4376_v4  ;;  %v3484_v18 = vpop.f32.mrb[55].mxu0 }
 0xbd6   : > { %v3500_v20 = vadd.f32 %v3496_v13, %v3482_v40  ;;  %v3485_v21 = vadd.f32 %v4376_v4, %v3484_v18 }
 0xbd7   : > { %3623 = vst [vmem:[%s6855_s4 + $0x10] sm:$0xff] %v3502_v17  ;;  %v3503_v22 = vadd.f32 %v3499_v16, %v3493_v31 }
 0xbd8   : > { %3621 = vst [vmem:[%s6855_s4] sm:$0xff] %v3500_v20  ;;  %v3501_v23 = vadd.f32 %v3497_v24, %v3485_v21  ;;  %3627 = vmax.xlane.f32.xlu1 %v3500_v20 }
 0xbd9   : > { %3624 = vst [vmem:[%s6855_s4 + $0x18] sm:$0xff] %v3503_v22 }
 0xbda   : > { %3622 = vst [vmem:[%s6855_s4 + $0x8] sm:$0xff] %v3501_v23 }
 0xbdc   : > { %3629 = vmax.xlane.f32.xlu1 %v3501_v23 }
 0xbe0   : > { %3631 = vmax.xlane.f32.xlu1 %v3502_v17 }
 0xbf0   : > { %v3610_v28 = vpop.f32.mrb[40].mxu1 }
 0xbf1   : > { %v3611_v39 = vadd.f32 %v4385_v25, %v3610_v28  ;;  %v4883_v41 = vpop.f32.mrb[41].mxu1 }
 0xbf2   : > { %v3613_v42 = vpop.f32.mrb[42].mxu1 }
 0xbf3   : > { %v3619_v44 = vadd.f32 %v3617_v30, %v3611_v39  ;;  %v3614_v45 = vadd.f32 %v4385_v25, %v3613_v42  ;;  %v4884_v46 = vpop.f32.mrb[43].mxu1 }
 0xbf5   : > { %3625 = vst [vmem:[%s6869_s10] sm:$0xff] %v3619_v44  ;;  %v3620_v35 = vadd.f32 %v3618_v43, %v3614_v45  ;;  %3679 = vmax.xlane.f32.xlu0 %v3619_v44 }
 0xbf7   : > { %3626 = vst [vmem:[%s6869_s10 + $0x8] sm:$0xff] %v3620_v35  ;;  %3681 = vmax.xlane.f32.xlu1 %v3620_v35 }
 0xbfb   : > { %3633 = vmax.xlane.f32.xlu1 %v3503_v22 }
 0xc65   : > { %v3628_v50 = vpop.xlane.xlu1 %3627 }
 0xc66   : > { %v3635_v27 = vsub.f32 %v3500_v20, %v3628_v50 }
 0xc68   : > { %v3639_v29 = vmul.f32 1.442695, %v3635_v27 }
 0xc69   : > { %v3630_v33 = vpop.xlane.xlu1 %3629 }
 0xc6a   : > { %5235 = vpow2.f32 %v3639_v29  ;;  %v3636_v34 = vsub.f32 %v3501_v23, %v3630_v33 }
 0xc6c   : > { %v3641_v15 = vmul.f32 1.442695, %v3636_v34 }
 0xc6d   : > { %v3632_v48 = vpop.xlane.xlu1 %3631 }
 0xc6e   : > { %5237 = vpow2.f32 %v3641_v15  ;;  %v3637_v51 = vsub.f32 %v3502_v17, %v3632_v48 }
 0xc70   : > { %v3643_v58 = vmul.f32 1.442695, %v3637_v51 }
 0xc74   : > { %v6873_v53 = vpop.eup %5235 }
 0xc75   : > { %3647 = vadd.xlane.f32.xlu1 %v6873_v53 }
 0xc78   : > { %v6876_v47 = vpop.eup %5237 }
 0xc79   : > { %3649 = vadd.xlane.f32.xlu0 %v6876_v47 }
 0xc82   : > { %v3680_v49 = vpop.xlane.xlu0 %3679 }
 0xc83   : > { %v3683_v54 = vsub.f32 %v3619_v44, %v3680_v49 }
 0xc84   : > { %v3682_v55 = vpop.xlane.xlu1 %3681 }
 0xc85   : > { %v3685_v56 = vmul.f32 1.442695, %v3683_v54  ;;  %v3684_v57 = vsub.f32 %v3620_v35, %v3682_v55 }
 0xc87   : > { %5239 = vpow2.f32 %v3685_v56  ;;  %v3687_v59 = vmul.f32 1.442695, %v3684_v57 }
 0xc88   : > { %v3634_v60 = vpop.xlane.xlu1 %3633 }
 0xc89   : > { %5241 = vpow2.f32 %v3687_v59  ;;  %v3638_v37 = vsub.f32 %v3503_v22, %v3634_v60 }
 0xc8a   : > { %5243 = vpow2.f32 %v3643_v58 }
 0xc8b   : > { %v3645_v61 = vmul.f32 1.442695, %v3638_v37 }
 0xc8d   : > { %5245 = vpow2.f32 %v3645_v61 }
 0xc91   : > { %v6879_v62 = vpop.eup %5239 }
 0xc92   : > { %3689 = vadd.xlane.f32.xlu1 %v6879_v62 }
 0xc93   : > { %v6882_v63 = vpop.eup %5241 }
 0xc94   : > { %3691 = vadd.xlane.f32.xlu0 %v6882_v63  ;;  %v6885_v1 = vpop.eup %5243 }
 0xc96   : > { %3651 = vadd.xlane.f32.xlu1 %v6885_v1 }
 0xc97   : > { %v6888_v2 = vpop.eup %5245 }
 0xc98   : > { %3653 = vadd.xlane.f32.xlu0 %v6888_v2 }
 0xc99   : > { %5673 = shalt.err (!%p5670_p4)
}
 0xc9a   : > { %s5674_s7 = scalar_lea.hbm %s6900_s13, 256  ;;  %s5678_s15 = scalar_lea.hbm %s7212_s2, 768 }
 0xc9b   : > { %p5675_p6 = scmp.ne.s32.totalorder %s6900_s13, %s5674_s7  ;;  %p5679_p11 = scmp.lt.u32.totalorder %s6900_s13, %s7212_s2 }
 0xc9c   : > { %p5680_p12 = scmp.lt.u32.totalorder %s5678_s15, %s5674_s7  ;;  %p5682_p10 = scmp.lt.u32.totalorder %s5674_s7, %s6900_s13 }
 0xc9d   : > { %p5676_p0 = pnand %p5675_p6, %p7213_p9 }
 0xc9e   : > { %p5681_p5 = por %p5680_p12, %p5679_p11 }
 0xc9f   : > { %p5677_p1 = pneg %p5676_p0 }
 0xca0   : > { %p5683_p7 = por %p5682_p10, %p5681_p5 }
 0xca2   : > { %p5684_p8 = pnand %p5683_p7, %p5677_p1 }
 0xca4   : > { %5687 = shalt.err (!%p5684_p8)
}
 0xca5   : > { %s7128_s8 = smov 128   ;;  %s7130_s14 = smov 8  }
 0xca6   : > { %4937 = dma.vmem_to_hbm [thread:$0]  (%p7213_p9), %s6892_s22, 256, %s6900_s13, %s3721_s25, %s7128_s8, %s7128_s8, %s7130_s14  }
 0xca7   : > { %s6931_s3 = scalar_lea.vmem [#allocation25], %s6508_s1  ;;  %s3768_s1 = sshll.u32 %s6855_s4, 4  ;;  %s6941_s1 = int_to_ptr.vmem [resolvable:$true] %s3768_s1 }
 0xca8   : > { %s1046_s22 = scalar_lea.vmem [#allocation26], %s6488_s11  ;;  %s3735_s25 = sshll.u32 %s6931_s3, 4  ;;  %s6953_s25 = int_to_ptr.vmem [resolvable:$true] %s3735_s25 }
 0xca9   : > { %s3751_s13 = sshll.u32 %s1046_s22, 4  ;;  %s4417_s18 = sshll.u32 %s6026_s29, 9  ;;  %s6951_s13 = int_to_ptr.vmem [resolvable:$true] %s3751_s13 }
 0xcaa   : > { %s7214_s16 = sld [smem:[#allocation70_spill]]  ;;  %s7215_s30 = sld [smem:[#allocation71_spill]] }
 0xcab   : > { %s3711_s4 = scalar_lea.sflag [#allocation27], %s6497_s27  ;;  %s5688_s11 = scalar_lea.vmem %s6951_s13, 256 }
 0xcac   : > { %p5689_p13 = scmp.ne.s32.totalorder %s6951_s13, %s5688_s11  ;;  %s5877_s8 = smov [#allocation26]  }
 0xcad   : > { %s5692_s14 = sshll.u32 %s5877_s8, 4  ;;  %s5693_s14 = int_to_ptr.vmem [resolvable:$false] %s5692_s14 }
 0xcae   : > { %p5690_p2 = pnand %p5689_p13, %p7213_p9  ;;  %s5694_s7 = scalar_lea.vmem %s5693_s14, 512 }
 0xcaf   : > { %p5695_p4 = scmp.lt.s32.totalorder %s6951_s13, %s5693_s14  ;;  %p5696_p6 = scmp.lt.s32.totalorder %s5694_s7, %s5688_s11 }
 0xcb0   : > { %s6949_s23 = scalar_lea.hbm %s7214_s16, %s4418_s19  ;;  %s6958_s15 = scalar_lea.hbm %s7215_s30, %s4417_s18 }
 0xcb1   : > { %s7216_s19 = sld [smem:[#allocation69_spill]]  ;;  %p5691_p3 = pneg %p5690_p2 }
 0xcb2   : > { %p5697_p0 = por %p5696_p6, %p5695_p4 }
 0xcb4   : > { %p5698_p1 = pnand %p5697_p0, %p5691_p3 }
 0xcb7   : > { %s6964_s10 = scalar_lea.hbm %s7216_s19, %s4417_s18 }
 0xd02   : > { %v3648_v0 = vpop.xlane.xlu1 %3647 }
 0xd03   : > { %5247 = vrcp.f32 %v3648_v0 }
 0xd06   : > { %v3650_v5 = vpop.xlane.xlu0 %3649 }
 0xd07   : > { %5249 = vrcp.f32 %v3650_v5 }
 0xd0d   : > { %v5248_v6 = vpop.eup %5247 }
 0xd0e   : > { %v3659_v19 = vmul.f32 %v5248_v6, %v3648_v0 }
 0xd10   : > { %v3663_v32 = vsub.f32 2.0, %v3659_v19 }
 0xd11   : > { %v5250_v7 = vpop.eup %5249 }
 0xd12   : > { %v3667_v52 = vmul.f32 %v5248_v6, %v3663_v32  ;;  %v3660_v38 = vmul.f32 %v5250_v7, %v3650_v5 }
 0xd14   : > { %v3671_v3 = vmul.f32 %v6873_v53, %v3667_v52  ;;  %v3664_v26 = vsub.f32 2.0, %v3660_v38 }
 0xd16   : > { %3675 = vst [vmem:[%s6931_s3] sm:$0xff] %v3671_v3  ;;  %v3668_v36 = vmul.f32 %v5250_v7, %v3664_v26 }
 0xd18   : > { %v3672_v8 = vmul.f32 %v6876_v47, %v3668_v36 }
 0xd1a   : > { %3676 = vst [vmem:[%s6931_s3 + $0x8] sm:$0xff] %v3672_v8 }
 0xd1f   : > { %v3690_v4 = vpop.xlane.xlu1 %3689 }
 0xd20   : > { %5251 = vrcp.f32 %v3690_v4 }
 0xd21   : > { %v3692_v9 = vpop.xlane.xlu0 %3691 }
 0xd22   : > { %5253 = vrcp.f32 %v3692_v9 }
 0xd23   : > { %v3652_v10 = vpop.xlane.xlu1 %3651 }
 0xd24   : > { %5255 = vrcp.f32 %v3652_v10 }
 0xd25   : > { %v3654_v11 = vpop.xlane.xlu0 %3653 }
 0xd26   : > { %5257 = vrcp.f32 %v3654_v11 }
 0xd2a   : > { %v5252_v12 = vpop.eup %5251 }
 0xd2b   : > { %v3695_v13 = vmul.f32 %v5252_v12, %v3690_v4 }
 0xd2c   : > { %v5254_v40 = vpop.eup %5253 }
 0xd2d   : > { %v3697_v14 = vsub.f32 2.0, %v3695_v13  ;;  %v3696_v16 = vmul.f32 %v5254_v40, %v3692_v9 }
 0xd2e   : > { %v5256_v17 = vpop.eup %5255 }
 0xd2f   : > { %v3699_v31 = vmul.f32 %v5252_v12, %v3697_v14  ;;  %v3698_v18 = vsub.f32 2.0, %v3696_v16  ;;  %v3661_v24 = vmul.f32 %v5256_v17, %v3652_v10 }
 0xd30   : > { %v5258_v20 = vpop.eup %5257 }
 0xd31   : > { %v3701_v21 = vmul.f32 %v6879_v62, %v3699_v31  ;;  %v3700_v22 = vmul.f32 %v5254_v40, %v3698_v18  ;;  %v3665_v23 = vsub.f32 2.0, %v3661_v24  ;;  %v3662_v25 = vmul.f32 %v5258_v20, %v3654_v11 }
 0xd33   : > { %3703 = vst [vmem:[%s1046_s22] sm:$0xff] %v3701_v21  ;;  %v3702_v28 = vmul.f32 %v6882_v63, %v3700_v22  ;;  %v3669_v30 = vmul.f32 %v5256_v17, %v3665_v23  ;;  %v3666_v39 = vsub.f32 2.0, %v3662_v25 }
 0xd35   : > { %3704 = vst [vmem:[%s1046_s22 + $0x8] sm:$0xff] %v3702_v28  ;;  %v3673_v41 = vmul.f32 %v6885_v1, %v3669_v30  ;;  %v3670_v42 = vmul.f32 %v5258_v20, %v3666_v39 }
 0xd36   : > { %5701 = shalt.err (!%p5698_p1)
}
 0xd37   : > { %s5702_s22 = scalar_lea.hbm %s6949_s23, 256  ;;  %s5706_s8 = scalar_lea.hbm %s7214_s16, 768 }
 0xd38   : > { %p5703_p11 = scmp.ne.s32.totalorder %s6949_s23, %s5702_s22  ;;  %p5707_p10 = scmp.lt.u32.totalorder %s6949_s23, %s7214_s16 }
 0xd39   : > { %p5708_p7 = scmp.lt.u32.totalorder %s5706_s8, %s5702_s22  ;;  %p5710_p13 = scmp.lt.u32.totalorder %s5702_s22, %s6949_s23 }
 0xd3a   : > { %p5704_p12 = pnand %p5703_p11, %p7213_p9 }
 0xd3b   : > { %p5709_p8 = por %p5708_p7, %p5707_p10 }
 0xd3c   : > { %p5705_p5 = pneg %p5704_p12 }
 0xd3d   : > { %p5711_p2 = por %p5710_p13, %p5709_p8 }
 0xd3f   : > { %p5712_p3 = pnand %p5711_p2, %p5705_p5 }
 0xd41   : > { %5715 = shalt.err (!%p5712_p3)
}
 0xd42   : > { %s7217_s9 = smov 8   ;;  %s7218_s11 = smov 128   ;;  %3677 = vst [vmem:[%s6931_s3 + $0x10] sm:$0xff] %v3673_v41  ;;  %v3674_v43 = vmul.f32 %v6888_v2, %v3670_v42 }
 0xd43   : > { %4935 = dma.vmem_to_hbm [thread:$0]  (%p7213_p9), %s6951_s13, 256, %s6949_s23, %s3711_s4, %s7218_s11, %s7218_s11, %s7217_s9  }
 0xd44   : > { %s5716_s7 = scalar_lea.vmem %s6941_s1, 512  ;;  %s5878_s22 = smov [#allocation28]  }
 0xd45   : > { %p5717_p4 = scmp.ne.s32.totalorder %s6941_s1, %s5716_s7  ;;  %s5720_s18 = sshll.u32 %s5878_s22, 4  ;;  %s5721_s18 = int_to_ptr.vmem [resolvable:$false] %s5720_s18 }
 0xd46   : > { %s5722_s21 = scalar_lea.vmem %s5721_s18, 1024  ;;  %p5723_p1 = scmp.lt.s32.totalorder %s6941_s1, %s5721_s18 }
 0xd47   : > { %p5718_p6 = pnand %p5717_p4, %p7213_p9  ;;  %p5724_p11 = scmp.lt.s32.totalorder %s5722_s21, %s5716_s7 }
 0xd49   : > { %p5719_p0 = pneg %p5718_p6  ;;  %p5725_p12 = por %p5724_p11, %p5723_p1 }
 0xd4b   : > { %p5726_p5 = pnand %p5725_p12, %p5719_p0 }
 0xd4d   : > { %5729 = shalt.err (!%p5726_p5)
}
 0xd4e   : > { %s5730_s13 = scalar_lea.hbm %s6958_s15, 512  ;;  %s5734_s29 = scalar_lea.hbm %s7215_s30, 1536 }
 0xd4f   : > { %p5731_p10 = scmp.ne.s32.totalorder %s6958_s15, %s5730_s13  ;;  %p5735_p13 = scmp.lt.u32.totalorder %s6958_s15, %s7215_s30 }
 0xd50   : > { %p5736_p2 = scmp.lt.u32.totalorder %s5734_s29, %s5730_s13  ;;  %p5738_p4 = scmp.lt.u32.totalorder %s5730_s13, %s6958_s15 }
 0xd51   : > { %p5732_p7 = pnand %p5731_p10, %p7213_p9 }
 0xd52   : > { %p5737_p3 = por %p5736_p2, %p5735_p13 }
 0xd53   : > { %p5733_p8 = pneg %p5732_p7 }
 0xd54   : > { %p5739_p6 = por %p5738_p4, %p5737_p3 }
 0xd56   : > { %p5740_p0 = pnand %p5739_p6, %p5733_p8 }
 0xd58   : > { %5743 = shalt.err (!%p5740_p0)
}
 0xd59   : > { %4936 = dma.vmem_to_hbm [thread:$0]  (%p7213_p9), %s6941_s1, 512, %s6958_s15, %s3711_s4, %s7218_s11, %s7218_s11, %s7217_s9  }
 0xd5a   : > { %3678 = vst [vmem:[%s6931_s3 + $0x18] sm:$0xff] %v3674_v43  ;;  %s3706_s7 = scalar_lea.sflag [#allocation4], %s6485_s24  ;;  %s5744_s18 = scalar_lea.vmem %s6953_s25, 512 }
 0xd5b   : > { %p5745_p1 = scmp.ne.s32.totalorder %s6953_s25, %s5744_s18  ;;  %s5879_s21 = smov [#allocation25]  }
 0xd5c   : > { %s5748_s13 = sshll.u32 %s5879_s21, 4  ;;  %s5749_s13 = int_to_ptr.vmem [resolvable:$false] %s5748_s13 }
 0xd5d   : > { %p5746_p11 = pnand %p5745_p1, %p7213_p9  ;;  %s5750_s27 = scalar_lea.vmem %s5749_s13, 1024 }
 0xd5e   : > { %p5751_p5 = scmp.lt.s32.totalorder %s6953_s25, %s5749_s13  ;;  %p5752_p10 = scmp.lt.s32.totalorder %s5750_s27, %s5744_s18 }
 0xd5f   : > { %p5747_p12 = pneg %p5746_p11 }
 0xd60   : > { %p5753_p7 = por %p5752_p10, %p5751_p5 }
 0xd62   : > { %p5754_p8 = pnand %p5753_p7, %p5747_p12 }
 0xd64   : > { %5757 = shalt.err (!%p5754_p8)
}
 0xd65   : > { %s5758_s3 = scalar_lea.hbm %s6964_s10, 512  ;;  %s5762_s4 = scalar_lea.hbm %s7216_s19, 1536 }
 0xd66   : > { %p5759_p13 = scmp.ne.s32.totalorder %s6964_s10, %s5758_s3  ;;  %p5763_p4 = scmp.lt.u32.totalorder %s6964_s10, %s7216_s19 }
 0xd67   : > { %p5764_p6 = scmp.lt.u32.totalorder %s5762_s4, %s5758_s3  ;;  %p5766_p1 = scmp.lt.u32.totalorder %s5758_s3, %s6964_s10 }
 0xd68   : > { %p5760_p2 = pnand %p5759_p13, %p7213_p9 }
 0xd69   : > { %p5765_p0 = por %p5764_p6, %p5763_p4 }
 0xd6a   : > { %p5761_p3 = pneg %p5760_p2 }
 0xd6b   : > { %p5767_p11 = por %p5766_p1, %p5765_p0 }
 0xd6d   : > { %p5768_p12 = pnand %p5767_p11, %p5761_p3 }
 0xd6f   : > { %5771 = shalt.err (!%p5768_p12)
}
 0xd70   : > { %4934 = dma.vmem_to_hbm [thread:$0]  (%p7213_p9), %s6953_s25, 512, %s6964_s10, %s3706_s7, %s7218_s11, %s7218_s11, %s7217_s9  }
 0xd71 PF: > { %s7219_s29 = sld [smem:[#allocation47_spill]]  ;;  %p5020_p5 = scmp.ge.s32.totalorder %s5850_s28, 2 }
 0xd72   : > { %s3799_s14 = sand.u32 1, %s5838_s5  }
 0xd73   : > { %s3800_s22 = scalar_lea.sflag [#allocation4], %s3799_s14 }
 0xd77   : > { %p7220_p10 = scmp.ne.s32.totalorder %s7219_s29, 0 }
 0xd79   : > { %p4987_p7 = pnand %p5020_p5, %p7220_p10 }
 0xd7b   : > { %5825 = dma.done.wait (!%p4987_p7), %s3800_s22, 512  }
 0xd7c   : > { %5827 = vsyncadd (!%p4987_p7), %s3800_s22, 4294966784  ;;  %s7221_s20 = sadd.s32 4294967294, %s5850_s28  }
 0xd7d   : > { %s3808_s18 = sand.u32 1, %s7221_s20  }
 0xd7e   : > { %s3809_s21 = scalar_lea.sflag [#allocation27], %s3808_s18 }
 0xd7f   : > { %5829 = dma.done.wait (!%p4987_p7), %s3809_s21, 768  }
 0xd80   : > { %5831 = vsyncadd (!%p4987_p7), %s3809_s21, 4294966528  ;;  %s3827_s24 = scalar_lea.sflag [#allocation30], %s3799_s14 }
 0xd81   : > { %5833 = dma.done.wait (!%p4987_p7), %s3827_s24, 256  }
 0xd82   : > { %5835 = vsyncadd (!%p4987_p7), %s3827_s24, 4294967040  ;;  %s7222_s28 = sld [smem:[#allocation45_spill]]  ;;  %s7223_s25 = sld [smem:[#allocation43_spill]] }
 0xd83   : > { %s7224_s27 = sld [smem:[#allocation46_spill]]  ;;  %s7225_s5 = smov %s5842_s26 }
 0xd88   : > { %p55_p9 = scmp.ge.s32.totalorder %s7222_s28, 5   ;;  %s7226_s26 = smov %s7223_s25 }
 0xd8a   :  { %57 = sbr.rel (!%p55_p9) target bundleno = 44 (0x2c), region = 294 }
 0xd91   :  { %3832 = vsyncpa [#allocation3], 1 }
 0xd92   :  { %3834 = vsyncpa [#allocation3 + $0x1], 1 }
 0xd93   :  { %3835 = vsyncpa [#allocation6], 1 }
 0xd94   :  { %3837 = vsyncpa [#allocation6 + $0x1], 1 }
 0xd95   :  { %3838 = vsyncpa [#allocation9], 1 }
 0xd96   :  { %3840 = vsyncpa [#allocation9 + $0x1], 1 }
 0xd97   :  { %3841 = vsyncpa [#allocation12], 1 }
 0xd98   :  { %3842 = vsyncpa [#allocation15], 1 }
 0xd99   :  { %3843 = vsyncpa [#allocation18], 1 }
 0xd9a   :  { %3844 = vsyncpa [#allocation21], 1 }
 0xd9b   :  { %3845 = vsyncpa [#allocation24], 1 }
 0xd9c   :  { %3846 = vsyncpa [#allocation4], 1 }
 0xd9d   :  { %3848 = vsyncpa [#allocation4 + $0x1], 1 }
 0xd9e   :  { %3849 = vsyncpa [#allocation27], 1 }
 0xd9f   :  { %3851 = vsyncpa [#allocation27 + $0x1], 1 }
 0xda0   :  { %3852 = vsyncpa [#allocation30], 1 }
 0xda1   :  { %3854 = vsyncpa [#allocation30 + $0x1], 1 }

</bundles_post_ra>
